<compile_context>
chip_gen: v6e
topology: v6e:2x2x1
jax: 0.10.0
libtpu: 0.0.40
codegen_flags: <defaults>
</compile_context>

<pallas_src>
import jax
import jax.numpy as jnp
from jax.experimental import pallas as pl
from jax.experimental.pallas import tpu as pltpu

D_IN = 512
D_OUT = 768
EPS = 1e-5


def _round_up(n, m):
    return ((n + m - 1) // m) * m


def _feature_projection_kernel(x_ref, gamma_ref, beta_ref, w_ref, b_ref, o_ref):
    # x_ref: (tm, 512) row tile; gamma/beta: (1, 512) f32; w: (512, 768) bf16; b: (1, 768) f32.
    x = x_ref[...].astype(jnp.float32)

    # LayerNorm over the last dim (biased variance, eps=1e-5, matches torch.nn.LayerNorm).
    mean = jnp.mean(x, axis=-1, keepdims=True)
    centered = x - mean
    var = jnp.mean(centered * centered, axis=-1, keepdims=True)
    xn = centered * jax.lax.rsqrt(var + EPS)
    y = xn * gamma_ref[...] + beta_ref[...]

    # Linear 512 -> 768 on the MXU: bf16 operands, f32 accumulation.
    out = jnp.dot(y.astype(w_ref.dtype), w_ref[...],
                  preferred_element_type=jnp.float32)
    out = out + b_ref[...]

    # Dropout(0.1): identity at inference time.
    o_ref[...] = out.astype(o_ref.dtype)


def feature_projection(x, gamma, beta, weight, bias, *, tm=512,
                       mxu_dtype=jnp.bfloat16, out_dtype=None):
    """x: [B, F, 512] -> [B, F, 768].

    tm: row-tile size (sweep 256-1024; 512 is a good default on v5e/v6e/v7x).
    mxu_dtype: matmul operand dtype (bf16 by default; pass jnp.float32 for exact f32 math).
    out_dtype: output dtype (defaults to x.dtype; pass bf16 to cut the output HBM stream ~2x).
    """
    B, F, D = x.shape
    assert D == D_IN
    rows = B * F
    out_dtype = x.dtype if out_dtype is None else out_dtype

    x2 = x.reshape(rows, D_IN)                       # free reshape, no copy
    gamma2 = gamma.reshape(1, D_IN).astype(jnp.float32)
    beta2 = beta.reshape(1, D_IN).astype(jnp.float32)
    bias2 = bias.reshape(1, D_OUT).astype(jnp.float32)
    w = weight.astype(mxu_dtype)                     # cast once, outside the grid loop

    # Effective row tile: multiple of 8 (sublane), no larger than needed for small inputs.
    tm_eff = min(tm, _round_up(rows, 8))
    grid = pl.cdiv(rows, tm_eff)                     # partial last block handled by Pallas

    cost = pl.CostEstimate(
        flops=2 * rows * D_IN * D_OUT + 6 * rows * D_IN,
        transcendentals=rows,
        bytes_accessed=(rows * D_IN * jnp.dtype(x.dtype).itemsize
                        + rows * D_OUT * jnp.dtype(out_dtype).itemsize
                        + D_IN * D_OUT * jnp.dtype(mxu_dtype).itemsize
                        + (2 * D_IN + D_OUT) * 4),
    )

    out = pl.pallas_call(
        _feature_projection_kernel,
        out_shape=jax.ShapeDtypeStruct((rows, D_OUT), out_dtype),
        grid_spec=pltpu.PrefetchScalarGridSpec(
            num_scalar_prefetch=0,
            grid=(grid,),
            in_specs=[
                pl.BlockSpec((tm_eff, D_IN), lambda i: (i, 0)),
                pl.BlockSpec((1, D_IN), lambda i: (0, 0)),
                pl.BlockSpec((1, D_IN), lambda i: (0, 0)),
                pl.BlockSpec((D_IN, D_OUT), lambda i: (0, 0)),   # weight resident (constant block)
                pl.BlockSpec((1, D_OUT), lambda i: (0, 0)),
            ],
            out_specs=pl.BlockSpec((tm_eff, D_OUT), lambda i: (i, 0)),
        ),
        compiler_params=pltpu.CompilerParams(
            dimension_semantics=("parallel",),       # row axis shards across TCs on v7x megacore
            # ~48 MiB scoped VMEM: plenty for tm<=1024 double-buffered tiles + resident weight,
            # and safely below v7x's 64 MiB physical VMEM (v5e/v6e have 128 MiB).
            vmem_limit_bytes=48 * 1024 * 1024,
        ),
        cost_estimate=cost,
    )(x2, gamma2, beta2, w, bias2)

    return out.reshape(B, F, D_OUT)


def reference_bf16_matmul(x, gamma, beta, weight, bias, mxu_dtype=jnp.bfloat16):
    """Reference matching the kernel's numerics (bf16 matmul operands, f32 accumulation)."""
    xf = x.astype(jnp.float32)
    mean = jnp.mean(xf, axis=-1, keepdims=True)
    var = jnp.mean((xf - mean) ** 2, axis=-1, keepdims=True)
    xn = (xf - mean) * jax.lax.rsqrt(var + EPS)
    y = xn * gamma + beta
    yq = y.astype(mxu_dtype).astype(jnp.float32)
    wq = weight.astype(mxu_dtype).astype(jnp.float32)
    out = jnp.einsum("bfd,de->bfe", yq, wq) + bias
    return out.astype(x.dtype)


def reference_f32(x, gamma, beta, weight, bias):
    xf = x.astype(jnp.float32)
    mean = jnp.mean(xf, axis=-1, keepdims=True)
    var = jnp.mean((xf - mean) ** 2, axis=-1, keepdims=True)
    xn = (xf - mean) * jax.lax.rsqrt(var + EPS)
    y = xn * gamma + beta
    return (jnp.einsum("bfd,de->bfe", y, weight) + bias).astype(x.dtype)


if __name__ == "__main__":
    key = jax.random.PRNGKey(0)
    k_x, k_g, k_b, k_w, k_bias = jax.random.split(key, 5)

    B, F = 2, 72  # F=72 frames per the module docstring; D must be 512
    x = jax.random.normal(k_x, (B, F, D_IN), dtype=jnp.float32)

    # Deterministic synthetic parameters (nn.LayerNorm / nn.Linear shapes)
    gamma = jnp.ones((D_IN,), jnp.float32) + 0.01 * jax.random.normal(k_g, (D_IN,))
    beta = 0.01 * jax.random.normal(k_b, (D_IN,), dtype=jnp.float32)
    weight = (jax.random.normal(k_w, (D_IN, D_OUT), dtype=jnp.float32)
              * (1.0 / jnp.sqrt(D_IN)))
    bias = 0.01 * jax.random.normal(k_bias, (D_OUT,), dtype=jnp.float32)

    out = feature_projection(x, gamma, beta, weight, bias)
    out = jax.block_until_ready(out)
    assert out.shape == (B, F, D_OUT), out.shape

    # Tight check vs a reference with matching bf16-operand matmul numerics.
    ref_q = reference_bf16_matmul(x, gamma, beta, weight, bias)
    assert jnp.allclose(out, ref_q, atol=2e-3, rtol=2e-3), float(
        jnp.max(jnp.abs(out - ref_q)))

    # Loose sanity check vs the full-f32 reference (bf16 operand rounding only).
    ref_f = reference_f32(x, gamma, beta, weight, bias)
    assert jnp.allclose(out, ref_f, atol=1e-1, rtol=1e-1), float(
        jnp.max(jnp.abs(out - ref_f)))

    print("KERNEL_OK")
</pallas_src>

<mosaic_0001>
module attributes {stable_mosaic.version = 11 : i64} {
  func.func @_feature_projection_kernel(%arg0: i32, %arg1: memref<144x512xf32, #tpu.memory_space<vmem>>, %arg2: memref<1x512xf32, #tpu.memory_space<vmem>>, %arg3: memref<1x512xf32, #tpu.memory_space<vmem>>, %arg4: memref<512x768xbf16, #tpu.memory_space<vmem>>, %arg5: memref<1x768xf32, #tpu.memory_space<vmem>>, %arg6: memref<144x768xf32, #tpu.memory_space<vmem>>) attributes {dimension_semantics = [#tpu.dimension_semantics<parallel>], iteration_bounds = array<i64: 1>, scalar_prefetch = 0 : i64, scratch_operands = 0 : i64, tpu.core_type = #tpu.core_type<tc>, window_params = [{transform_indices = @transform_0, window_bounds = array<i64: 144, 512>}, {pipeline_mode = #tpu.pipeline_mode<synchronous>, transform_indices = @transform_1, window_bounds = array<i64: 1, 512>}, {pipeline_mode = #tpu.pipeline_mode<synchronous>, transform_indices = @transform_2, window_bounds = array<i64: 1, 512>}, {pipeline_mode = #tpu.pipeline_mode<synchronous>, transform_indices = @transform_3, window_bounds = array<i64: 512, 768>}, {pipeline_mode = #tpu.pipeline_mode<synchronous>, transform_indices = @transform_4, window_bounds = array<i64: 1, 768>}, {transform_indices = @transform_5, window_bounds = array<i64: 144, 768>}]} {
    %c0 = arith.constant 0 : index
    %c0_0 = arith.constant 0 : index
    %0 = vector.load %arg1[%c0, %c0_0] : memref<144x512xf32, #tpu.memory_space<vmem>>, vector<144x512xf32>
    %cst = arith.constant dense<0.000000e+00> : vector<144xf32>
    %1 = vector.multi_reduction <add>, %0, %cst [1] : vector<144x512xf32> to vector<144xf32>
    %2 = vector.shape_cast %1 : vector<144xf32> to vector<144x1xf32>
    %cst_1 = arith.constant 5.120000e+02 : f32
    %3 = vector.broadcast %cst_1 : f32 to vector<144x1xf32>
    %4 = arith.divf %2, %3 : vector<144x1xf32>
    %5 = vector.broadcast %4 : vector<144x1xf32> to vector<144x512xf32>
    %6 = arith.subf %0, %5 : vector<144x512xf32>
    %7 = arith.mulf %6, %6 : vector<144x512xf32>
    %cst_2 = arith.constant dense<0.000000e+00> : vector<144xf32>
    %8 = vector.multi_reduction <add>, %7, %cst_2 [1] : vector<144x512xf32> to vector<144xf32>
    %9 = vector.shape_cast %8 : vector<144xf32> to vector<144x1xf32>
    %cst_3 = arith.constant 5.120000e+02 : f32
    %10 = vector.broadcast %cst_3 : f32 to vector<144x1xf32>
    %11 = arith.divf %9, %10 : vector<144x1xf32>
    %cst_4 = arith.constant 9.99999974E-6 : f32
    %12 = vector.broadcast %cst_4 : f32 to vector<144x1xf32>
    %13 = arith.addf %11, %12 : vector<144x1xf32>
    %14 = math.rsqrt %13 : vector<144x1xf32>
    %15 = vector.broadcast %14 : vector<144x1xf32> to vector<144x512xf32>
    %16 = arith.mulf %6, %15 : vector<144x512xf32>
    %c0_5 = arith.constant 0 : index
    %c0_6 = arith.constant 0 : index
    %17 = vector.load %arg2[%c0_5, %c0_6] : memref<1x512xf32, #tpu.memory_space<vmem>>, vector<1x512xf32>
    %18 = vector.broadcast %17 : vector<1x512xf32> to vector<144x512xf32>
    %19 = arith.mulf %16, %18 : vector<144x512xf32>
    %c0_7 = arith.constant 0 : index
    %c0_8 = arith.constant 0 : index
    %20 = vector.load %arg3[%c0_7, %c0_8] : memref<1x512xf32, #tpu.memory_space<vmem>>, vector<1x512xf32>
    %21 = vector.broadcast %20 : vector<1x512xf32> to vector<144x512xf32>
    %22 = arith.addf %19, %21 : vector<144x512xf32>
    %23 = arith.truncf %22 : vector<144x512xf32> to vector<144x512xbf16>
    %c0_9 = arith.constant 0 : index
    %c0_10 = arith.constant 0 : index
    %24 = vector.load %arg4[%c0_9, %c0_10] : memref<512x768xbf16, #tpu.memory_space<vmem>>, vector<512x768xbf16>
    %cst_11 = arith.constant dense<0.000000e+00> : vector<144x768xf32>
    %25 = tpu.matmul %23, %24, %cst_11 {dimension_numbers = #tpu.dot_dimension_numbers<[1], [0], [0], [1], [0, 0, 1, 1], [], []>} : vector<144x512xbf16>, vector<512x768xbf16>, vector<144x768xf32> -> vector<144x768xf32>
    %c0_12 = arith.constant 0 : index
    %c0_13 = arith.constant 0 : index
    %26 = vector.load %arg5[%c0_12, %c0_13] : memref<1x768xf32, #tpu.memory_space<vmem>>, vector<1x768xf32>
    %27 = vector.broadcast %26 : vector<1x768xf32> to vector<144x768xf32>
    %28 = arith.addf %25, %27 : vector<144x768xf32>
    %c0_14 = arith.constant 0 : index
    %c0_15 = arith.constant 0 : index
    %29 = vector.load %arg6[%c0_14, %c0_15] : memref<144x768xf32, #tpu.memory_space<vmem>>, vector<144x768xf32>
    tpu.vector_store %arg6[%c0_14, %c0_15], %28 {strides = array<i32>} : memref<144x768xf32, #tpu.memory_space<vmem>>, vector<144x768xf32>,
    return
  }
  func.func @transform_0(%arg0: i32) -> (i32, i32) {
    %c0_i32 = arith.constant 0 : i32
    %c0_i32_0 = arith.constant 0 : i32
    return %arg0, %c0_i32 : i32, i32
  }
  func.func @transform_1(%arg0: i32) -> (i32, i32) {
    %c0_i32 = arith.constant 0 : i32
    %c0_i32_0 = arith.constant 0 : i32
    %c0_i32_1 = arith.constant 0 : i32
    return %c0_i32, %c0_i32_0 : i32, i32
  }
  func.func @transform_2(%arg0: i32) -> (i32, i32) {
    %c0_i32 = arith.constant 0 : i32
    %c0_i32_0 = arith.constant 0 : i32
    %c0_i32_1 = arith.constant 0 : i32
    return %c0_i32, %c0_i32_0 : i32, i32
  }
  func.func @transform_3(%arg0: i32) -> (i32, i32) {
    %c0_i32 = arith.constant 0 : i32
    %c0_i32_0 = arith.constant 0 : i32
    %c0_i32_1 = arith.constant 0 : i32
    return %c0_i32, %c0_i32_0 : i32, i32
  }
  func.func @transform_4(%arg0: i32) -> (i32, i32) {
    %c0_i32 = arith.constant 0 : i32
    %c0_i32_0 = arith.constant 0 : i32
    %c0_i32_1 = arith.constant 0 : i32
    return %c0_i32, %c0_i32_0 : i32, i32
  }
  func.func @transform_5(%arg0: i32) -> (i32, i32) {
    %c0_i32 = arith.constant 0 : i32
    %c0_i32_0 = arith.constant 0 : i32
    return %arg0, %c0_i32 : i32, i32
  }
}

</mosaic_0001>

<bundles_post_ra>
// kernel: tpu_custom_call.1
= control target key start
LH: loop header
LB: loop body
LE: loop exit
PB: predicated region body
PF: predicated region fallthrough
CT: control target
= control target key end

     0   :  { %10 = vsyncpa [#allocation3], 0  ;;  %s4850_s0 = inlined_call_operand.hbm [shape: f32[144,512], index: 0, kind: input, shape index: {}]   ;;  %s4851_s1 = inlined_call_operand.hbm [shape: f32[1,512], index: 1, kind: input, shape index: {}]   ;;  %s4852_s2 = inlined_call_operand.hbm [shape: f32[1,512], index: 2, kind: input, shape index: {}]   ;;  %s4853_s3 = inlined_call_operand.hbm [shape: bf16[512,768], index: 3, kind: input, shape index: {}]   ;;  %s4854_s4 = inlined_call_operand.vmem [shape: f32[1,768], index: 4, kind: input, shape index: {}]   ;;  %s4855_s5 = inlined_call_operand.hbm [shape: f32[144,768], index: 5, kind: output, shape index: {}]  }
   0x1   :  { %11 = vsyncpa [#allocation6], 0 }
   0x2   :  { %12 = vsyncpa [#allocation9], 0 }
   0x3   :  { %13 = vsyncpa [#allocation4], 0  ;;  %s3529_s18 = smov [#allocation5]   ;;  %s3530_s20 = smov [#allocation2]  }
   0x4   :  { %s32_s19 = sshll.u32 %s3529_s18, 4  ;;  %s19_s21 = sshll.u32 %s3530_s20, 4  ;;  %s33_s19 = int_to_ptr.vmem [resolvable:$true] %s32_s19  ;;  %s20_s21 = int_to_ptr.vmem [resolvable:$true] %s19_s21 }
   0x5   :  { %s3429_s22 = scalar_lea.vmem %s33_s19, 64  ;;  %p3434_p1 = scmp.lt.s32.totalorder %s33_s19, %s33_s19 }
   0x6   :  { %p3430_p0 = scmp.ne.s32.totalorder %s33_s19, %s3429_s22  ;;  %p3435_p2 = scmp.lt.s32.totalorder %s3429_s22, %s3429_s22 }
   0x8   :  { %p3436_p3 = por %p3435_p2, %p3434_p1 }
   0xa   :  { %p3437_p4 = pnand %p3436_p3, %p3430_p0 }
   0xc   :  { %3440 = shalt.err (!%p3437_p4)
}
   0xd   :  { %35 = dma.hbm_to_vmem [thread:$0]  %s4851_s1, 64, %s33_s19, [#allocation6]  }
   0xe   :  { %s3449_s25 = scalar_lea.vmem %s20_s21, 9216  ;;  %p3454_p6 = scmp.lt.s32.totalorder %s20_s21, %s20_s21 }
   0xf   :  { %p3450_p5 = scmp.ne.s32.totalorder %s20_s21, %s3449_s25  ;;  %p3455_p7 = scmp.lt.s32.totalorder %s3449_s25, %s3449_s25 }
  0x11   :  { %p3456_p8 = por %p3455_p7, %p3454_p6 }
  0x13   :  { %p3457_p9 = pnand %p3456_p8, %p3450_p5 }
  0x15   :  { %3460 = shalt.err (!%p3457_p9)
}
  0x16   :  { %s3531_s26 = smov 512   ;;  %s3532_s27 = smov 32  }
  0x17   :  { %25 = dma.hbm_to_vmem [thread:$0]  %s4850_s0, 9216, %s20_s21, [#allocation3], %s3531_s26, %s3531_s26, %s3532_s27  }
  0x18   :  { %s3533_s30 = smov [#allocation7]   ;;  %s3534_s7 = smov [#allocation8]  }
  0x19   :  { %s42_s6 = sshll.u32 %s3533_s30, 4  ;;  %s51_s8 = sshll.u32 %s3534_s7, 4  ;;  %s43_s6 = int_to_ptr.vmem [resolvable:$true] %s42_s6  ;;  %s52_s8 = int_to_ptr.vmem [resolvable:$true] %s51_s8 }
  0x1a   :  { %s3469_s1 = scalar_lea.vmem %s43_s6, 64  ;;  %p3474_p11 = scmp.lt.s32.totalorder %s43_s6, %s43_s6 }
  0x1b   :  { %p3470_p10 = scmp.ne.s32.totalorder %s43_s6, %s3469_s1  ;;  %p3475_p12 = scmp.lt.s32.totalorder %s3469_s1, %s3469_s1 }
  0x1d   :  { %p3476_p13 = por %p3475_p12, %p3474_p11 }
  0x1f   :  { %p3477_p0 = pnand %p3476_p13, %p3470_p10 }
  0x21   :  { %3480 = shalt.err (!%p3477_p0)
}
  0x22   :  { %45 = dma.hbm_to_vmem [thread:$0]  %s4852_s2, 64, %s43_s6, [#allocation6]  }
  0x23   :  { %s3489_s11 = scalar_lea.vmem %s52_s8, 24576  ;;  %p3494_p2 = scmp.lt.s32.totalorder %s52_s8, %s52_s8 }
  0x24   :  { %p3490_p1 = scmp.ne.s32.totalorder %s52_s8, %s3489_s11  ;;  %p3495_p3 = scmp.lt.s32.totalorder %s3489_s11, %s3489_s11 }
  0x26   :  { %p3496_p4 = por %p3495_p3, %p3494_p2 }
  0x28   :  { %p3497_p5 = pnand %p3496_p4, %p3490_p1 }
  0x2a   :  { %3500 = shalt.err (!%p3497_p5)
}
  0x2b   :  { %s3535_s0 = smov 384   ;;  %s3536_s12 = smov 24  }
  0x2c   :  { %57 = dma.hbm_to_vmem [thread:$0]  %s4853_s3, 24576, %s52_s8, [#allocation9], %s3535_s0, %s3535_s0, %s3536_s12  }
  0x2d   :  { %3521 = dma.done.wait [#allocation3], 9216  }
  0x2e   :  { %3522 = vsyncadd [#allocation3], 4294958080 }
  0x2f   :  { %3523 = dma.done.wait [#allocation6], 128  }
  0x30   :  { %3524 = vsyncadd [#allocation6], 4294967168 }
  0x31   :  { %3525 = dma.done.wait [#allocation9], 24576  }
  0x32   :  { %3526 = vsyncadd [#allocation9], 4294942720  ;;  %v3582_v0 = vld [vmem:[#allocation2] sm:$0xff]  ;;  %v3584_v1 = vld [vmem:[#allocation2 + $0x8] sm:$0xff] }
  0x33   :  { %v3586_v2 = vld [vmem:[#allocation2 + $0x10] sm:$0xff]  ;;  %v144_v3 = vadd.f32 %v3584_v1, %v3582_v0  ;;  %v3590_v4 = vld [vmem:[#allocation2 + $0x40] sm:$0xff]  ;;  %v3592_v5 = vld [vmem:[#allocation2 + $0x48] sm:$0xff] }
  0x34   :  { %v3594_v6 = vld [vmem:[#allocation2 + $0x18] sm:$0xff]  ;;  %v3596_v7 = vld [vmem:[#allocation2 + $0x50] sm:$0xff]  ;;  %v154_v8 = vadd.f32 %v3592_v5, %v3590_v4  ;;  %v3600_v9 = vld [vmem:[#allocation2 + $0x20] sm:$0xff] }
  0x35   :  { %v145_v10 = vadd.f32 %v144_v3, %v3586_v2  ;;  %v3603_v11 = vld [vmem:[#allocation2 + $0x58] sm:$0xff]  ;;  %v3605_v12 = vld [vmem:[#allocation2 + $0x28] sm:$0xff]  ;;  %v3607_v13 = vld [vmem:[#allocation2 + $0x30] sm:$0xff] }
  0x36   :  { %v155_v14 = vadd.f32 %v154_v8, %v3596_v7  ;;  %v149_v15 = vadd.f32 %v3605_v12, %v3600_v9  ;;  %v3612_v16 = vld [vmem:[#allocation2 + $0x60] sm:$0xff]  ;;  %v3614_v17 = vld [vmem:[#allocation2 + $0x68] sm:$0xff]  ;;  %v3616_v18 = vld [vmem:[#allocation2 + $0x70] sm:$0xff] }
  0x37   :  { %v146_v19 = vadd.f32 %v145_v10, %v3594_v6  ;;  %v3619_v20 = vld [vmem:[#allocation2 + $0x38] sm:$0xff]  ;;  %v159_v21 = vadd.f32 %v3614_v17, %v3612_v16  ;;  %v3623_v22 = vld [vmem:[#allocation2 + $0x80] sm:$0xff]  ;;  %v3625_v23 = vld [vmem:[#allocation2 + $0x88] sm:$0xff] }
  0x38   :  { %v156_v24 = vadd.f32 %v155_v14, %v3603_v11  ;;  %v150_v25 = vadd.f32 %v149_v15, %v3607_v13  ;;  %v3629_v26 = vld [vmem:[#allocation2 + $0x78] sm:$0xff]  ;;  %v3631_v27 = vld [vmem:[#allocation2 + $0x90] sm:$0xff]  ;;  %v164_v28 = vadd.f32 %v3625_v23, %v3623_v22  ;;  %v3635_v29 = vld [vmem:[#allocation2 + $0xa0] sm:$0xff] }
  0x39   :  { %147 = vadd.xlane.f32.xlu0 %v146_v19  ;;  %v160_v30 = vadd.f32 %v159_v21, %v3616_v18  ;;  %v3638_v31 = vld [vmem:[#allocation2 + $0x98] sm:$0xff]  ;;  %v3640_v32 = vld [vmem:[#allocation2 + $0xa8] sm:$0xff]  ;;  %v3642_v33 = vld [vmem:[#allocation2 + $0xb0] sm:$0xff] }
  0x3a   :  { %157 = vadd.xlane.f32.xlu1 %v156_v24  ;;  %v151_v34 = vadd.f32 %v150_v25, %v3619_v20  ;;  %v165_v35 = vadd.f32 %v164_v28, %v3631_v27  ;;  %v169_v36 = vadd.f32 %v3640_v32, %v3635_v29  ;;  %v3648_v37 = vld [vmem:[#allocation2 + $0xc0] sm:$0xff]  ;;  %v3650_v38 = vld [vmem:[#allocation2 + $0xc8] sm:$0xff]  ;;  %v3652_v39 = vld [vmem:[#allocation2 + $0xd0] sm:$0xff] }
  0x3b   :  { %v161_v40 = vadd.f32 %v160_v30, %v3629_v26  ;;  %v3655_v41 = vld [vmem:[#allocation2 + $0xb8] sm:$0xff]  ;;  %v174_v42 = vadd.f32 %v3650_v38, %v3648_v37  ;;  %v3659_v43 = vld [vmem:[#allocation2 + $0xe0] sm:$0xff]  ;;  %v3661_v44 = vld [vmem:[#allocation2 + $0xe8] sm:$0xff] }
  0x3c   :  { %v170_v45 = vadd.f32 %v169_v36, %v3642_v33  ;;  %v3664_v46 = vld [vmem:[#allocation2 + $0xf0] sm:$0xff]  ;;  %v179_v47 = vadd.f32 %v3661_v44, %v3659_v43  ;;  %v3668_v48 = vld [vmem:[#allocation2 + $0x100] sm:$0xff]  ;;  %v166_v49 = vadd.f32 %v165_v35, %v3638_v31  ;;  %v3671_v50 = vld [vmem:[#allocation2 + $0xd8] sm:$0xff] }
  0x3d   :  { %4930 = vst [vmem:[#allocation15_spill] sm:$0xff] %v3664_v46  ;;  %152 = vadd.xlane.f32.xlu0 %v151_v34  ;;  %4931 = vst [vmem:[#allocation16_spill] sm:$0xff] %v3671_v50  ;;  %v175_v51 = vadd.f32 %v174_v42, %v3652_v39  ;;  %v3674_v52 = vld [vmem:[#allocation2 + $0xf8] sm:$0xff]  ;;  %v3676_v53 = vld [vmem:[#allocation2 + $0x108] sm:$0xff] }
  0x3e   :  { %4932 = vst [vmem:[#allocation17_spill] sm:$0xff] %v3674_v52  ;;  %162 = vadd.xlane.f32.xlu1 %v161_v40  ;;  %v171_v54 = vadd.f32 %v170_v45, %v3655_v41  ;;  %v180_v55 = vadd.f32 %v179_v47, %v3664_v46  ;;  %v3680_v56 = vld [vmem:[#allocation2 + $0x110] sm:$0xff]  ;;  %v184_v57 = vadd.f32 %v3676_v53, %v3668_v48  ;;  %v3684_v58 = vld [vmem:[#allocation2 + $0x120] sm:$0xff]  ;;  %v3686_v59 = vld [vmem:[#allocation2 + $0x128] sm:$0xff] }
  0x3f   :  { %4933 = vst [vmem:[#allocation18_spill] sm:$0xff] %v3680_v56  ;;  %v3688_v60 = vld [vmem:[#allocation2 + $0x130] sm:$0xff]  ;;  %v189_v61 = vadd.f32 %v3686_v59, %v3684_v58  ;;  %v3692_v62 = vld [vmem:[#allocation2 + $0x140] sm:$0xff]  ;;  %v3694_v63 = vld [vmem:[#allocation2 + $0x148] sm:$0xff]  ;;  %v176_v8 = vadd.f32 %v175_v51, %v3671_v50 }
  0x40   :  { %4934 = vst [vmem:[#allocation19_spill] sm:$0xff] %v3688_v60  ;;  %v3696_v3 = vld [vmem:[#allocation2 + $0x160] sm:$0xff]  ;;  %v3699_v10 = vld [vmem:[#allocation2 + $0x118] sm:$0xff]  ;;  %v185_v14 = vadd.f32 %v184_v57, %v3680_v56  ;;  %v194_v19 = vadd.f32 %v3694_v63, %v3692_v62  ;;  %v3706_v21 = vld [vmem:[#allocation2 + $0x168] sm:$0xff]  ;;  %v181_v24 = vadd.f32 %v180_v55, %v3674_v52 }
  0x41   :  { %167 = vadd.xlane.f32.xlu0 %v166_v49  ;;  %4935 = vst [vmem:[#allocation20_spill] sm:$0xff] %v3699_v10  ;;  %v3702_v15 = vld [vmem:[#allocation2 + $0x138] sm:$0xff]  ;;  %4937 = vst [vmem:[#allocation22_spill] sm:$0xff] %v3706_v21  ;;  %v190_v25 = vadd.f32 %v189_v61, %v3688_v60  ;;  %v3710_v28 = vld [vmem:[#allocation2 + $0x150] sm:$0xff]  ;;  %v199_v30 = vadd.f32 %v3706_v21, %v3696_v3 }
  0x42   :  { %4936 = vst [vmem:[#allocation21_spill] sm:$0xff] %v3702_v15  ;;  %172 = vadd.xlane.f32.xlu1 %v171_v54  ;;  %4938 = vst [vmem:[#allocation23_spill] sm:$0xff] %v3710_v28  ;;  %v3714_v34 = vld [vmem:[#allocation2 + $0x180] sm:$0xff]  ;;  %v3716_v35 = vld [vmem:[#allocation2 + $0x188] sm:$0xff]  ;;  %v186_v45 = vadd.f32 %v185_v14, %v3699_v10  ;;  %v195_v49 = vadd.f32 %v194_v19, %v3710_v28 }
  0x43   :  { %4939 = vst [vmem:[#allocation24_spill] sm:$0xff] %v3714_v34  ;;  %4940 = vst [vmem:[#allocation25_spill] sm:$0xff] %v3716_v35  ;;  %v3718_v36 = vld [vmem:[#allocation2 + $0x170] sm:$0xff]  ;;  %v3720_v40 = vld [vmem:[#allocation2 + $0x1a0] sm:$0xff]  ;;  %v204_v54 = vadd.f32 %v3716_v35, %v3714_v34  ;;  %v191_v55 = vadd.f32 %v190_v25, %v3702_v15 }
  0x44   :  { %4941 = vst [vmem:[#allocation26_spill] sm:$0xff] %v3718_v36  ;;  %4942 = vst [vmem:[#allocation27_spill] sm:$0xff] %v3720_v40  ;;  %v3722_v42 = vld [vmem:[#allocation2 + $0x1a8] sm:$0xff]  ;;  %v3725_v47 = vld [vmem:[#allocation2 + $0x158] sm:$0xff]  ;;  %v200_v57 = vadd.f32 %v199_v30, %v3718_v36 }
  0x45   :  { %4943 = vst [vmem:[#allocation28_spill] sm:$0xff] %v3722_v42  ;;  %177 = vadd.xlane.f32.xlu0 %v176_v8  ;;  %4944 = vst [vmem:[#allocation29_spill] sm:$0xff] %v3725_v47  ;;  %v3728_v51 = vld [vmem:[#allocation2 + $0x178] sm:$0xff]  ;;  %v122_v61 = vld [vmem:[#allocation2 + $0x190] sm:$0xff]  ;;  %v209_v8 = vadd.f32 %v3722_v42, %v3720_v40  ;;  %v196_v25 = vadd.f32 %v195_v49, %v3725_v47 }
  0x46   :  { %4945 = vst [vmem:[#allocation30_spill] sm:$0xff] %v3728_v51  ;;  %182 = vadd.xlane.f32.xlu1 %v181_v24  ;;  %v3736_v60 = vld [vmem:[#allocation2 + $0x1c0] sm:$0xff]  ;;  %v3738_v14 = vld [vmem:[#allocation2 + $0x1c8] sm:$0xff]  ;;  %v126_v10 = vld [vmem:[#allocation2 + $0x1b0] sm:$0xff]  ;;  %v205_v30 = vadd.f32 %v204_v54, %v122_v61  ;;  %v201_v46 = vadd.f32 %v200_v57, %v3728_v51 }
  0x47   :  { %4946 = vst [vmem:[#allocation31_spill] sm:$0xff] %v3736_v60  ;;  %4947 = vst [vmem:[#allocation32_spill] sm:$0xff] %v3738_v14  ;;  %v3740_v19 = vld [vmem:[#allocation2 + $0x1e0] sm:$0xff]  ;;  %v3742_v28 = vld [vmem:[#allocation2 + $0x1e8] sm:$0xff]  ;;  %v214_v15 = vadd.f32 %v3738_v14, %v3736_v60  ;;  %v210_v50 = vadd.f32 %v209_v8, %v126_v10 }
  0x48   :  { %v3744_v56 = vld [vmem:[#allocation2 + $0x198] sm:$0xff]  ;;  %v130_v24 = vld [vmem:[#allocation2 + $0x1d0] sm:$0xff]  ;;  %v3746_v52 = vld [vmem:[#allocation2 + $0x200] sm:$0xff] }
  0x49   :  { %4948 = vst [vmem:[#allocation33_spill] sm:$0xff] %v3744_v56  ;;  %187 = vadd.xlane.f32.xlu0 %v186_v45  ;;  %v3749_v36 = vld [vmem:[#allocation2 + $0x1b8] sm:$0xff]  ;;  %v134_v42 = vld [vmem:[#allocation2 + $0x1f0] sm:$0xff]  ;;  %v3753_v40 = vld [vmem:[#allocation2 + $0x208] sm:$0xff]  ;;  %v219_v45 = vadd.f32 %v3742_v28, %v3740_v19  ;;  %v206_v61 = vadd.f32 %v205_v30, %v3744_v56  ;;  %v215_v47 = vadd.f32 %v214_v15, %v130_v24 }
  0x4a   :  { %4949 = vst [vmem:[#allocation34_spill] sm:$0xff] %v3749_v36  ;;  %v3755_v35 = vld [vmem:[#allocation2 + $0x220] sm:$0xff]  ;;  %v3757_v34 = vld [vmem:[#allocation2 + $0x228] sm:$0xff]  ;;  %192 = vadd.xlane.f32.xlu1 %v191_v55  ;;  %v3762_v49 = vld [vmem:[#allocation2 + $0x1d8] sm:$0xff]  ;;  %v224_v60 = vadd.f32 %v3753_v40, %v3746_v52  ;;  %v211_v55 = vadd.f32 %v210_v50, %v3749_v36 }
  0x4b   :  { %4950 = vst [vmem:[#allocation35_spill] sm:$0xff] %v3757_v34  ;;  %v138_v54 = vld [vmem:[#allocation2 + $0x210] sm:$0xff]  ;;  %v135_v14 = vld [vmem:[#allocation2 + $0x1f8] sm:$0xff]  ;;  %v220_v57 = vadd.f32 %v219_v45, %v134_v42  ;;  %v229_v10 = vadd.f32 %v3757_v34, %v3755_v35  ;;  %v3095_v34 = vld [vmem:[#allocation8 + $0x124] ss:$24 sps:$4 sm:$0xff]  }
  0x4c   :  { %v142_v21 = vld [vmem:[#allocation2 + $0x230] sm:$0xff]  ;;  %v3770_v8 = vld [vmem:[#allocation2 + $0x218] sm:$0xff]  ;;  %v225_v51 = vadd.f32 %v224_v60, %v138_v54  ;;  %v3097_v60 = vld [vmem:[#allocation8 + $0x120] ss:$24 sps:$4 sm:$0xff]  }
  0x4d   :  { %197 = vadd.xlane.f32.xlu0 %v196_v25  ;;  %v216_v25 = vadd.f32 %v215_v47, %v3762_v49  ;;  %v143_v30 = vld [vmem:[#allocation2 + $0x238] sm:$0xff]  ;;  %v221_v15 = vadd.f32 %v220_v57, %v135_v14  ;;  %v230_v24 = vadd.f32 %v229_v10, %v142_v21  ;;  %v3098_v47 = vld [vmem:[#allocation8 + $0x424] ss:$24 sps:$4 sm:$0xff]   ;;  %v3100_v14 = vld [vmem:[#allocation8 + $0x420] ss:$24 sps:$4 sm:$0xff]  }
  0x4e   :  { %202 = vadd.xlane.f32.xlu1 %v201_v46  ;;  %v226_v56 = vadd.f32 %v225_v51, %v3770_v8  ;;  %v3089_v50 = vld [vmem:[#allocation8 + $0x154] ss:$24 sps:$4 sm:$0xff]   ;;  %v3091_v42 = vld [vmem:[#allocation8 + $0x150] ss:$24 sps:$4 sm:$0xff]   ;;  %v3109_v57 = vld [vmem:[#allocation8 + $0xc0] ss:$24 sps:$4 sm:$0xff]  }
  0x4f   :  { %v231_v46 = vadd.f32 %v230_v24, %v143_v30  ;;  %v3092_v45 = vld [vmem:[#allocation8 + $0x454] ss:$24 sps:$4 sm:$0xff]   ;;  %v3094_v36 = vld [vmem:[#allocation8 + $0x450] ss:$24 sps:$4 sm:$0xff]   ;;  %2021 = vmatprep.subr.bf16.mxu0 %v3089_v50  ;;  %v3112_v10 = vld [vmem:[#allocation8 + $0x3c0] ss:$24 sps:$4 sm:$0xff]  }
  0x50   :  { %2144 = vmatprep.subr.bf16.mxu1 %v3092_v45  ;;  %2022 = vmatpush1.bf16.msra.mxu0 %v3091_v42  ;;  %v3101_v21 = vld [vmem:[#allocation8 + $0xf4] ss:$24 sps:$4 sm:$0xff]   ;;  %v3106_v54 = vld [vmem:[#allocation8 + $0x3f0] ss:$24 sps:$4 sm:$0xff]   ;;  %v3122_v24 = vld [vmem:[#allocation8 + $0x364] ss:$24 sps:$4 sm:$0xff]  }
  0x51   :  { %207 = vadd.xlane.f32.xlu0 %v206_v61  ;;  %2145 = vmatpush1.bf16.msra.mxu1 %v3094_v36  ;;  %v3104_v51 = vld [vmem:[#allocation8 + $0x3f4] ss:$24 sps:$4 sm:$0xff]   ;;  %v3107_v61 = vld [vmem:[#allocation8 + $0xc4] ss:$24 sps:$4 sm:$0xff]   ;;  %v3118_v30 = vld [vmem:[#allocation8 + $0x390] ss:$24 sps:$4 sm:$0xff]  }
  0x52   :  { %212 = vadd.xlane.f32.xlu1 %v211_v55  ;;  %2023 = vmatprep.subr.bf16.mxu0 %v3095_v34  ;;  %v3110_v55 = vld [vmem:[#allocation8 + $0x3c4] ss:$24 sps:$4 sm:$0xff]   ;;  %v3116_v36 = vld [vmem:[#allocation8 + $0x394] ss:$24 sps:$4 sm:$0xff]   ;;  %v3115_v34 = vld [vmem:[#allocation8 + $0x90] ss:$24 sps:$4 sm:$0xff]  }
  0x53   :  { %2146 = vmatprep.subr.bf16.mxu1 %v3098_v47  ;;  %v3124_v50 = vld [vmem:[#allocation8 + $0x360] ss:$24 sps:$4 sm:$0xff]   ;;  %v3125_v42 = vld [vmem:[#allocation8 + $0x34] ss:$24 sps:$4 sm:$0xff]   ;;  %v3127_v47 = vld [vmem:[#allocation8 + $0x30] ss:$24 sps:$4 sm:$0xff]  }
  0x54   :  { %2024 = vmatpush1.bf16.msra.mxu0 %v3097_v60  ;;  %v3128_v45 = vld [vmem:[#allocation8 + $0x334] ss:$24 sps:$4 sm:$0xff]   ;;  %v3130_v60 = vld [vmem:[#allocation8 + $0x330] ss:$24 sps:$4 sm:$0xff]  }
  0x55   :  { %217 = vadd.xlane.f32.xlu0 %v216_v25  ;;  %2147 = vmatpush1.bf16.msra.mxu1 %v3100_v14  ;;  %v3113_v25 = vld [vmem:[#allocation8 + $0x94] ss:$24 sps:$4 sm:$0xff]   ;;  %v3131_v14 = vld [vmem:[#allocation8 + $0x4] ss:$24 sps:$4 sm:$0xff]  }
  0x56   :  { %222 = vadd.xlane.f32.xlu1 %v221_v15  ;;  %2025 = vmatprep.subr.bf16.mxu0 %v3101_v21  ;;  %v3119_v15 = vld [vmem:[#allocation8 + $0x64] ss:$24 sps:$4 sm:$0xff]  }
  0x57   :  { %2148 = vmatprep.subr.bf16.mxu1 %v3104_v51  ;;  %v3134_v21 = vld [vmem:[#allocation8 + $0x304] ss:$24 sps:$4 sm:$0xff]   ;;  %v3133_v51 = vld [vmem:[#allocation8] ss:$24 sps:$4 sm:$0xff]  }
  0x59   :  { %227 = vadd.xlane.f32.xlu0 %v226_v56  ;;  %v3103_v56 = vld [vmem:[#allocation8 + $0xf0] ss:$24 sps:$4 sm:$0xff]   ;;  %2149 = vmatpush1.bf16.msra.mxu1 %v3106_v54  ;;  %v3137_v54 = vld [vmem:[#allocation8 + $0x2d4] ss:$24 sps:$4 sm:$0xff]  }
  0x5a   :  { %232 = vadd.xlane.f32.xlu1 %v231_v46  ;;  %2026 = vmatpush1.bf16.msra.mxu0 %v3103_v56  ;;  %v3121_v46 = vld [vmem:[#allocation8 + $0x60] ss:$24 sps:$4 sm:$0xff]  }
  0x5b   :  { %2027 = vmatprep.subr.bf16.mxu0 %v3107_v61  ;;  %2150 = vmatprep.subr.bf16.mxu1 %v3110_v55  ;;  %v3136_v56 = vld [vmem:[#allocation8 + $0x300] ss:$24 sps:$4 sm:$0xff]   ;;  %v3140_v61 = vld [vmem:[#allocation8 + $0x5d4] ss:$24 sps:$4 sm:$0xff]   ;;  %v3139_v55 = vld [vmem:[#allocation8 + $0x2d0] ss:$24 sps:$4 sm:$0xff]  }
  0x5d   :  { %2151 = vmatpush1.bf16.msra.mxu1 %v3112_v10 }
  0x5e   :  { %2028 = vmatpush1.bf16.msra.mxu0 %v3109_v57  ;;  %2152 = vmatprep.subr.bf16.mxu1 %v3116_v36 }
  0x5f   :  { %2029 = vmatprep.subr.bf16.mxu0 %v3113_v25 }
  0x61   :  { %2153 = vmatpush1.bf16.msra.mxu1 %v3118_v30 }
  0x62   :  { %2030 = vmatpush1.bf16.msra.mxu0 %v3115_v34  ;;  %2154 = vmatprep.subr.bf16.mxu1 %v3122_v24 }
  0x63   :  { %2031 = vmatprep.subr.bf16.mxu0 %v3119_v15 }
  0x65   :  { %2155 = vmatpush1.bf16.msra.mxu1 %v3124_v50 }
  0x66   :  { %2032 = vmatpush1.bf16.msra.mxu0 %v3121_v46  ;;  %2156 = vmatprep.subr.bf16.mxu1 %v3128_v45 }
  0x67   :  { %2033 = vmatprep.subr.bf16.mxu0 %v3125_v42 }
  0x69   :  { %2157 = vmatpush1.bf16.msra.mxu1 %v3130_v60 }
  0x6a   :  { %2034 = vmatpush1.bf16.msra.mxu0 %v3127_v47  ;;  %2158 = vmatprep.subr.bf16.mxu1 %v3134_v21 }
  0x6b   :  { %2035 = vmatprep.subr.bf16.mxu0 %v3131_v14 }
  0x6d   :  { %2159 = vmatpush1.bf16.msra.mxu1 %v3136_v56 }
  0x6e   :  { %2036 = vmatpush1.bf16.msra.mxu0 %v3133_v51  ;;  %2160 = vmatprep.subr.bf16.mxu1 %v3140_v61 }
  0x6f   :  { %2037 = vmatprep.subr.bf16.mxu0 %v3137_v54 }
  0x72   :  { %2038 = vmatpush2.bf16.msra.mxu0 %v3139_v55 }
  0xc2   :  { %v148_v57 = vpop.xlane.xlu0 %147 }
  0xc3   :  { %v235_v10 = vmul.f32 0.001953125, %v148_v57  ;;  %v158_v25 = vpop.xlane.xlu1 %157 }
  0xc4   :  { %v237_v36 = vmul.f32 0.001953125, %v158_v25 }
  0xc5   :  { %v3775_v34 = vsub.f32 %v3582_v0, %v235_v10  ;;  %v3778_v30 = vsub.f32 %v3584_v1, %v235_v10  ;;  %v3781_v15 = vsub.f32 %v3586_v2, %v235_v10  ;;  %v3784_v24 = vsub.f32 %v3594_v6, %v235_v10 }
  0xc6   :  { %v3787_v46 = vsub.f32 %v3590_v4, %v237_v36  ;;  %v3790_v50 = vsub.f32 %v3592_v5, %v237_v36  ;;  %v153_v42 = vpop.xlane.xlu0 %152  ;;  %v3793_v45 = vsub.f32 %v3596_v7, %v237_v36  ;;  %v3796_v0 = vsub.f32 %v3603_v11, %v237_v36 }
  0xc7   :  { %v236_v1 = vmul.f32 0.001953125, %v153_v42  ;;  %v163_v47 = vpop.xlane.xlu1 %162  ;;  %v325_v2 = vmul.f32 %v3775_v34, %v3775_v34  ;;  %v326_v6 = vmul.f32 %v3778_v30, %v3778_v30  ;;  %v327_v4 = vmul.f32 %v3781_v15, %v3781_v15 }
  0xc8   :  { %v238_v5 = vmul.f32 0.001953125, %v163_v47  ;;  %v328_v60 = vmul.f32 %v3784_v24, %v3784_v24  ;;  %v333_v7 = vmul.f32 %v3787_v46, %v3787_v46  ;;  %v334_v11 = vmul.f32 %v3790_v50, %v3790_v50 }
  0xc9   :  { %v3811_v14 = vsub.f32 %v3600_v9, %v236_v1  ;;  %v3814_v21 = vsub.f32 %v3605_v12, %v236_v1  ;;  %v397_v51 = vadd.f32 %v326_v6, %v325_v2  ;;  %v335_v56 = vmul.f32 %v3793_v45, %v3793_v45 }
  0xca   :  { %v3819_v54 = vsub.f32 %v3612_v16, %v238_v5  ;;  %v3822_v61 = vsub.f32 %v3614_v17, %v238_v5  ;;  %v168_v55 = vpop.xlane.xlu0 %167  ;;  %v336_v57 = vmul.f32 %v3796_v0, %v3796_v0  ;;  %v407_v10 = vadd.f32 %v334_v11, %v333_v7 }
  0xcb   :  { %v239_v9 = vmul.f32 0.001953125, %v168_v55  ;;  %v173_v25 = vpop.xlane.xlu1 %172  ;;  %v398_v36 = vadd.f32 %v397_v51, %v327_v4  ;;  %v3827_v12 = vsub.f32 %v3607_v13, %v236_v1  ;;  %v3830_v42 = vsub.f32 %v3619_v20, %v236_v1 }
  0xcc   :  { %v240_v47 = vmul.f32 0.001953125, %v173_v25  ;;  %v408_v16 = vadd.f32 %v407_v10, %v335_v56  ;;  %v329_v17 = vmul.f32 %v3811_v14, %v3811_v14  ;;  %v330_v2 = vmul.f32 %v3814_v21, %v3814_v21 }
  0xcd   :  { %v3837_v6 = vsub.f32 %v3623_v22, %v239_v9  ;;  %v3840_v7 = vsub.f32 %v3625_v23, %v239_v9  ;;  %v399_v4 = vadd.f32 %v398_v36, %v328_v60  ;;  %v331_v13 = vmul.f32 %v3827_v12, %v3827_v12 }
  0xce   :  { %v3845_v20 = vsub.f32 %v3635_v29, %v240_v47  ;;  %v3848_v1 = vsub.f32 %v3640_v32, %v240_v47  ;;  %v178_v11 = vpop.xlane.xlu0 %177  ;;  %v409_v51 = vadd.f32 %v408_v16, %v336_v57  ;;  %v332_v56 = vmul.f32 %v3830_v42, %v3830_v42 }
  0xcf   :  { %4951 = vst [vmem:[#allocation36_spill] sm:$0xff] %v3837_v6  ;;  %v241_v22 = vmul.f32 0.001953125, %v178_v11  ;;  %400 = vadd.xlane.f32.xlu0 %v399_v4  ;;  %v183_v55 = vpop.xlane.xlu1 %182  ;;  %v402_v23 = vadd.f32 %v330_v2, %v329_v17  ;;  %v3853_v60 = vsub.f32 %v3616_v18, %v238_v5  ;;  %v3856_v10 = vsub.f32 %v3629_v26, %v238_v5 }
  0xd0   :  { %4952 = vst [vmem:[#allocation37_spill] sm:$0xff] %v3845_v20  ;;  %4953 = vst [vmem:[#allocation38_spill] sm:$0xff] %v3848_v1  ;;  %v3858_v29 = vmul.f32 0.001953125, %v183_v55  ;;  %v337_v32 = vmul.f32 %v3819_v54, %v3819_v54  ;;  %v338_v57 = vmul.f32 %v3822_v61, %v3822_v61  ;;  %v3865_v25 = vsub.f32 %v3631_v27, %v239_v9 }
  0xd1   :  { %v3868_v36 = vsub.f32 %v3648_v37, %v241_v22  ;;  %v3871_v18 = vsub.f32 %v3650_v38, %v241_v22  ;;  %v403_v16 = vadd.f32 %v402_v23, %v331_v13  ;;  %v339_v26 = vmul.f32 %v3853_v60, %v3853_v60 }
  0xd2   :  { %4954 = vst [vmem:[#allocation39_spill] sm:$0xff] %v3865_v25  ;;  %v3877_v5 = vsub.f32 %v3659_v43, %v3858_v29  ;;  %v3881_v17 = vsub.f32 %v3661_v44, %v3858_v29  ;;  %v188_v27 = vpop.xlane.xlu0 %187  ;;  %v340_v37 = vmul.f32 %v3856_v10, %v3856_v10  ;;  %v412_v2 = vadd.f32 %v338_v57, %v337_v32 }
  0xd3   :  { %4955 = vst [vmem:[#allocation40_spill] sm:$0xff] %v3868_v36  ;;  %4956 = vst [vmem:[#allocation41_spill] sm:$0xff] %v3871_v18  ;;  %v3885_v4 = vmul.f32 0.001953125, %v188_v27  ;;  %410 = vadd.xlane.f32.xlu0 %v409_v51  ;;  %v404_v38 = vadd.f32 %v403_v16, %v332_v56  ;;  %v193_v13 = vpop.xlane.xlu1 %192  ;;  %v3888_v11 = vsub.f32 %v3638_v31, %v239_v9 }
  0xd4   :  { %4957 = vst [vmem:[#allocation42_spill] sm:$0xff] %v3877_v5  ;;  %4958 = vst [vmem:[#allocation43_spill] sm:$0xff] %v3881_v17  ;;  %v341_v43 = vmul.f32 %v3837_v6, %v3837_v6  ;;  %v3892_v55 = vmul.f32 0.001953125, %v193_v13  ;;  %v413_v44 = vadd.f32 %v412_v2, %v339_v26  ;;  %v342_v23 = vmul.f32 %v3840_v7, %v3840_v7 }
  0xd5   :  { %4959 = vst [vmem:[#allocation44_spill] sm:$0xff] %v3888_v11  ;;  %v343_v32 = vmul.f32 %v3865_v25, %v3865_v25  ;;  %v3900_v51 = vsub.f32 %v3668_v48, %v3885_v4  ;;  %v3904_v31 = vsub.f32 %v3676_v53, %v3885_v4  ;;  %405 = vadd.xlane.f32.xlu1 %v404_v38 }
  0xd6   :  { %v344_v9 = vmul.f32 %v3888_v11, %v3888_v11  ;;  %v3909_v56 = vsub.f32 %v3642_v33, %v240_v47  ;;  %v3913_v57 = vsub.f32 %v3684_v58, %v3892_v55  ;;  %v3917_v16 = vsub.f32 %v3686_v59, %v3892_v55  ;;  %v198_v48 = vpop.xlane.xlu0 %197 }
  0xd7   :  { %4960 = vst [vmem:[#allocation45_spill] sm:$0xff] %v3900_v51  ;;  %4961 = vst [vmem:[#allocation46_spill] sm:$0xff] %v3904_v31  ;;  %v414_v26 = vadd.f32 %v413_v44, %v340_v37  ;;  %v417_v27 = vadd.f32 %v342_v23, %v341_v43  ;;  %v3919_v53 = vmul.f32 0.001953125, %v198_v48  ;;  %v203_v2 = vpop.xlane.xlu1 %202  ;;  %v3922_v38 = vsub.f32 %v3655_v41, %v240_v47 }
  0xd8   :  { %4962 = vst [vmem:[#allocation47_spill] sm:$0xff] %v3909_v56  ;;  %4963 = vst [vmem:[#allocation48_spill] sm:$0xff] %v3913_v57  ;;  %v345_v33 = vmul.f32 %v3845_v20, %v3845_v20  ;;  %v346_v58 = vmul.f32 %v3848_v1, %v3848_v1  ;;  %v3928_v25 = vmul.f32 0.001953125, %v203_v2  ;;  %v347_v59 = vmul.f32 %v3909_v56, %v3909_v56  ;;  %v3145_v20 = vld [vmem:[#allocation8 + $0x2a0] ss:$24 sps:$4 sm:$0xff]  }
  0xd9   :  { %4964 = vst [vmem:[#allocation49_spill] sm:$0xff] %v3922_v38  ;;  %v418_v13 = vadd.f32 %v417_v27, %v343_v32  ;;  %v3933_v37 = vsub.f32 %v3652_v39, %v241_v22  ;;  %v3937_v43 = vsub.f32 %v3692_v62, %v3919_v53  ;;  %v3941_v41 = vsub.f32 %v3694_v63, %v3919_v53  ;;  %v4967_v39 = vld [vmem:[#allocation22_spill] sm:$0xff]  ;;  %v4968_v27 = vld [vmem:[#allocation16_spill] sm:$0xff] }
  0xda   :  { %415 = vadd.xlane.f32.xlu1 %v414_v26  ;;  %v348_v47 = vmul.f32 %v3922_v38, %v3922_v38  ;;  %v422_v44 = vadd.f32 %v346_v58, %v345_v33  ;;  %v3947_v32 = vsub.f32 %v3696_v3, %v3928_v25  ;;  %v3951_v48 = vsub.f32 %v4967_v39, %v3928_v25  ;;  %v208_v62 = vpop.xlane.xlu0 %207 }
  0xdb   :  { %4965 = vst [vmem:[#allocation50_spill] sm:$0xff] %v3933_v37  ;;  %v419_v23 = vadd.f32 %v418_v13, %v344_v9  ;;  %v3954_v2 = vsub.f32 %v4968_v27, %v241_v22  ;;  %v3956_v63 = vmul.f32 0.001953125, %v208_v62  ;;  %v349_v56 = vmul.f32 %v3868_v36, %v3868_v36  ;;  %v213_v33 = vpop.xlane.xlu1 %212  ;;  %v4970_v22 = vld [vmem:[#allocation15_spill] sm:$0xff]  ;;  %v4974_v62 = vld [vmem:[#allocation25_spill] sm:$0xff] }
  0xdc   :  { %4966 = vst [vmem:[#allocation51_spill] sm:$0xff] %v3947_v32  ;;  %v423_v26 = vadd.f32 %v422_v44, %v347_v59  ;;  %v350_v9 = vmul.f32 %v3871_v18, %v3871_v18  ;;  %v351_v3 = vmul.f32 %v3933_v37, %v3933_v37  ;;  %v3966_v13 = vmul.f32 0.001953125, %v213_v33  ;;  %v4972_v59 = vld [vmem:[#allocation24_spill] sm:$0xff]  ;;  %v3143_v18 = vld [vmem:[#allocation8 + $0x2a4] ss:$24 sps:$4 sm:$0xff]  }
  0xdd   :  { %4969 = vst [vmem:[#allocation22_spill] sm:$0xff] %v3954_v2  ;;  %420 = vadd.xlane.f32.xlu0 %v419_v23  ;;  %v352_v58 = vmul.f32 %v3954_v2, %v3954_v2  ;;  %v3970_v39 = vsub.f32 %v4970_v22, %v3858_v29  ;;  %v3974_v44 = vsub.f32 %v4972_v59, %v3956_v63  ;;  %v3142_v37 = vld [vmem:[#allocation8 + $0x5d0] ss:$24 sps:$4 sm:$0xff]   ;;  %v4975_v33 = vld [vmem:[#allocation27_spill] sm:$0xff] }
  0xde   :  { %v3978_v27 = vsub.f32 %v4974_v62, %v3956_v63  ;;  %v424_v23 = vadd.f32 %v423_v26, %v348_v47  ;;  %v427_v36 = vadd.f32 %v350_v9, %v349_v56  ;;  %v3982_v2 = vsub.f32 %v4975_v33, %v3966_v13  ;;  %v4976_v22 = vld [vmem:[#allocation28_spill] sm:$0xff]  ;;  %v218_v38 = vpop.xlane.xlu0 %217  ;;  %v4977_v59 = vld [vmem:[#allocation17_spill] sm:$0xff]  ;;  %v3146_v56 = vld [vmem:[#allocation8 + $0x5a4] ss:$24 sps:$4 sm:$0xff]   ;;  %2161 = vmatpush2.bf16.msra.mxu1 %v3142_v37 }
  0xdf   :  { %4971 = vst [vmem:[#allocation16_spill] sm:$0xff] %v3970_v39  ;;  %4973 = vst [vmem:[#allocation15_spill] sm:$0xff] %v3974_v44  ;;  %v3986_v6 = vsub.f32 %v4976_v22, %v3966_v13  ;;  %v3990_v11 = vsub.f32 %v4977_v59, %v3858_v29  ;;  %v353_v47 = vmul.f32 %v3877_v5, %v3877_v5  ;;  %v3994_v9 = vmul.f32 0.001953125, %v218_v38  ;;  %v223_v22 = vpop.xlane.xlu1 %222  ;;  %v4979_v59 = vld [vmem:[#allocation18_spill] sm:$0xff]  ;;  %v4984_v37 = vld [vmem:[#allocation32_spill] sm:$0xff] }
  0xe0   :  { %425 = vadd.xlane.f32.xlu1 %v424_v23  ;;  %v428_v26 = vadd.f32 %v427_v36, %v351_v3  ;;  %v354_v62 = vmul.f32 %v3881_v17, %v3881_v17  ;;  %v355_v33 = vmul.f32 %v3970_v39, %v3970_v39  ;;  %v4004_v1 = vsub.f32 %v4979_v59, %v3885_v4  ;;  %v4981_v23 = vld [vmem:[#allocation20_spill] sm:$0xff]  ;;  %v4982_v39 = vld [vmem:[#allocation31_spill] sm:$0xff] }
  0xe1   :  { %4978 = vst [vmem:[#allocation24_spill] sm:$0xff] %v3990_v11  ;;  %v356_v29 = vmul.f32 %v3990_v11, %v3990_v11  ;;  %v4008_v36 = vsub.f32 %v4981_v23, %v3885_v4  ;;  %v357_v38 = vmul.f32 %v3900_v51, %v3900_v51  ;;  %2039 = vmatprep.subr.bf16.mxu0 %v3143_v18  ;;  %v3149_v51 = vld [vmem:[#allocation8 + $0x274] ss:$24 sps:$4 sm:$0xff]  }
  0xe2   :  { %4980 = vst [vmem:[#allocation25_spill] sm:$0xff] %v4004_v1  ;;  %v429_v3 = vadd.f32 %v428_v26, %v352_v58  ;;  %v4014_v5 = vsub.f32 %v4982_v39, %v3994_v9  ;;  %v4018_v11 = vsub.f32 %v4984_v37, %v3994_v9  ;;  %v432_v17 = vadd.f32 %v354_v62, %v353_v47  ;;  %v228_v26 = vpop.xlane.xlu0 %227  ;;  %v4985_v47 = vld [vmem:[#allocation19_spill] sm:$0xff]  ;;  %v4987_v62 = vld [vmem:[#allocation21_spill] sm:$0xff] }
  0xe3   :  { %2040 = vmatpush2.bf16.msra.mxu0 %v3145_v20  ;;  %v358_v59 = vmul.f32 %v3904_v31, %v3904_v31  ;;  %v359_v4 = vmul.f32 %v4004_v1, %v4004_v1  ;;  %v360_v18 = vmul.f32 %v4008_v36, %v4008_v36  ;;  %v4026_v58 = vmul.f32 0.001953125, %v223_v22  ;;  %2162 = vmatprep.subr.bf16.mxu1 %v3146_v56  ;;  %v3148_v1 = vld [vmem:[#allocation8 + $0x5a0] ss:$24 sps:$4 sm:$0xff]  }
  0xe4   :  { %4983 = vst [vmem:[#allocation27_spill] sm:$0xff] %v4014_v5  ;;  %430 = vadd.xlane.f32.xlu0 %v429_v3  ;;  %v433_v39 = vadd.f32 %v432_v17, %v355_v33  ;;  %v4028_v23 = vmul.f32 0.001953125, %v228_v26  ;;  %v4032_v20 = vsub.f32 %v4985_v47, %v3892_v55  ;;  %v4036_v37 = vsub.f32 %v4987_v62, %v3892_v55  ;;  %v3151_v33 = vld [vmem:[#allocation8 + $0x270] ss:$24 sps:$4 sm:$0xff]   ;;  %v3152_v3 = vld [vmem:[#allocation8 + $0x574] ss:$24 sps:$4 sm:$0xff]  }
  0xe5   :  { %v437_v31 = vadd.f32 %v358_v59, %v357_v38  ;;  %v4040_v22 = vsub.f32 %v3740_v19, %v4026_v58  ;;  %v4044_v17 = vsub.f32 %v3742_v28, %v4026_v58  ;;  %v361_v56 = vmul.f32 %v3913_v57, %v3913_v57  ;;  %v233_v59 = vpop.xlane.xlu1 %232  ;;  %2163 = vmatpush2.bf16.msra.mxu1 %v3148_v1  ;;  %v4992_v62 = vld [vmem:[#allocation29_spill] sm:$0xff] }
  0xe6   :  { %4986 = vst [vmem:[#allocation28_spill] sm:$0xff] %v4032_v20  ;;  %4988 = vst [vmem:[#allocation17_spill] sm:$0xff] %v4036_v37  ;;  %v434_v26 = vadd.f32 %v433_v39, %v356_v29  ;;  %v4050_v55 = vsub.f32 %v3746_v52, %v4028_v23  ;;  %v4054_v38 = vsub.f32 %v3753_v40, %v4028_v23  ;;  %v4990_v39 = vld [vmem:[#allocation23_spill] sm:$0xff]  ;;  %2041 = vmatprep.subr.bf16.mxu0 %v3149_v51  ;;  %v4993_v51 = vld [vmem:[#allocation26_spill] sm:$0xff] }
  0xe7   :  { %v362_v19 = vmul.f32 %v3917_v16, %v3917_v16  ;;  %v438_v28 = vadd.f32 %v437_v31, %v359_v4  ;;  %v363_v47 = vmul.f32 %v4032_v20, %v4032_v20  ;;  %v364_v29 = vmul.f32 %v4036_v37, %v4036_v37  ;;  %2042 = vmatpush2.bf16.msra.mxu0 %v3151_v33 }
  0xe8   :  { %4989 = vst [vmem:[#allocation18_spill] sm:$0xff] %v4050_v55  ;;  %v4064_v52 = vsub.f32 %v4990_v39, %v3919_v53  ;;  %435 = vadd.xlane.f32.xlu1 %v434_v26  ;;  %v4068_v57 = vsub.f32 %v4992_v62, %v3919_v53  ;;  %v365_v1 = vmul.f32 %v3937_v43, %v3937_v43  ;;  %v4076_v37 = vmul.f32 0.001953125, %v233_v59  ;;  %v4994_v39 = vld [vmem:[#allocation30_spill] sm:$0xff]  ;;  %v4996_v59 = vld [vmem:[#allocation35_spill] sm:$0xff] }
  0xe9   :  { %v442_v40 = vadd.f32 %v362_v19, %v361_v56  ;;  %v366_v31 = vmul.f32 %v3941_v41, %v3941_v41  ;;  %v439_v4 = vadd.f32 %v438_v28, %v360_v18  ;;  %v4080_v26 = vsub.f32 %v4993_v51, %v3928_v25  ;;  %2164 = vmatprep.subr.bf16.mxu1 %v3152_v3  ;;  %v3413_v51 = vld [vmem:[#allocation2 + $0x190] sm:$0xff] }
  0xea   :  { %4991 = vst [vmem:[#allocation20_spill] sm:$0xff] %v4064_v52  ;;  %v367_v20 = vmul.f32 %v4064_v52, %v4064_v52  ;;  %v368_v56 = vmul.f32 %v4068_v57, %v4068_v57  ;;  %v4086_v62 = vsub.f32 %v4994_v39, %v3928_v25  ;;  %v4090_v18 = vsub.f32 %v3755_v35, %v4076_v37 }
  0xeb   :  { %v443_v53 = vadd.f32 %v442_v40, %v363_v47  ;;  %v447_v19 = vadd.f32 %v366_v31, %v365_v1  ;;  %440 = vadd.xlane.f32.xlu0 %v439_v4  ;;  %v4094_v28 = vsub.f32 %v4996_v59, %v4076_v37  ;;  %v369_v33 = vmul.f32 %v3947_v32, %v3947_v32  ;;  %v3154_v47 = vld [vmem:[#allocation8 + $0x570] ss:$24 sps:$4 sm:$0xff]   ;;  %v3155_v40 = vld [vmem:[#allocation8 + $0x244] ss:$24 sps:$4 sm:$0xff]  }
  0xec   :  { %4995 = vst [vmem:[#allocation31_spill] sm:$0xff] %v4090_v18  ;;  %v370_v3 = vmul.f32 %v3951_v48, %v3951_v48  ;;  %v371_v31 = vmul.f32 %v4080_v26, %v4080_v26  ;;  %v372_v35 = vmul.f32 %v4086_v62, %v4086_v62  ;;  %v4105_v39 = vsub.f32 %v3413_v51, %v3956_v63  ;;  %v4998_v59 = vld [vmem:[#allocation33_spill] sm:$0xff] }
  0xed   :  { %v444_v1 = vadd.f32 %v443_v53, %v364_v29  ;;  %v448_v25 = vadd.f32 %v447_v19, %v367_v20  ;;  %v4109_v52 = vsub.f32 %v4998_v59, %v3956_v63  ;;  %v373_v32 = vmul.f32 %v3974_v44, %v3974_v44  ;;  %2165 = vmatpush2.bf16.msra.mxu1 %v3154_v47  ;;  %v3157_v20 = vld [vmem:[#allocation8 + $0x240] ss:$24 sps:$4 sm:$0xff]   ;;  %v3414_v19 = vld [vmem:[#allocation2 + $0x1b0] sm:$0xff]  ;;  %v3158_v63 = vld [vmem:[#allocation8 + $0x544] ss:$24 sps:$4 sm:$0xff]  }
  0xee   :  { %v452_v4 = vadd.f32 %v370_v3, %v369_v33  ;;  %4997 = vst [vmem:[#allocation32_spill] sm:$0xff] %v4105_v39  ;;  %v374_v53 = vmul.f32 %v3978_v27, %v3978_v27  ;;  %v4116_v33 = vsub.f32 %v3414_v19, %v3966_v13  ;;  %v5000_v3 = vld [vmem:[#allocation34_spill] sm:$0xff]  ;;  %v375_v44 = vmul.f32 %v4105_v39, %v4105_v39  ;;  %v3415_v19 = vld [vmem:[#allocation2 + $0x1d0] sm:$0xff] }
  0xef   :  { %445 = vadd.xlane.f32.xlu1 %v444_v1  ;;  %v449_v29 = vadd.f32 %v448_v25, %v368_v56  ;;  %v4120_v51 = vsub.f32 %v5000_v3, %v3966_v13  ;;  %v376_v47 = vmul.f32 %v4109_v52, %v4109_v52  ;;  %v377_v56 = vmul.f32 %v3982_v2, %v3982_v2 }
  0xf0   :  { %4999 = vst [vmem:[#allocation19_spill] sm:$0xff] %v4116_v33  ;;  %v453_v59 = vadd.f32 %v452_v4, %v371_v31  ;;  %2043 = vmatprep.subr.bf16.mxu0 %v3155_v40  ;;  %v457_v1 = vadd.f32 %v374_v53, %v373_v32  ;;  %v378_v25 = vmul.f32 %v3986_v6, %v3986_v6 }
  0xf1   :  { %450 = vadd.xlane.f32.xlu0 %v449_v29  ;;  %v379_v13 = vmul.f32 %v4116_v33, %v4116_v33  ;;  %v380_v31 = vmul.f32 %v4120_v51, %v4120_v51  ;;  %v4135_v3 = vsub.f32 %v3415_v19, %v3994_v9  ;;  %v4139_v39 = vsub.f32 %v3762_v49, %v3994_v9  ;;  %v3416_v33 = vld [vmem:[#allocation2 + $0x1f0] sm:$0xff] }
  0xf2   :  { %v454_v4 = vadd.f32 %v453_v59, %v372_v35  ;;  %v381_v32 = vmul.f32 %v4014_v5, %v4014_v5  ;;  %2044 = vmatpush2.bf16.msra.mxu0 %v3157_v20  ;;  %v458_v40 = vadd.f32 %v457_v1, %v375_v44  ;;  %v462_v29 = vadd.f32 %v378_v25, %v377_v56  ;;  %v3160_v59 = vld [vmem:[#allocation8 + $0x540] ss:$24 sps:$4 sm:$0xff]   ;;  %v3161_v19 = vld [vmem:[#allocation8 + $0x214] ss:$24 sps:$4 sm:$0xff]   ;;  %v3163_v1 = vld [vmem:[#allocation8 + $0x210] ss:$24 sps:$4 sm:$0xff]  }
  0xf3   :  { %5001 = vst [vmem:[#allocation21_spill] sm:$0xff] %v4135_v3  ;;  %5002 = vst [vmem:[#allocation23_spill] sm:$0xff] %v4139_v39  ;;  %v382_v53 = vmul.f32 %v4018_v11, %v4018_v11  ;;  %v4146_v35 = vsub.f32 %v3416_v33, %v4026_v58  ;;  %2166 = vmatprep.subr.bf16.mxu1 %v3158_v63  ;;  %v383_v49 = vmul.f32 %v4135_v3, %v4135_v3  ;;  %v3417_v20 = vld [vmem:[#allocation2 + $0x1f8] sm:$0xff] }
  0xf4   :  { %455 = vadd.xlane.f32.xlu1 %v454_v4  ;;  %v384_v9 = vmul.f32 %v4139_v39, %v4139_v39  ;;  %v4153_v44 = vsub.f32 %v3417_v20, %v4026_v58  ;;  %v385_v56 = vmul.f32 %v4040_v22, %v4040_v22  ;;  %v459_v33 = vadd.f32 %v458_v40, %v376_v47  ;;  %v3418_v39 = vld [vmem:[#allocation2 + $0x210] sm:$0xff] }
  0xf5   :  { %5003 = vst [vmem:[#allocation29_spill] sm:$0xff] %v4146_v35  ;;  %v463_v25 = vadd.f32 %v462_v29, %v379_v13  ;;  %v467_v63 = vadd.f32 %v382_v53, %v381_v32  ;;  %v386_v4 = vmul.f32 %v4044_v17, %v4044_v17  ;;  %2167 = vmatpush2.bf16.msra.mxu1 %v3160_v59  ;;  %v3164_v47 = vld [vmem:[#allocation8 + $0x514] ss:$24 sps:$4 sm:$0xff]  }
  0xf6   :  { %v387_v3 = vmul.f32 %v4146_v35, %v4146_v35  ;;  %v388_v5 = vmul.f32 %v4153_v44, %v4153_v44  ;;  %v4164_v58 = vsub.f32 %v3418_v39, %v4028_v23  ;;  %v4168_v20 = vsub.f32 %v3770_v8, %v4028_v23  ;;  %2045 = vmatprep.subr.bf16.mxu0 %v3161_v19  ;;  %v3419_v59 = vld [vmem:[#allocation2 + $0x230] sm:$0xff]  ;;  %v3420_v19 = vld [vmem:[#allocation2 + $0x238] sm:$0xff] }
  0xf7   :  { %460 = vadd.xlane.f32.xlu0 %v459_v33  ;;  %v464_v13 = vadd.f32 %v463_v25, %v380_v31  ;;  %v468_v32 = vadd.f32 %v467_v63, %v383_v49  ;;  %v472_v40 = vadd.f32 %v386_v4, %v385_v56  ;;  %v389_v29 = vmul.f32 %v4050_v55, %v4050_v55  ;;  %v3166_v8 = vld [vmem:[#allocation8 + $0x510] ss:$24 sps:$4 sm:$0xff]   ;;  %v3170_v4 = vld [vmem:[#allocation8 + $0x4e4] ss:$24 sps:$4 sm:$0xff]  }
  0xf8   :  { %5004 = vst [vmem:[#allocation26_spill] sm:$0xff] %v4164_v58  ;;  %v390_v53 = vmul.f32 %v4054_v38, %v4054_v38  ;;  %v391_v39 = vmul.f32 %v4164_v58, %v4164_v58  ;;  %v4177_v35 = vsub.f32 %v3419_v59, %v4076_v37  ;;  %2046 = vmatpush2.bf16.msra.mxu0 %v3163_v1 }
  0xf9   :  { %465 = vadd.xlane.f32.xlu1 %v464_v13  ;;  %v469_v23 = vadd.f32 %v468_v32, %v384_v9  ;;  %v473_v31 = vadd.f32 %v472_v40, %v387_v3  ;;  %v4180_v49 = vsub.f32 %v3420_v19, %v4076_v37  ;;  %v393_v56 = vmul.f32 %v4090_v18, %v4090_v18  ;;  %v3167_v9 = vld [vmem:[#allocation8 + $0x1e4] ss:$24 sps:$4 sm:$0xff]   ;;  %v3169_v3 = vld [vmem:[#allocation8 + $0x1e0] ss:$24 sps:$4 sm:$0xff]   ;;  %v3175_v19 = vld [vmem:[#allocation8 + $0x1b0] ss:$24 sps:$4 sm:$0xff]  }
  0xfa   :  { %5005 = vst [vmem:[#allocation30_spill] sm:$0xff] %v4177_v35  ;;  %v392_v33 = vmul.f32 %v4168_v20, %v4168_v20  ;;  %v477_v25 = vadd.f32 %v390_v53, %v389_v29  ;;  %v394_v63 = vmul.f32 %v4094_v28, %v4094_v28  ;;  %v395_v1 = vmul.f32 %v4177_v35, %v4177_v35  ;;  %v3172_v29 = vld [vmem:[#allocation8 + $0x4e0] ss:$24 sps:$4 sm:$0xff]   ;;  %v3176_v35 = vld [vmem:[#allocation8 + $0x4b4] ss:$24 sps:$4 sm:$0xff]  }
  0xfb   :  { %5006 = vst [vmem:[#allocation35_spill] sm:$0xff] %v4180_v49  ;;  %2168 = vmatprep.subr.bf16.mxu1 %v3164_v47  ;;  %470 = vadd.xlane.f32.xlu0 %v469_v23  ;;  %v474_v37 = vadd.f32 %v473_v31, %v388_v5  ;;  %v396_v32 = vmul.f32 %v4180_v49, %v4180_v49  ;;  %v3173_v47 = vld [vmem:[#allocation8 + $0x1b4] ss:$24 sps:$4 sm:$0xff]   ;;  %v3178_v5 = vld [vmem:[#allocation8 + $0x4b0] ss:$24 sps:$4 sm:$0xff]  }
  0xfc   :  { %2169 = vmatpush2.bf16.msra.mxu1 %v3166_v8  ;;  %v478_v13 = vadd.f32 %v477_v25, %v391_v39  ;;  %v482_v40 = vadd.f32 %v394_v63, %v393_v56  ;;  %2047 = vmatprep.subr.bf16.mxu0 %v3167_v9  ;;  %v3179_v39 = vld [vmem:[#allocation8 + $0x184] ss:$24 sps:$4 sm:$0xff]   ;;  %v3181_v31 = vld [vmem:[#allocation8 + $0x180] ss:$24 sps:$4 sm:$0xff]  }
  0xfd   :  { %2170 = vmatprep.subr.bf16.mxu1 %v3170_v4  ;;  %475 = vadd.xlane.f32.xlu1 %v474_v37  ;;  %v3182_v8 = vld [vmem:[#allocation8 + $0x484] ss:$24 sps:$4 sm:$0xff]   ;;  %v3184_v56 = vld [vmem:[#allocation8 + $0x480] ss:$24 sps:$4 sm:$0xff]   ;;  %v615_v4 = vlaneseq }
  0xfe   :  { %2048 = vmatpush2.bf16.msra.mxu0 %v3169_v3  ;;  %v479_v53 = vadd.f32 %v478_v13, %v392_v33  ;;  %v483_v59 = vadd.f32 %v482_v40, %v395_v1  ;;  %v3187_v33 = vld [vmem:[#allocation8 + $0x15c] ss:$24 sps:$4 sm:$0xff]  }
  0xff   :  { %2049 = vmatprep.subr.bf16.mxu0 %v3173_v47  ;;  %v3190_v25 = vld [vmem:[#allocation8 + $0x45c] ss:$24 sps:$4 sm:$0xff]  }
 0x100   :  { %2171 = vmatpush2.bf16.msra.mxu1 %v3172_v29  ;;  %480 = vadd.xlane.f32.xlu0 %v479_v53  ;;  %v484_v23 = vadd.f32 %v483_v59, %v396_v32  ;;  %v4192_v29 = vshrl.u32 %v615_v4, 7 }
 0x101   :  { %2172 = vmatprep.subr.bf16.mxu1 %v3176_v35 }
 0x102   :  { %485 = vadd.xlane.f32.xlu1 %v484_v23  ;;  %2050 = vmatpush2.bf16.msra.mxu0 %v3175_v19  ;;  %5007 = vst [vmem:[#allocation33_spill] sm:$0xff] %v4192_v29  ;;  %v4195_v23 = vsub.s32 1, %v4192_v29 }
 0x103   :  { %2051 = vmatprep.subr.bf16.mxu0 %v3179_v39 }
 0x104   :  { %2173 = vmatpush2.bf16.msra.mxu1 %v3178_v5  ;;  %5008 = vst [vmem:[#allocation34_spill] sm:$0xff] %v4195_v23  ;;  %v4198_v5 = vsub.s32 3, %v4192_v29 }
 0x105   :  { %2174 = vmatprep.subr.bf16.mxu1 %v3182_v8  ;;  %v613_v8 = vld [vmem:[#allocation5] sm:$0xf] }
 0x106   :  { %2052 = vmatpush2.bf16.msra.mxu0 %v3181_v31  ;;  %5009 = vst [vmem:[#allocation52_spill] sm:$0xff] %v4198_v5  ;;  %v4201_v31 = vsub.s32 0, %v4192_v29 }
 0x107   :  { %2267 = vmatprep.subr.bf16.mxu0 %v3187_v33  ;;  %v707_v33 = vld [vmem:[#allocation7] sm:$0xf] }
 0x108   :  { %2175 = vmatpush2.bf16.msra.mxu1 %v3184_v56  ;;  %5010 = vst [vmem:[#allocation53_spill] sm:$0xff] %v4201_v31  ;;  %v4204_v56 = vsub.s32 2, %v4192_v29  ;;  %v4213_v4 = vrot.slane %v707_v33, %v4195_v23 }
 0x109   :  { %2390 = vmatprep.subr.bf16.mxu1 %v3190_v25 }
 0x10a   :  { %5011 = vst [vmem:[#allocation54_spill] sm:$0xff] %v4204_v56 }
 0x158   :  { %v401_v63 = vpop.xlane.xlu0 %400 }
 0x159   :  { %v487_v1 = vmul.f32 0.001953125, %v401_v63 }
 0x15b   :  { %v505_v9 = vadd.f32 1e-05, %v487_v1 }
 0x15c   :  { %v411_v3 = vpop.xlane.xlu0 %410 }
 0x15d   :  { %3377 = vrsqrt.f32 %v505_v9  ;;  %v489_v35 = vmul.f32 0.001953125, %v411_v3  ;;  %v4207_v9 = vrot.slane %v613_v8, %v4195_v23  ;;  %v4210_v3 = vrot.slane %v613_v8, %v4198_v5 }
 0x15e   :  { %v406_v37 = vpop.xlane.xlu1 %405 }
 0x15f   :  { %v488_v13 = vmul.f32 0.001953125, %v406_v37  ;;  %v507_v32 = vadd.f32 1e-05, %v489_v35  ;;  %v4216_v37 = vrot.slane %v613_v8, %v4201_v31 }
 0x161   :  { %v506_v40 = vadd.f32 1e-05, %v488_v13  ;;  %3379 = vrsqrt.f32 %v507_v32  ;;  %v4219_v13 = vrot.slane %v613_v8, %v4204_v56 }
 0x163   :  { %v416_v53 = vpop.xlane.xlu1 %415  ;;  %3381 = vrsqrt.f32 %v506_v40 }
 0x164   :  { %v490_v59 = vmul.f32 0.001953125, %v416_v53 }
 0x166   :  { %v508_v47 = vadd.f32 1e-05, %v490_v59  ;;  %v421_v19 = vpop.xlane.xlu0 %420 }
 0x167   :  { %v491_v39 = vmul.f32 0.001953125, %v421_v19  ;;  %v4225_v19 = vrot.slane %v707_v33, %v4198_v5 }
 0x168   :  { %3383 = vrsqrt.f32 %v508_v47 }
 0x169   :  { %v509_v25 = vadd.f32 1e-05, %v491_v39  ;;  %v426_v63 = vpop.xlane.xlu1 %425  ;;  %v4228_v39 = vrot.slane %v707_v33, %v4201_v31 }
 0x16a   :  { %v492_v1 = vmul.f32 0.001953125, %v426_v63  ;;  %v3378_v35 = vpop.eup %3377 }
 0x16b   :  { %v542_v40 = vmul.f32 %v3378_v35, %v3778_v30  ;;  %v544_v53 = vmul.f32 %v3378_v35, %v3784_v24  ;;  %v541_v59 = vmul.f32 %v3378_v35, %v3775_v34  ;;  %3385 = vrsqrt.f32 %v509_v25 }
 0x16c   :  { %v510_v32 = vadd.f32 1e-05, %v492_v1  ;;  %v543_v63 = vmul.f32 %v3378_v35, %v3781_v15  ;;  %v4238_v25 = vrot.slane %v707_v33, %v4204_v56 }
 0x16d   :  { %v431_v47 = vpop.xlane.xlu0 %430  ;;  %v636_v1 = vmul.f32 %v4207_v9, %v542_v40  ;;  %v638_v30 = vmul.f32 %v4210_v3, %v544_v53  ;;  %v635_v34 = vmul.f32 %v4216_v37, %v541_v59 }
 0x16e   :  { %3387 = vrsqrt.f32 %v510_v32  ;;  %v493_v8 = vmul.f32 0.001953125, %v431_v47  ;;  %v4233_v29 = vpop.eup %3379  ;;  %v637_v24 = vmul.f32 %v4219_v13, %v543_v63 }
 0x16f   :  { %v550_v23 = vmul.f32 %v4233_v29, %v3790_v50  ;;  %v730_v32 = vadd.f32 %v4213_v4, %v636_v1  ;;  %v732_v40 = vadd.f32 %v4225_v19, %v638_v30  ;;  %v552_v53 = vmul.f32 %v4233_v29, %v3796_v0 }
 0x170   :  { %v511_v5 = vadd.f32 1e-05, %v493_v8  ;;  %v3382_v15 = vpop.eup %3381  ;;  %v729_v33 = vadd.f32 %v4228_v39, %v635_v34  ;;  %v731_v56 = vadd.f32 %v4238_v25, %v637_v24  ;;  %v549_v1 = vmul.f32 %v4233_v29, %v3787_v46 }
 0x171   :  { %v436_v35 = vpop.xlane.xlu1 %435  ;;  %v546_v59 = vmul.f32 %v3382_v15, %v3814_v21  ;;  %v548_v63 = vmul.f32 %v3382_v15, %v3830_v42  ;;  %v545_v8 = vmul.f32 %v3382_v15, %v3811_v14  ;;  %v547_v50 = vmul.f32 %v3382_v15, %v3827_v12 }
 0x172   :  { %v494_v47 = vmul.f32 0.001953125, %v436_v35  ;;  %3389 = vrsqrt.f32 %v511_v5  ;;  %v644_v21 = vmul.f32 %v4207_v9, %v550_v23  ;;  %v646_v12 = vmul.f32 %v4210_v3, %v552_v53  ;;  %v3185_v53 = vld [vmem:[#allocation8 + $0x158] ss:$24 sps:$4 sm:$0xff]  }
 0x173   :  { %v640_v0 = vmul.f32 %v4207_v9, %v546_v59  ;;  %v642_v35 = vmul.f32 %v4210_v3, %v548_v63  ;;  %v639_v34 = vmul.f32 %v4216_v37, %v545_v8  ;;  %v641_v14 = vmul.f32 %v4219_v13, %v547_v50 }
 0x174   :  { %v441_v30 = vpop.xlane.xlu0 %440  ;;  %v512_v24 = vadd.f32 1e-05, %v494_v47  ;;  %v3188_v47 = vld [vmem:[#allocation8 + $0x458] ss:$24 sps:$4 sm:$0xff]  }
 0x175   :  { %v3384_v42 = vpop.eup %3383  ;;  %v495_v31 = vmul.f32 0.001953125, %v441_v30  ;;  %v734_v15 = vadd.f32 %v4213_v4, %v640_v0  ;;  %v736_v46 = vadd.f32 %v4225_v19, %v642_v35  ;;  %v733_v63 = vadd.f32 %v4228_v39, %v639_v34  ;;  %v3193_v34 = vld [vmem:[#allocation8 + $0x12c] ss:$24 sps:$4 sm:$0xff]  }
 0x176   :  { %v554_v5 = vmul.f32 %v3384_v42, %v3822_v61  ;;  %v735_v23 = vadd.f32 %v4238_v25, %v641_v14  ;;  %v556_v30 = vmul.f32 %v3384_v42, %v3856_v10  ;;  %v3196_v14 = vld [vmem:[#allocation8 + $0x42c] ss:$24 sps:$4 sm:$0xff]   ;;  %3391 = vrsqrt.f32 %v512_v24 }
 0x177   :  { %v513_v59 = vadd.f32 1e-05, %v495_v31  ;;  %v4266_v18 = vpack.c.bf16 %v734_v15, %v730_v32  ;;  %v4268_v50 = vpack.c.bf16 %v736_v46, %v732_v40  ;;  %v4271_v55 = vpack.c.bf16 %v733_v63, %v729_v33 }
 0x178   :  { %v446_v58 = vpop.xlane.xlu1 %445  ;;  %v648_v0 = vmul.f32 %v4207_v9, %v554_v5  ;;  %v4273_v61 = vpack.c.bf16 %v735_v23, %v731_v56  ;;  %v650_v31 = vmul.f32 %v4210_v3, %v556_v30  ;;  %v4276_v49 = vpop.eup %3385  ;;  %v738_v10 = vadd.f32 %v4213_v4, %v644_v21  ;;  %v3194_v5 = vld [vmem:[#allocation8 + $0x428] ss:$24 sps:$4 sm:$0xff]  }
 0x179   :  { %v496_v8 = vmul.f32 0.001953125, %v446_v58  ;;  %2053 = vmatprep.mubr.bf16.mxu0 %v4266_v18  ;;  %2176 = vmatprep.mubr.bf16.mxu1 %v4268_v50  ;;  %v643_v32 = vmul.f32 %v4216_v37, %v549_v1  ;;  %v740_v33 = vadd.f32 %v4225_v19, %v646_v12  ;;  %v553_v15 = vmul.f32 %v3384_v42, %v3819_v54  ;;  %v3191_v1 = vld [vmem:[#allocation8 + $0x128] ss:$24 sps:$4 sm:$0xff]  }
 0x17a   :  { %v451_v35 = vpop.xlane.xlu0 %450  ;;  %v742_v58 = vadd.f32 %v4213_v4, %v648_v0  ;;  %2054 = vmatmul.mubr.bf16.vlgmr.msra.gmra.mxu0 %v4271_v55  ;;  %2177 = vmatmul.mubr.bf16.vlgmr.msra.gmra.mxu1 %v4273_v61  ;;  %v744_v24 = vadd.f32 %v4225_v19, %v650_v31  ;;  %3393 = vrsqrt.f32 %v513_v59  ;;  %v551_v63 = vmul.f32 %v4233_v29, %v3793_v45  ;;  %v3199_v59 = vld [vmem:[#allocation8 + $0xfc] ss:$24 sps:$4 sm:$0xff]   ;;  %v5013_v31 = vld [vmem:[#allocation44_spill] sm:$0xff] }
 0x17b   :  { %v4283_v40 = vpop.eup %3387  ;;  %v514_v56 = vadd.f32 1e-05, %v496_v8  ;;  %2268 = vmatpush1.bf16.msra.mxu0 %v3185_v53  ;;  %2391 = vmatpush1.bf16.msra.mxu1 %v3188_v47  ;;  %v497_v23 = vmul.f32 0.001953125, %v451_v35  ;;  %v647_v12 = vmul.f32 %v4216_v37, %v553_v15  ;;  %v555_v54 = vmul.f32 %v3384_v42, %v3853_v60  ;;  %v3202_v8 = vld [vmem:[#allocation8 + $0x3fc] ss:$24 sps:$4 sm:$0xff]  }
 0x17c   :  { %v4290_v21 = vpack.c.bf16 %v742_v58, %v738_v10  ;;  %v4294_v30 = vpack.c.bf16 %v744_v24, %v740_v33  ;;  %2269 = vmatprep.subr.bf16.mxu0 %v3193_v34  ;;  %2392 = vmatprep.subr.bf16.mxu1 %v3196_v14  ;;  %v737_v53 = vadd.f32 %v4228_v39, %v643_v32  ;;  %v5012_v29 = vld [vmem:[#allocation38_spill] sm:$0xff] }
 0x17d   :  { %v456_v46 = vpop.xlane.xlu1 %455  ;;  %v645_v47 = vmul.f32 %v4219_v13, %v551_v63  ;;  %v558_v45 = vmul.f32 %v4276_v49, %v3840_v7  ;;  %v562_v0 = vmul.f32 %v4283_v40, %v5012_v29  ;;  %3395 = vrsqrt.f32 %v514_v56  ;;  %v3197_v7 = vld [vmem:[#allocation8 + $0xf8] ss:$24 sps:$4 sm:$0xff]  }
 0x17e   :  { %2063 = vmatprep.mubr.bf16.mxu0 %v4290_v21  ;;  %2186 = vmatprep.mubr.bf16.mxu1 %v4294_v30  ;;  %v741_v60 = vadd.f32 %v4228_v39, %v647_v12  ;;  %v649_v42 = vmul.f32 %v4219_v13, %v555_v54  ;;  %v560_v34 = vmul.f32 %v4276_v49, %v5013_v31  ;;  %v498_v14 = vmul.f32 0.001953125, %v456_v46  ;;  %v3200_v56 = vld [vmem:[#allocation8 + $0x3f8] ss:$24 sps:$4 sm:$0xff]  }
 0x17f   :  { %2270 = vmatpush1.bf16.msra.mxu0 %v3191_v1  ;;  %2393 = vmatpush1.bf16.msra.mxu1 %v3194_v5  ;;  %v739_v10 = vadd.f32 %v4238_v25, %v645_v47  ;;  %v652_v58 = vmul.f32 %v4207_v9, %v558_v45  ;;  %v656_v32 = vmul.f32 %v4207_v9, %v562_v0  ;;  %v4313_v33 = vpop.eup %3389  ;;  %v515_v24 = vadd.f32 1e-05, %v497_v23  ;;  %v5014_v46 = vld [vmem:[#allocation49_spill] sm:$0xff]  ;;  %v3205_v5 = vld [vmem:[#allocation8 + $0xcc] ss:$24 sps:$4 sm:$0xff]  }
 0x180   :  { %v461_v35 = vpop.xlane.xlu0 %460  ;;  %v4315_v63 = vpack.c.bf16 %v741_v60, %v737_v53  ;;  %v743_v12 = vadd.f32 %v4238_v25, %v649_v42  ;;  %2271 = vmatprep.subr.bf16.mxu0 %v3199_v59  ;;  %v564_v1 = vmul.f32 %v4283_v40, %v5014_v46  ;;  %2394 = vmatprep.subr.bf16.mxu1 %v3202_v8  ;;  %v3208_v0 = vld [vmem:[#allocation8 + $0x3cc] ss:$24 sps:$4 sm:$0xff]   ;;  %v516_v42 = vadd.f32 1e-05, %v498_v14 }
 0x181   :  { %v499_v54 = vmul.f32 0.001953125, %v461_v35  ;;  %v746_v45 = vadd.f32 %v4213_v4, %v652_v58  ;;  %v750_v29 = vadd.f32 %v4213_v4, %v656_v32  ;;  %v654_v53 = vmul.f32 %v4210_v3, %v560_v34  ;;  %v5016_v60 = vld [vmem:[#allocation36_spill] sm:$0xff]  ;;  %v5017_v34 = vld [vmem:[#allocation37_spill] sm:$0xff] }
 0x182   :  { %v466_v15 = vpop.xlane.xlu1 %465  ;;  %2064 = vmatmul.mubr.bf16.gmra.mxu0 %v4315_v63  ;;  %v4323_v23 = vpack.c.bf16 %v743_v12, %v739_v10  ;;  %v658_v59 = vmul.f32 %v4210_v3, %v564_v1  ;;  %v557_v8 = vmul.f32 %v4276_v49, %v5016_v60  ;;  %v3203_v58 = vld [vmem:[#allocation8 + $0xc8] ss:$24 sps:$4 sm:$0xff]   ;;  %v561_v46 = vmul.f32 %v4283_v40, %v5017_v34  ;;  %v3211_v1 = vld [vmem:[#allocation8 + $0x9c] ss:$24 sps:$4 sm:$0xff]   ;;  %v3209_v34 = vld [vmem:[#allocation8 + $0x98] ss:$24 sps:$4 sm:$0xff]  }
 0x183   :  { %v500_v47 = vmul.f32 0.001953125, %v466_v15  ;;  %v4329_v35 = vpack.c.bf16 %v750_v29, %v746_v45  ;;  %2272 = vmatpush1.bf16.msra.mxu0 %v3197_v7  ;;  %2395 = vmatpush1.bf16.msra.mxu1 %v3200_v56  ;;  %v3206_v32 = vld [vmem:[#allocation8 + $0x3c8] ss:$24 sps:$4 sm:$0xff]   ;;  %v748_v10 = vadd.f32 %v4225_v19, %v654_v53  ;;  %3397 = vrsqrt.f32 %v515_v24  ;;  %v3214_v56 = vld [vmem:[#allocation8 + $0x39c] ss:$24 sps:$4 sm:$0xff]   ;;  %v4338_v29 = vpop.eup %3391 }
 0x184   :  { %v471_v31 = vpop.xlane.xlu0 %470  ;;  %5015 = vst [vmem:[#allocation38_spill] sm:$0xff] %v4323_v23  ;;  %2187 = vmatmul.mubr.bf16.gmra.mxu1 %v4323_v23  ;;  %v752_v12 = vadd.f32 %v4225_v19, %v658_v59  ;;  %2273 = vmatprep.subr.bf16.mxu0 %v3205_v5  ;;  %v517_v14 = vadd.f32 1e-05, %v499_v54  ;;  %v651_v7 = vmul.f32 %v4216_v37, %v557_v8  ;;  %v5019_v5 = vld [vmem:[#allocation39_spill] sm:$0xff]  ;;  %3399 = vrsqrt.f32 %v516_v42  ;;  %v3212_v42 = vld [vmem:[#allocation8 + $0x398] ss:$24 sps:$4 sm:$0xff]  }
 0x185   :  { %v501_v15 = vmul.f32 0.001953125, %v471_v31  ;;  %v518_v45 = vadd.f32 1e-05, %v500_v47  ;;  %2073 = vmatprep.mubr.bf16.mxu0 %v4329_v35  ;;  %2396 = vmatprep.subr.bf16.mxu1 %v3208_v0  ;;  %v655_v53 = vmul.f32 %v4216_v37, %v561_v46  ;;  %v559_v59 = vmul.f32 %v4276_v49, %v5019_v5  ;;  %v5020_v60 = vld [vmem:[#allocation47_spill] sm:$0xff]  ;;  %v5021_v0 = vld [vmem:[#allocation41_spill] sm:$0xff]  ;;  %v5023_v5 = vld [vmem:[#allocation22_spill] sm:$0xff] }
 0x186   :  { %v4340_v31 = vpack.c.bf16 %v752_v12, %v748_v10  ;;  %v563_v24 = vmul.f32 %v4283_v40, %v5020_v60  ;;  %v476_v54 = vpop.xlane.xlu1 %475  ;;  %v745_v47 = vadd.f32 %v4228_v39, %v651_v7  ;;  %v566_v8 = vmul.f32 %v4313_v33, %v5021_v0 }
 0x187   :  { %2274 = vmatpush1.bf16.msra.mxu0 %v3203_v58  ;;  %2397 = vmatpush1.bf16.msra.mxu1 %v3206_v32  ;;  %v4350_v10 = vpop.eup %3393  ;;  %v519_v12 = vadd.f32 1e-05, %v501_v15  ;;  %v749_v49 = vadd.f32 %v4228_v39, %v655_v53  ;;  %v653_v46 = vmul.f32 %v4219_v13, %v559_v59  ;;  %3401 = vrsqrt.f32 %v517_v14  ;;  %v5022_v58 = vld [vmem:[#allocation43_spill] sm:$0xff] }
 0x188   :  { %5018 = vst [vmem:[#allocation44_spill] sm:$0xff] %v4340_v31  ;;  %2196 = vmatprep.mubr.bf16.mxu1 %v4340_v31  ;;  %v657_v40 = vmul.f32 %v4219_v13, %v563_v24  ;;  %2275 = vmatprep.subr.bf16.mxu0 %v3211_v1  ;;  %v570_v32 = vmul.f32 %v4338_v29, %v5022_v58  ;;  %v3217_v15 = vld [vmem:[#allocation8 + $0x6c] ss:$24 sps:$4 sm:$0xff]   ;;  %3403 = vrsqrt.f32 %v518_v45  ;;  %v502_v0 = vmul.f32 0.001953125, %v476_v54 }
 0x189   :  { %v660_v7 = vmul.f32 %v4207_v9, %v566_v8  ;;  %v568_v60 = vmul.f32 %v4313_v33, %v5023_v5  ;;  %2398 = vmatprep.subr.bf16.mxu1 %v3214_v56  ;;  %v4361_v53 = vpack.c.bf16 %v749_v49, %v745_v47  ;;  %v3220_v59 = vld [vmem:[#allocation8 + $0x36c] ss:$24 sps:$4 sm:$0xff]   ;;  %v747_v1 = vadd.f32 %v4238_v25, %v653_v46  ;;  %v3215_v5 = vld [vmem:[#allocation8 + $0x68] ss:$24 sps:$4 sm:$0xff]   ;;  %v481_v56 = vpop.xlane.xlu0 %480 }
 0x18a   :  { %v4363_v31 = vpop.eup %3395  ;;  %v751_v14 = vadd.f32 %v4238_v25, %v657_v40  ;;  %v664_v24 = vmul.f32 %v4207_v9, %v570_v32  ;;  %v5025_v58 = vld [vmem:[#allocation24_spill] sm:$0xff]  ;;  %3405 = vrsqrt.f32 %v519_v12  ;;  %v5028_v12 = vld [vmem:[#allocation42_spill] sm:$0xff] }
 0x18b   :  { %5024 = vst [vmem:[#allocation49_spill] sm:$0xff] %v4361_v53  ;;  %v572_v8 = vmul.f32 %v4338_v29, %v5025_v58  ;;  %2276 = vmatpush1.bf16.msra.mxu0 %v3209_v34  ;;  %v754_v45 = vadd.f32 %v4213_v4, %v660_v7  ;;  %v662_v54 = vmul.f32 %v4210_v3, %v568_v60  ;;  %v5026_v47 = vld [vmem:[#allocation40_spill] sm:$0xff] }
 0x18c   :  { %2074 = vmatmul.mubr.bf16.gmra.mxu0 %v4361_v53  ;;  %2399 = vmatpush1.bf16.msra.mxu1 %v3212_v42  ;;  %v565_v49 = vmul.f32 %v4313_v33, %v5026_v47  ;;  %v3218_v46 = vld [vmem:[#allocation8 + $0x368] ss:$24 sps:$4 sm:$0xff]   ;;  %v4375_v40 = vpack.c.bf16 %v751_v14, %v747_v1  ;;  %v758_v32 = vadd.f32 %v4213_v4, %v664_v24  ;;  %v520_v53 = vadd.f32 1e-05, %v502_v0  ;;  %v5029_v42 = vld [vmem:[#allocation50_spill] sm:$0xff] }
 0x18d   :  { %v666_v34 = vmul.f32 %v4210_v3, %v572_v8  ;;  %2277 = vmatprep.subr.bf16.mxu0 %v3217_v15  ;;  %v569_v58 = vmul.f32 %v4338_v29, %v5028_v12  ;;  %v756_v7 = vadd.f32 %v4225_v19, %v662_v54  ;;  %v567_v23 = vmul.f32 %v4313_v33, %v5029_v42  ;;  %v3223_v47 = vld [vmem:[#allocation8 + $0x3c] ss:$24 sps:$4 sm:$0xff]   ;;  %v3221_v0 = vld [vmem:[#allocation8 + $0x38] ss:$24 sps:$4 sm:$0xff]   ;;  %v5030_v54 = vld [vmem:[#allocation16_spill] sm:$0xff] }
 0x18e   :  { %5027 = vst [vmem:[#allocation36_spill] sm:$0xff] %v4375_v40  ;;  %v659_v60 = vmul.f32 %v4216_v37, %v565_v49  ;;  %2400 = vmatprep.subr.bf16.mxu1 %v3220_v59  ;;  %v503_v1 = vmul.f32 0.001953125, %v481_v56  ;;  %2197 = vmatmul.mubr.bf16.gmra.mxu1 %v4375_v40  ;;  %v4386_v14 = vpack.c.bf16 %v758_v32, %v754_v45  ;;  %v5031_v59 = vld [vmem:[#allocation46_spill] sm:$0xff]  ;;  %v3229_v45 = vld [vmem:[#allocation8 + $0xc] ss:$24 sps:$4 sm:$0xff]   ;;  %3407 = vrsqrt.f32 %v520_v53 }
 0x18f   :  { %v760_v15 = vadd.f32 %v4225_v19, %v666_v34  ;;  %2278 = vmatpush1.bf16.msra.mxu0 %v3215_v5  ;;  %v663_v24 = vmul.f32 %v4216_v37, %v569_v58  ;;  %v571_v49 = vmul.f32 %v4338_v29, %v5030_v54  ;;  %v661_v33 = vmul.f32 %v4219_v13, %v567_v23  ;;  %v3226_v12 = vld [vmem:[#allocation8 + $0x33c] ss:$24 sps:$4 sm:$0xff]   ;;  %v3224_v58 = vld [vmem:[#allocation8 + $0x338] ss:$24 sps:$4 sm:$0xff]  }
 0x190   :  { %v753_v8 = vadd.f32 %v4228_v39, %v659_v60  ;;  %v574_v56 = vmul.f32 %v4350_v10, %v5031_v59  ;;  %2401 = vmatpush1.bf16.msra.mxu1 %v3218_v46  ;;  %2083 = vmatprep.mubr.bf16.mxu0 %v4386_v14  ;;  %v578_v34 = vmul.f32 %v4363_v31, %v3917_v16  ;;  %v4404_v23 = vpop.eup %3397  ;;  %v486_v60 = vpop.xlane.xlu1 %485 }
 0x191   :  { %v4397_v32 = vpack.c.bf16 %v760_v15, %v756_v7  ;;  %v757_v5 = vadd.f32 %v4228_v39, %v663_v24  ;;  %v576_v29 = vmul.f32 %v4350_v10, %v4008_v36  ;;  %v665_v46 = vmul.f32 %v4219_v13, %v571_v49  ;;  %v5032_v7 = vld [vmem:[#allocation17_spill] sm:$0xff]  ;;  %2279 = vmatprep.subr.bf16.mxu0 %v3223_v47  ;;  %v3232_v24 = vld [vmem:[#allocation8 + $0x30c] ss:$24 sps:$4 sm:$0xff]   ;;  %v3227_v49 = vld [vmem:[#allocation8 + $0x8] ss:$24 sps:$4 sm:$0xff]   ;;  %v4416_v40 = vpop.eup %3399 }
 0x192   :  { %v755_v42 = vadd.f32 %v4238_v25, %v661_v33  ;;  %v668_v54 = vmul.f32 %v4207_v9, %v574_v56  ;;  %v580_v15 = vmul.f32 %v4363_v31, %v5032_v7  ;;  %v672_v36 = vmul.f32 %v4207_v9, %v578_v34  ;;  %2402 = vmatprep.subr.bf16.mxu1 %v3226_v12 }
 0x193   :  { %2206 = vmatprep.mubr.bf16.mxu1 %v4397_v32  ;;  %v4412_v16 = vpack.c.bf16 %v757_v5, %v753_v8  ;;  %v670_v59 = vmul.f32 %v4210_v3, %v576_v29  ;;  %2280 = vmatpush1.bf16.msra.mxu0 %v3221_v0  ;;  %v521_v33 = vadd.f32 1e-05, %v503_v1  ;;  %v759_v56 = vadd.f32 %v4238_v25, %v665_v46  ;;  %v5033_v0 = vld [vmem:[#allocation45_spill] sm:$0xff] }
 0x194   :  { %v762_v7 = vadd.f32 %v4213_v4, %v668_v54  ;;  %v674_v47 = vmul.f32 %v4210_v3, %v580_v15  ;;  %2281 = vmatprep.subr.bf16.mxu0 %v3229_v45  ;;  %v504_v53 = vmul.f32 0.001953125, %v486_v60  ;;  %v766_v8 = vadd.f32 %v4213_v4, %v672_v36  ;;  %2403 = vmatpush1.bf16.msra.mxu1 %v3224_v58  ;;  %v4426_v1 = vpop.eup %3401  ;;  %v5035_v54 = vld [vmem:[#allocation48_spill] sm:$0xff]  ;;  %v5036_v45 = vld [vmem:[#allocation25_spill] sm:$0xff] }
 0x195   :  { %2084 = vmatmul.mubr.bf16.gmra.mxu0 %v4412_v16  ;;  %v764_v5 = vadd.f32 %v4225_v19, %v670_v59  ;;  %v573_v34 = vmul.f32 %v4350_v10, %v5033_v0  ;;  %v4428_v29 = vpack.c.bf16 %v759_v56, %v755_v42  ;;  %v577_v12 = vmul.f32 %v4363_v31, %v5035_v54  ;;  %v4435_v15 = vpop.eup %3403  ;;  %v5037_v59 = vld [vmem:[#allocation28_spill] sm:$0xff] }
 0x196   :  { %v768_v46 = vadd.f32 %v4225_v19, %v674_v47  ;;  %v575_v60 = vmul.f32 %v4350_v10, %v5036_v45  ;;  %2404 = vmatprep.subr.bf16.mxu1 %v3232_v24  ;;  %v4437_v36 = vpack.c.bf16 %v766_v8, %v762_v7  ;;  %v579_v0 = vmul.f32 %v4363_v31, %v5037_v59  ;;  %v3230_v56 = vld [vmem:[#allocation8 + $0x308] ss:$24 sps:$4 sm:$0xff]   ;;  %v3235_v47 = vld [vmem:[#allocation8 + $0x2dc] ss:$24 sps:$4 sm:$0xff]   ;;  %v3233_v8 = vld [vmem:[#allocation8 + $0x2d8] ss:$24 sps:$4 sm:$0xff]  }
 0x197   :  { %5034 = vst [vmem:[#allocation37_spill] sm:$0xff] %v4428_v29  ;;  %v667_v58 = vmul.f32 %v4216_v37, %v573_v34  ;;  %2282 = vmatpush1.bf16.msra.mxu0 %v3227_v49  ;;  %v582_v42 = vmul.f32 %v4404_v23, %v3941_v41  ;;  %2207 = vmatmul.mubr.bf16.gmra.mxu1 %v4428_v29  ;;  %v3238_v34 = vld [vmem:[#allocation8 + $0x5dc] ss:$24 sps:$4 sm:$0xff]   ;;  %v4451_v31 = vpop.eup %3405  ;;  %3409 = vrsqrt.f32 %v521_v33 }
 0x198   :  { %v4445_v54 = vpack.c.bf16 %v768_v46, %v764_v5  ;;  %v671_v10 = vmul.f32 %v4216_v37, %v577_v12  ;;  %v669_v24 = vmul.f32 %v4219_v13, %v575_v60  ;;  %v586_v7 = vmul.f32 %v4416_v40, %v3951_v48  ;;  %2093 = vmatprep.mubr.bf16.mxu0 %v4437_v36  ;;  %v3241_v12 = vld [vmem:[#allocation8 + $0x2ac] ss:$24 sps:$4 sm:$0xff]  }
 0x199   :  { %v761_v41 = vadd.f32 %v4228_v39, %v667_v58  ;;  %v673_v49 = vmul.f32 %v4219_v13, %v579_v0  ;;  %v676_v5 = vmul.f32 %v4207_v9, %v582_v42  ;;  %v584_v46 = vmul.f32 %v4404_v23, %v4068_v57  ;;  %2405 = vmatpush1.bf16.msra.mxu1 %v3230_v56  ;;  %v3236_v57 = vld [vmem:[#allocation8 + $0x5d8] ss:$24 sps:$4 sm:$0xff]  }
 0x19a   :  { %5038 = vst [vmem:[#allocation39_spill] sm:$0xff] %v4445_v54  ;;  %2216 = vmatprep.mubr.bf16.mxu1 %v4445_v54  ;;  %v765_v48 = vadd.f32 %v4228_v39, %v671_v10  ;;  %v763_v45 = vadd.f32 %v4238_v25, %v669_v24  ;;  %v680_v60 = vmul.f32 %v4207_v9, %v586_v7  ;;  %v522_v54 = vadd.f32 1e-05, %v504_v53 }
 0x19b   :  { %v588_v59 = vmul.f32 %v4416_v40, %v4086_v62  ;;  %v767_v58 = vadd.f32 %v4238_v25, %v673_v49  ;;  %v770_v0 = vadd.f32 %v4213_v4, %v676_v5  ;;  %v678_v42 = vmul.f32 %v4210_v3, %v584_v46  ;;  %2283 = vmatprep.subr.bf16.mxu0 %v3235_v47  ;;  %v5039_v49 = vld [vmem:[#allocation51_spill] sm:$0xff] }
 0x19c   :  { %v4468_v29 = vpack.c.bf16 %v765_v48, %v761_v41  ;;  %v774_v10 = vadd.f32 %v4213_v4, %v680_v60  ;;  %2284 = vmatpush2.bf16.msra.mxu0 %v3233_v8  ;;  %2406 = vmatprep.subr.bf16.mxu1 %v3238_v34  ;;  %v581_v7 = vmul.f32 %v4404_v23, %v3937_v43  ;;  %v3239_v47 = vld [vmem:[#allocation8 + $0x2a8] ss:$24 sps:$4 sm:$0xff]   ;;  %v3247_v60 = vld [vmem:[#allocation8 + $0x27c] ss:$24 sps:$4 sm:$0xff]   ;;  %3411 = vrsqrt.f32 %v522_v54  ;;  %v3245_v54 = vld [vmem:[#allocation8 + $0x278] ss:$24 sps:$4 sm:$0xff]  }
 0x19d   :  { %v682_v24 = vmul.f32 %v4210_v3, %v588_v59  ;;  %v4472_v62 = vpack.c.bf16 %v767_v58, %v763_v45  ;;  %v772_v33 = vadd.f32 %v4225_v19, %v678_v42  ;;  %v585_v56 = vmul.f32 %v4416_v40, %v5039_v49  ;;  %2285 = vmatprep.subr.bf16.mxu0 %v3241_v12  ;;  %v5040_v8 = vld [vmem:[#allocation20_spill] sm:$0xff]  ;;  %v4493_v59 = vpop.eup %3407 }
 0x19e   :  { %2094 = vmatmul.mubr.bf16.gmra.mxu0 %v4468_v29  ;;  %v4480_v53 = vpack.c.bf16 %v774_v10, %v770_v0  ;;  %v583_v34 = vmul.f32 %v4404_v23, %v5040_v8  ;;  %v587_v5 = vmul.f32 %v4416_v40, %v4080_v26  ;;  %2407 = vmatpush2.bf16.msra.mxu1 %v3236_v57  ;;  %v3244_v45 = vld [vmem:[#allocation8 + $0x5ac] ss:$24 sps:$4 sm:$0xff]   ;;  %v3242_v58 = vld [vmem:[#allocation8 + $0x5a8] ss:$24 sps:$4 sm:$0xff]   ;;  %v3250_v57 = vld [vmem:[#allocation8 + $0x57c] ss:$24 sps:$4 sm:$0xff]  }
 0x19f   :  { %v776_v41 = vadd.f32 %v4225_v19, %v682_v24  ;;  %v675_v43 = vmul.f32 %v4216_v37, %v581_v7  ;;  %v679_v46 = vmul.f32 %v4216_v37, %v585_v56  ;;  %v590_v12 = vmul.f32 %v4426_v1, %v3978_v27  ;;  %2217 = vmatmul.mubr.bf16.gmra.mxu1 %v4472_v62 }
 0x1a0   :  { %v594_v48 = vmul.f32 %v4435_v15, %v3986_v6  ;;  %2103 = vmatprep.mubr.bf16.mxu0 %v4480_v53  ;;  %v677_v40 = vmul.f32 %v4219_v13, %v583_v34  ;;  %v681_v23 = vmul.f32 %v4219_v13, %v587_v5  ;;  %2286 = vmatpush2.bf16.msra.mxu0 %v3239_v47  ;;  %v5041_v5 = vld [vmem:[#allocation15_spill] sm:$0xff] }
 0x1a1   :  { %v4497_v26 = vpack.c.bf16 %v776_v41, %v772_v33  ;;  %v769_v27 = vadd.f32 %v4228_v39, %v675_v43  ;;  %v773_v6 = vadd.f32 %v4228_v39, %v679_v46  ;;  %v684_v0 = vmul.f32 %v4207_v9, %v590_v12  ;;  %2408 = vmatprep.subr.bf16.mxu1 %v3244_v45  ;;  %v5042_v12 = vld [vmem:[#allocation32_spill] sm:$0xff] }
 0x1a2   :  { %v688_v42 = vmul.f32 %v4207_v9, %v594_v48  ;;  %v771_v10 = vadd.f32 %v4238_v25, %v677_v40  ;;  %v775_v24 = vadd.f32 %v4238_v25, %v681_v23  ;;  %v592_v33 = vmul.f32 %v4426_v1, %v4109_v52  ;;  %2287 = vmatprep.subr.bf16.mxu0 %v3247_v60  ;;  %v5043_v23 = vld [vmem:[#allocation19_spill] sm:$0xff] }
 0x1a3   :  { %2226 = vmatprep.mubr.bf16.mxu1 %v4497_v26  ;;  %v596_v7 = vmul.f32 %v4435_v15, %v4120_v51  ;;  %v4512_v49 = vpack.c.bf16 %v773_v6, %v769_v27  ;;  %v778_v56 = vadd.f32 %v4213_v4, %v684_v0  ;;  %2409 = vmatpush2.bf16.msra.mxu1 %v3242_v58  ;;  %v3248_v51 = vld [vmem:[#allocation8 + $0x578] ss:$24 sps:$4 sm:$0xff]   ;;  %v3253_v27 = vld [vmem:[#allocation8 + $0x24c] ss:$24 sps:$4 sm:$0xff]  }
 0x1a4   :  { %v782_v47 = vadd.f32 %v4213_v4, %v688_v42  ;;  %v4516_v41 = vpack.c.bf16 %v775_v24, %v771_v10  ;;  %v686_v8 = vmul.f32 %v4210_v3, %v592_v33  ;;  %v589_v52 = vmul.f32 %v4426_v1, %v5041_v5  ;;  %2288 = vmatpush2.bf16.msra.mxu0 %v3245_v54  ;;  %v3251_v42 = vld [vmem:[#allocation8 + $0x248] ss:$24 sps:$4 sm:$0xff]   ;;  %v3256_v54 = vld [vmem:[#allocation8 + $0x54c] ss:$24 sps:$4 sm:$0xff]  }
 0x1a5   :  { %v690_v34 = vmul.f32 %v4210_v3, %v596_v7  ;;  %2410 = vmatprep.subr.bf16.mxu1 %v3250_v57  ;;  %v593_v46 = vmul.f32 %v4435_v15, %v3982_v2  ;;  %v591_v48 = vmul.f32 %v4426_v1, %v5042_v12  ;;  %v595_v58 = vmul.f32 %v4435_v15, %v5043_v23  ;;  %v4541_v57 = vpop.eup %3409  ;;  %v5044_v33 = vld [vmem:[#allocation23_spill] sm:$0xff] }
 0x1a6   :  { %v4522_v43 = vpack.c.bf16 %v782_v47, %v778_v56  ;;  %2104 = vmatmul.mubr.bf16.gmra.mxu0 %v4512_v49  ;;  %v780_v45 = vadd.f32 %v4225_v19, %v686_v8  ;;  %v683_v40 = vmul.f32 %v4216_v37, %v589_v52  ;;  %v598_v1 = vmul.f32 %v4451_v31, %v4018_v11  ;;  %v3259_v56 = vld [vmem:[#allocation8 + $0x21c] ss:$24 sps:$4 sm:$0xff]  }
 0x1a7   :  { %v784_v60 = vadd.f32 %v4225_v19, %v690_v34  ;;  %v687_v6 = vmul.f32 %v4216_v37, %v593_v46  ;;  %v685_v2 = vmul.f32 %v4219_v13, %v591_v48  ;;  %v602_v0 = vmul.f32 %v4493_v59, %v4044_v17  ;;  %2227 = vmatmul.mubr.bf16.gmra.mxu1 %v4516_v41  ;;  %v3254_v34 = vld [vmem:[#allocation8 + $0x548] ss:$24 sps:$4 sm:$0xff]  }
 0x1a8   :  { %2113 = vmatprep.mubr.bf16.mxu0 %v4522_v43  ;;  %v777_v10 = vadd.f32 %v4228_v39, %v683_v40  ;;  %v689_v24 = vmul.f32 %v4219_v13, %v595_v58  ;;  %v600_v7 = vmul.f32 %v4451_v31, %v5044_v33  ;;  %2411 = vmatpush2.bf16.msra.mxu1 %v3248_v51  ;;  %v3262_v51 = vld [vmem:[#allocation8 + $0x51c] ss:$24 sps:$4 sm:$0xff]  }
 0x1a9   :  { %v4544_v15 = vpack.c.bf16 %v784_v60, %v780_v45  ;;  %v781_v11 = vadd.f32 %v4228_v39, %v687_v6  ;;  %v779_v17 = vadd.f32 %v4238_v25, %v685_v2  ;;  %v692_v47 = vmul.f32 %v4207_v9, %v598_v1  ;;  %2289 = vmatprep.subr.bf16.mxu0 %v3253_v27  ;;  %v3257_v60 = vld [vmem:[#allocation8 + $0x218] ss:$24 sps:$4 sm:$0xff]   ;;  %v3412_v6 = vpop.eup %3411 }
 0x1aa   :  { %v696_v8 = vmul.f32 %v4207_v9, %v602_v0  ;;  %v783_v5 = vadd.f32 %v4238_v25, %v689_v24  ;;  %v604_v52 = vmul.f32 %v4493_v59, %v4153_v44  ;;  %v694_v46 = vmul.f32 %v4210_v3, %v600_v7  ;;  %2290 = vmatpush2.bf16.msra.mxu0 %v3251_v42  ;;  %v5045_v44 = vld [vmem:[#allocation27_spill] sm:$0xff]  ;;  %v3260_v1 = vld [vmem:[#allocation8 + $0x518] ss:$24 sps:$4 sm:$0xff]  }
 0x1ab   :  { %2236 = vmatprep.mubr.bf16.mxu1 %v4544_v15  ;;  %v4559_v12 = vpack.c.bf16 %v781_v11, %v777_v10  ;;  %v786_v48 = vadd.f32 %v4213_v4, %v692_v47  ;;  %2412 = vmatprep.subr.bf16.mxu1 %v3256_v54  ;;  %v597_v27 = vmul.f32 %v4451_v31, %v5045_v44  ;;  %v5046_v42 = vld [vmem:[#allocation21_spill] sm:$0xff]  ;;  %v3265_v11 = vld [vmem:[#allocation8 + $0x1ec] ss:$24 sps:$4 sm:$0xff]  }
 0x1ac   :  { %v790_v45 = vadd.f32 %v4213_v4, %v696_v8  ;;  %v4563_v40 = vpack.c.bf16 %v783_v5, %v779_v17  ;;  %v698_v23 = vmul.f32 %v4210_v3, %v604_v52  ;;  %v788_v58 = vadd.f32 %v4225_v19, %v694_v46  ;;  %2291 = vmatprep.subr.bf16.mxu0 %v3259_v56  ;;  %v5047_v10 = vld [vmem:[#allocation29_spill] sm:$0xff]  ;;  %v3263_v17 = vld [vmem:[#allocation8 + $0x1e8] ss:$24 sps:$4 sm:$0xff]   ;;  %v3268_v47 = vld [vmem:[#allocation8 + $0x4ec] ss:$24 sps:$4 sm:$0xff]  }
 0x1ad   :  { %2413 = vmatpush2.bf16.msra.mxu1 %v3254_v34  ;;  %v601_v0 = vmul.f32 %v4493_v59, %v4040_v22  ;;  %v599_v54 = vmul.f32 %v4451_v31, %v5046_v42  ;;  %v603_v24 = vmul.f32 %v4493_v59, %v5047_v10  ;;  %v691_v7 = vmul.f32 %v4216_v37, %v597_v27  ;;  %v3271_v5 = vld [vmem:[#allocation8 + $0x1bc] ss:$24 sps:$4 sm:$0xff]  }
 0x1ae   :  { %v4569_v2 = vpack.c.bf16 %v790_v45, %v786_v48  ;;  %2114 = vmatmul.mubr.bf16.gmra.mxu0 %v4559_v12  ;;  %v792_v33 = vadd.f32 %v4225_v19, %v698_v23  ;;  %2414 = vmatprep.subr.bf16.mxu1 %v3262_v51  ;;  %v606_v56 = vmul.f32 %v4541_v57, %v4054_v38  ;;  %v3266_v45 = vld [vmem:[#allocation8 + $0x4e8] ss:$24 sps:$4 sm:$0xff]  }
 0x1af   :  { %2292 = vmatpush2.bf16.msra.mxu0 %v3257_v60  ;;  %v695_v22 = vmul.f32 %v4216_v37, %v601_v0  ;;  %v693_v31 = vmul.f32 %v4219_v13, %v599_v54  ;;  %v697_v59 = vmul.f32 %v4219_v13, %v603_v24  ;;  %2237 = vmatmul.mubr.bf16.gmra.mxu1 %v4563_v40  ;;  %v5048_v23 = vld [vmem:[#allocation35_spill] sm:$0xff] }
 0x1b0   :  { %2123 = vmatprep.mubr.bf16.mxu0 %v4569_v2  ;;  %v4587_v8 = vpack.c.bf16 %v792_v33, %v788_v58  ;;  %v610_v34 = vmul.f32 %v3412_v6, %v4094_v28  ;;  %v700_v38 = vmul.f32 %v4207_v9, %v606_v56  ;;  %v785_v52 = vadd.f32 %v4228_v39, %v691_v7  ;;  %v5050_v24 = vld [vmem:[#allocation31_spill] sm:$0xff] }
 0x1b1   :  { %v789_v46 = vadd.f32 %v4228_v39, %v695_v22  ;;  %v791_v51 = vadd.f32 %v4238_v25, %v697_v59  ;;  %2415 = vmatpush2.bf16.msra.mxu1 %v3260_v1  ;;  %v608_v48 = vmul.f32 %v4541_v57, %v4168_v20  ;;  %v612_v58 = vmul.f32 %v3412_v6, %v5048_v23  ;;  %v3269_v1 = vld [vmem:[#allocation8 + $0x1b8] ss:$24 sps:$4 sm:$0xff]   ;;  %v3274_v20 = vld [vmem:[#allocation8 + $0x4bc] ss:$24 sps:$4 sm:$0xff]  }
 0x1b2   :  { %2246 = vmatprep.mubr.bf16.mxu1 %v4587_v8  ;;  %v704_v60 = vmul.f32 %v4207_v9, %v610_v34  ;;  %v794_v28 = vadd.f32 %v4213_v4, %v700_v38  ;;  %2293 = vmatprep.subr.bf16.mxu0 %v3265_v11  ;;  %v787_v27 = vadd.f32 %v4238_v25, %v693_v31  ;;  %v5049_v9 = vld [vmem:[#allocation18_spill] sm:$0xff] }
 0x1b3   :  { %v4600_v44 = vpack.c.bf16 %v789_v46, %v785_v52  ;;  %v702_v0 = vmul.f32 %v4210_v3, %v608_v48  ;;  %2294 = vmatpush2.bf16.msra.mxu0 %v3263_v17  ;;  %2416 = vmatprep.subr.bf16.mxu1 %v3268_v47  ;;  %v706_v54 = vmul.f32 %v4210_v3, %v612_v58  ;;  %v5051_v11 = vld [vmem:[#allocation26_spill] sm:$0xff]  ;;  %v3289_v58 = vld [vmem:[#allocation8 + $0x134] ss:$24 sps:$4 sm:$0xff]  }
 0x1b4   :  { %v798_v42 = vadd.f32 %v4213_v4, %v704_v60  ;;  %2295 = vmatprep.subr.bf16.mxu0 %v3271_v5  ;;  %v605_v10 = vmul.f32 %v4541_v57, %v5049_v9  ;;  %v609_v33 = vmul.f32 %v3412_v6, %v5050_v24  ;;  %v4609_v7 = vpack.c.bf16 %v791_v51, %v787_v27  ;;  %v5052_v31 = vld [vmem:[#allocation30_spill] sm:$0xff]  ;;  %v3277_v4 = vld [vmem:[#allocation8 + $0x18c] ss:$24 sps:$4 sm:$0xff]  }
 0x1b5   :  { %v796_v56 = vadd.f32 %v4225_v19, %v702_v0  ;;  %2417 = vmatpush2.bf16.msra.mxu1 %v3266_v45  ;;  %v607_v22 = vmul.f32 %v4541_v57, %v5051_v11  ;;  %v611_v59 = vmul.f32 %v3412_v6, %v5052_v31  ;;  %v3272_v17 = vld [vmem:[#allocation8 + $0x4b8] ss:$24 sps:$4 sm:$0xff]   ;;  %v800_v47 = vadd.f32 %v4225_v19, %v706_v54  ;;  %v3280_v5 = vld [vmem:[#allocation8 + $0x48c] ss:$24 sps:$4 sm:$0xff]   ;;  %v3275_v57 = vld [vmem:[#allocation8 + $0x188] ss:$24 sps:$4 sm:$0xff]  }
 0x1b6   :  { %2124 = vmatmul.mubr.bf16.gmra.mxu0 %v4600_v44  ;;  %v4616_v3 = vpack.c.bf16 %v798_v42, %v794_v28  ;;  %v699_v34 = vmul.f32 %v4216_v37, %v605_v10  ;;  %v703_v38 = vmul.f32 %v4216_v37, %v609_v33  ;;  %2418 = vmatprep.subr.bf16.mxu1 %v3274_v20  ;;  %v3283_v51 = vld [vmem:[#allocation8 + $0x164] ss:$24 sps:$4 sm:$0xff]   ;;  %v3278_v37 = vld [vmem:[#allocation8 + $0x488] ss:$24 sps:$4 sm:$0xff]   ;;  %v3292_v0 = vld [vmem:[#allocation8 + $0x434] ss:$24 sps:$4 sm:$0xff]  }
 0x1b7   :  { %2296 = vmatpush2.bf16.msra.mxu0 %v3269_v1  ;;  %v705_v52 = vmul.f32 %v4219_v13, %v611_v59  ;;  %2247 = vmatmul.mubr.bf16.gmra.mxu1 %v4609_v7  ;;  %v4624_v6 = vpack.c.bf16 %v800_v47, %v796_v56  ;;  %v701_v19 = vmul.f32 %v4219_v13, %v607_v22  ;;  %v3286_v60 = vld [vmem:[#allocation8 + $0x464] ss:$24 sps:$4 sm:$0xff]   ;;  %v3284_v27 = vld [vmem:[#allocation8 + $0x460] ss:$24 sps:$4 sm:$0xff]   ;;  %v3290_v20 = vld [vmem:[#allocation8 + $0x430] ss:$24 sps:$4 sm:$0xff]  }
 0x1b8   :  { %2133 = vmatprep.mubr.bf16.mxu0 %v4616_v3  ;;  %v797_v46 = vadd.f32 %v4228_v39, %v703_v38  ;;  %2297 = vmatprep.subr.bf16.mxu0 %v3277_v4  ;;  %v793_v48 = vadd.f32 %v4228_v39, %v699_v34  ;;  %v3281_v39 = vld [vmem:[#allocation8 + $0x160] ss:$24 sps:$4 sm:$0xff]   ;;  %v3295_v1 = vld [vmem:[#allocation8 + $0x104] ss:$24 sps:$4 sm:$0xff]   ;;  %v3301_v9 = vld [vmem:[#allocation8 + $0xd4] ss:$24 sps:$4 sm:$0xff]  }
 0x1b9   :  { %2419 = vmatpush2.bf16.msra.mxu1 %v3272_v17  ;;  %2256 = vmatprep.mubr.bf16.mxu1 %v4624_v6  ;;  %v799_v45 = vadd.f32 %v4238_v25, %v705_v52  ;;  %v795_v23 = vadd.f32 %v4238_v25, %v701_v19  ;;  %v3287_v25 = vld [vmem:[#allocation8 + $0x130] ss:$24 sps:$4 sm:$0xff]   ;;  %v3298_v42 = vld [vmem:[#allocation8 + $0x404] ss:$24 sps:$4 sm:$0xff]   ;;  %v3293_v54 = vld [vmem:[#allocation8 + $0x100] ss:$24 sps:$4 sm:$0xff]  }
 0x1ba   :  { %2420 = vmatprep.subr.bf16.mxu1 %v3280_v5  ;;  %v4631_v28 = vpack.c.bf16 %v797_v46, %v793_v48  ;;  %v3296_v10 = vld [vmem:[#allocation8 + $0x400] ss:$24 sps:$4 sm:$0xff]   ;;  %v3304_v24 = vld [vmem:[#allocation8 + $0x3d4] ss:$24 sps:$4 sm:$0xff]   ;;  %v3299_v33 = vld [vmem:[#allocation8 + $0xd0] ss:$24 sps:$4 sm:$0xff]  }
 0x1bb   :  { %2298 = vmatpush2.bf16.msra.mxu0 %v3275_v57  ;;  %v4635_v13 = vpack.c.bf16 %v799_v45, %v795_v23  ;;  %v5053_v56 = vld [vmem:[#allocation38_spill] sm:$0xff]  ;;  %v5054_v22 = vld [vmem:[#allocation44_spill] sm:$0xff]  ;;  %v5055_v34 = vld [vmem:[#allocation49_spill] sm:$0xff] }
 0x1bc   :  { %2513 = vmatprep.subr.bf16.mxu0 %v3283_v51  ;;  %v3307_v11 = vld [vmem:[#allocation8 + $0xa4] ss:$24 sps:$4 sm:$0xff]   ;;  %v3302_v31 = vld [vmem:[#allocation8 + $0x3d0] ss:$24 sps:$4 sm:$0xff]   ;;  %v3305_v17 = vld [vmem:[#allocation8 + $0xa0] ss:$24 sps:$4 sm:$0xff]  }
 0x1bd   :  { %2421 = vmatpush2.bf16.msra.mxu1 %v3278_v37  ;;  %v3310_v59 = vld [vmem:[#allocation8 + $0x3a4] ss:$24 sps:$4 sm:$0xff]   ;;  %v3313_v4 = vld [vmem:[#allocation8 + $0x74] ss:$24 sps:$4 sm:$0xff]   ;;  %v3308_v47 = vld [vmem:[#allocation8 + $0x3a0] ss:$24 sps:$4 sm:$0xff]  }
 0x1be   :  { %2134 = vmatmul.mubr.bf16.gmra.mxu0 %v4631_v28  ;;  %2636 = vmatprep.subr.bf16.mxu1 %v3286_v60  ;;  %v3316_v38 = vld [vmem:[#allocation8 + $0x374] ss:$24 sps:$4 sm:$0xff]   ;;  %v3311_v5 = vld [vmem:[#allocation8 + $0x70] ss:$24 sps:$4 sm:$0xff]   ;;  %v3319_v57 = vld [vmem:[#allocation8 + $0x44] ss:$24 sps:$4 sm:$0xff]  }
 0x1bf   :  { %2299 = vmatprep.mubr.bf16.mxu0 %v4266_v18  ;;  %2257 = vmatmul.mubr.bf16.gmra.mxu1 %v4635_v13  ;;  %v5056_v52 = vld [vmem:[#allocation36_spill] sm:$0xff]  ;;  %v3322_v19 = vld [vmem:[#allocation8 + $0x344] ss:$24 sps:$4 sm:$0xff]   ;;  %v3317_v51 = vld [vmem:[#allocation8 + $0x40] ss:$24 sps:$4 sm:$0xff]  }
 0x1c0   :  { %2422 = vmatprep.mubr.bf16.mxu1 %v4268_v50  ;;  %v3314_v46 = vld [vmem:[#allocation8 + $0x370] ss:$24 sps:$4 sm:$0xff]   ;;  %v3325_v37 = vld [vmem:[#allocation8 + $0x14] ss:$24 sps:$4 sm:$0xff]   ;;  %v3320_v48 = vld [vmem:[#allocation8 + $0x340] ss:$24 sps:$4 sm:$0xff]  }
 0x1c1   :  { %v3328_v45 = vld [vmem:[#allocation8 + $0x314] ss:$24 sps:$4 sm:$0xff]   ;;  %v3323_v60 = vld [vmem:[#allocation8 + $0x10] ss:$24 sps:$4 sm:$0xff]  }
 0x1c2   :  { %v5057_v23 = vld [vmem:[#allocation37_spill] sm:$0xff] }
 0x1c6   :  { %2300 = vmatmul.mubr.bf16.vlgmr.msra.gmra.mxu0 %v4271_v55 }
 0x1c7   :  { %2514 = vmatpush1.bf16.msra.mxu0 %v3281_v39  ;;  %2309 = vmatprep.mubr.bf16.mxu0 %v4290_v21  ;;  %v3331_v39 = vld [vmem:[#allocation8 + $0x2e4] ss:$24 sps:$4 sm:$0xff]  }
 0x1c8   :  { %2423 = vmatmul.mubr.bf16.vlgmr.msra.gmra.mxu1 %v4273_v61  ;;  %2515 = vmatprep.subr.bf16.mxu0 %v3289_v58  ;;  %v5058_v58 = vld [vmem:[#allocation39_spill] sm:$0xff] }
 0x1c9   :  { %2432 = vmatprep.mubr.bf16.mxu1 %v4294_v30  ;;  %2637 = vmatpush1.bf16.msra.mxu1 %v3284_v27  ;;  %v3326_v27 = vld [vmem:[#allocation8 + $0x310] ss:$24 sps:$4 sm:$0xff]  }
 0x1ca   :  { %2638 = vmatprep.subr.bf16.mxu1 %v3292_v0  ;;  %v3334_v0 = vld [vmem:[#allocation8 + $0x5e4] ss:$24 sps:$4 sm:$0xff]  }
 0x1cb   :  { %2516 = vmatpush1.bf16.msra.mxu0 %v3287_v25  ;;  %v3329_v25 = vld [vmem:[#allocation8 + $0x2e0] ss:$24 sps:$4 sm:$0xff]  }
 0x1cc   :  { %2517 = vmatprep.subr.bf16.mxu0 %v3295_v1  ;;  %v3337_v1 = vld [vmem:[#allocation8 + $0x2b4] ss:$24 sps:$4 sm:$0xff]  }
 0x1cd   :  { %2639 = vmatpush1.bf16.msra.mxu1 %v3290_v20  ;;  %v3332_v20 = vld [vmem:[#allocation8 + $0x5e0] ss:$24 sps:$4 sm:$0xff]  }
 0x1ce   :  { %2310 = vmatmul.mubr.bf16.gmra.mxu0 %v4315_v63  ;;  %2640 = vmatprep.subr.bf16.mxu1 %v3298_v42  ;;  %v3340_v42 = vld [vmem:[#allocation8 + $0x5b4] ss:$24 sps:$4 sm:$0xff]  }
 0x1cf   :  { %2319 = vmatprep.mubr.bf16.mxu0 %v4329_v35  ;;  %2518 = vmatpush1.bf16.msra.mxu0 %v3293_v54  ;;  %v3335_v54 = vld [vmem:[#allocation8 + $0x2b0] ss:$24 sps:$4 sm:$0xff]  }
 0x1d0   :  { %2433 = vmatmul.mubr.bf16.gmra.mxu1 %v5053_v56  ;;  %2519 = vmatprep.subr.bf16.mxu0 %v3301_v9  ;;  %v3343_v9 = vld [vmem:[#allocation8 + $0x284] ss:$24 sps:$4 sm:$0xff]  }
 0x1d1   :  { %2442 = vmatprep.mubr.bf16.mxu1 %v5054_v22  ;;  %2641 = vmatpush1.bf16.msra.mxu1 %v3296_v10  ;;  %v3338_v10 = vld [vmem:[#allocation8 + $0x5b0] ss:$24 sps:$4 sm:$0xff]  }
 0x1d2   :  { %2642 = vmatprep.subr.bf16.mxu1 %v3304_v24  ;;  %v3346_v24 = vld [vmem:[#allocation8 + $0x584] ss:$24 sps:$4 sm:$0xff]  }
 0x1d3   :  { %2520 = vmatpush1.bf16.msra.mxu0 %v3299_v33  ;;  %v3341_v33 = vld [vmem:[#allocation8 + $0x280] ss:$24 sps:$4 sm:$0xff]  }
 0x1d4   :  { %2521 = vmatprep.subr.bf16.mxu0 %v3307_v11  ;;  %v3349_v11 = vld [vmem:[#allocation8 + $0x254] ss:$24 sps:$4 sm:$0xff]  }
 0x1d5   :  { %2643 = vmatpush1.bf16.msra.mxu1 %v3302_v31  ;;  %v3344_v31 = vld [vmem:[#allocation8 + $0x580] ss:$24 sps:$4 sm:$0xff]  }
 0x1d6   :  { %2320 = vmatmul.mubr.bf16.gmra.mxu0 %v5055_v34  ;;  %2644 = vmatprep.subr.bf16.mxu1 %v3310_v59  ;;  %v3352_v59 = vld [vmem:[#allocation8 + $0x554] ss:$24 sps:$4 sm:$0xff]  }
 0x1d7   :  { %2329 = vmatprep.mubr.bf16.mxu0 %v4386_v14  ;;  %2522 = vmatpush1.bf16.msra.mxu0 %v3305_v17  ;;  %v3347_v17 = vld [vmem:[#allocation8 + $0x250] ss:$24 sps:$4 sm:$0xff]  }
 0x1d8   :  { %2443 = vmatmul.mubr.bf16.gmra.mxu1 %v5056_v52  ;;  %2523 = vmatprep.subr.bf16.mxu0 %v3313_v4  ;;  %v3355_v4 = vld [vmem:[#allocation8 + $0x224] ss:$24 sps:$4 sm:$0xff]  }
 0x1d9   :  { %2452 = vmatprep.mubr.bf16.mxu1 %v4397_v32  ;;  %2645 = vmatpush1.bf16.msra.mxu1 %v3308_v47  ;;  %v3350_v47 = vld [vmem:[#allocation8 + $0x550] ss:$24 sps:$4 sm:$0xff]  }
 0x1da   :  { %2646 = vmatprep.subr.bf16.mxu1 %v3316_v38  ;;  %v3358_v38 = vld [vmem:[#allocation8 + $0x524] ss:$24 sps:$4 sm:$0xff]  }
 0x1db   :  { %2524 = vmatpush1.bf16.msra.mxu0 %v3311_v5  ;;  %v3353_v5 = vld [vmem:[#allocation8 + $0x220] ss:$24 sps:$4 sm:$0xff]  }
 0x1dc   :  { %2525 = vmatprep.subr.bf16.mxu0 %v3319_v57  ;;  %v3361_v57 = vld [vmem:[#allocation8 + $0x1f4] ss:$24 sps:$4 sm:$0xff]  }
 0x1dd   :  { %2647 = vmatpush1.bf16.msra.mxu1 %v3314_v46  ;;  %v3356_v46 = vld [vmem:[#allocation8 + $0x520] ss:$24 sps:$4 sm:$0xff]  }
 0x1de   :  { %2330 = vmatmul.mubr.bf16.gmra.mxu0 %v4412_v16  ;;  %2648 = vmatprep.subr.bf16.mxu1 %v3322_v19  ;;  %v3364_v19 = vld [vmem:[#allocation8 + $0x4f4] ss:$24 sps:$4 sm:$0xff]  }
 0x1df   :  { %2339 = vmatprep.mubr.bf16.mxu0 %v4437_v36  ;;  %2526 = vmatpush1.bf16.msra.mxu0 %v3317_v51  ;;  %v3359_v51 = vld [vmem:[#allocation8 + $0x1f0] ss:$24 sps:$4 sm:$0xff]  }
 0x1e0   :  { %2453 = vmatmul.mubr.bf16.gmra.mxu1 %v5057_v23  ;;  %2527 = vmatprep.subr.bf16.mxu0 %v3325_v37  ;;  %v3367_v37 = vld [vmem:[#allocation8 + $0x1c4] ss:$24 sps:$4 sm:$0xff]  }
 0x1e1   :  { %2462 = vmatprep.mubr.bf16.mxu1 %v5058_v58  ;;  %2649 = vmatpush1.bf16.msra.mxu1 %v3320_v48  ;;  %v3362_v48 = vld [vmem:[#allocation8 + $0x4f0] ss:$24 sps:$4 sm:$0xff]  }
 0x1e2   :  { %2650 = vmatprep.subr.bf16.mxu1 %v3328_v45  ;;  %v3370_v45 = vld [vmem:[#allocation8 + $0x4c4] ss:$24 sps:$4 sm:$0xff]  }
 0x1e3   :  { %2528 = vmatpush1.bf16.msra.mxu0 %v3323_v60  ;;  %v3365_v60 = vld [vmem:[#allocation8 + $0x1c0] ss:$24 sps:$4 sm:$0xff]  }
 0x1e4   :  { %2529 = vmatprep.subr.bf16.mxu0 %v3331_v39  ;;  %v3373_v39 = vld [vmem:[#allocation8 + $0x194] ss:$24 sps:$4 sm:$0xff]  }
 0x1e5   :  { %2651 = vmatpush1.bf16.msra.mxu1 %v3326_v27  ;;  %v3368_v27 = vld [vmem:[#allocation8 + $0x4c0] ss:$24 sps:$4 sm:$0xff]  }
 0x1e6   :  { %2340 = vmatmul.mubr.bf16.gmra.mxu0 %v4468_v29  ;;  %2652 = vmatprep.subr.bf16.mxu1 %v3334_v0  ;;  %v3376_v0 = vld [vmem:[#allocation8 + $0x494] ss:$24 sps:$4 sm:$0xff]  }
 0x1e7   :  { %2349 = vmatprep.mubr.bf16.mxu0 %v4480_v53  ;;  %2530 = vmatpush2.bf16.msra.mxu0 %v3329_v25  ;;  %v3371_v25 = vld [vmem:[#allocation8 + $0x190] ss:$24 sps:$4 sm:$0xff]  }
 0x1e8   :  { %2463 = vmatmul.mubr.bf16.gmra.mxu1 %v4472_v62  ;;  %2531 = vmatprep.subr.bf16.mxu0 %v3337_v1  ;;  %v3374_v1 = vld [vmem:[#allocation8 + $0x490] ss:$24 sps:$4 sm:$0xff]  }
 0x1e9   :  { %2472 = vmatprep.mubr.bf16.mxu1 %v4497_v26  ;;  %2653 = vmatpush2.bf16.msra.mxu1 %v3332_v20 }
 0x1ea   :  { %2654 = vmatprep.subr.bf16.mxu1 %v3340_v42 }
 0x1eb   :  { %2532 = vmatpush2.bf16.msra.mxu0 %v3335_v54 }
 0x1ec   :  { %2533 = vmatprep.subr.bf16.mxu0 %v3343_v9 }
 0x1ed   :  { %2655 = vmatpush2.bf16.msra.mxu1 %v3338_v10 }
 0x1ee   :  { %2350 = vmatmul.mubr.bf16.gmra.mxu0 %v4512_v49  ;;  %2656 = vmatprep.subr.bf16.mxu1 %v3346_v24 }
 0x1ef   :  { %2359 = vmatprep.mubr.bf16.mxu0 %v4522_v43  ;;  %2534 = vmatpush2.bf16.msra.mxu0 %v3341_v33 }
 0x1f0   :  { %2473 = vmatmul.mubr.bf16.gmra.mxu1 %v4516_v41  ;;  %2535 = vmatprep.subr.bf16.mxu0 %v3349_v11 }
 0x1f1   :  { %2482 = vmatprep.mubr.bf16.mxu1 %v4544_v15  ;;  %2657 = vmatpush2.bf16.msra.mxu1 %v3344_v31 }
 0x1f2   :  { %2658 = vmatprep.subr.bf16.mxu1 %v3352_v59 }
 0x1f3   :  { %2536 = vmatpush2.bf16.msra.mxu0 %v3347_v17 }
 0x1f4   :  { %2537 = vmatprep.subr.bf16.mxu0 %v3355_v4 }
 0x1f5   :  { %2659 = vmatpush2.bf16.msra.mxu1 %v3350_v47 }
 0x1f6   :  { %2360 = vmatmul.mubr.bf16.gmra.mxu0 %v4559_v12  ;;  %2660 = vmatprep.subr.bf16.mxu1 %v3358_v38 }
 0x1f7   :  { %2369 = vmatprep.mubr.bf16.mxu0 %v4569_v2  ;;  %2538 = vmatpush2.bf16.msra.mxu0 %v3353_v5 }
 0x1f8   :  { %2483 = vmatmul.mubr.bf16.gmra.mxu1 %v4563_v40  ;;  %2539 = vmatprep.subr.bf16.mxu0 %v3361_v57 }
 0x1f9   :  { %2492 = vmatprep.mubr.bf16.mxu1 %v4587_v8  ;;  %2661 = vmatpush2.bf16.msra.mxu1 %v3356_v46 }
 0x1fa   :  { %2662 = vmatprep.subr.bf16.mxu1 %v3364_v19 }
 0x1fb   :  { %2540 = vmatpush2.bf16.msra.mxu0 %v3359_v51 }
 0x1fc   :  { %2541 = vmatprep.subr.bf16.mxu0 %v3367_v37 }
 0x1fd   :  { %2663 = vmatpush2.bf16.msra.mxu1 %v3362_v48 }
 0x1fe   :  { %2370 = vmatmul.mubr.bf16.gmra.mxu0 %v4600_v44  ;;  %2664 = vmatprep.subr.bf16.mxu1 %v3370_v45 }
 0x1ff   :  { %2379 = vmatprep.mubr.bf16.mxu0 %v4616_v3  ;;  %2542 = vmatpush2.bf16.msra.mxu0 %v3365_v60 }
 0x200   :  { %2493 = vmatmul.mubr.bf16.gmra.mxu1 %v4609_v7  ;;  %2543 = vmatprep.subr.bf16.mxu0 %v3373_v39 }
 0x201   :  { %2502 = vmatprep.mubr.bf16.mxu1 %v4624_v6  ;;  %2665 = vmatpush2.bf16.msra.mxu1 %v3368_v27 }
 0x202   :  { %2666 = vmatprep.subr.bf16.mxu1 %v3376_v0 }
 0x203   :  { %2544 = vmatpush2.bf16.msra.mxu0 %v3371_v25 }
 0x205   :  { %2667 = vmatpush2.bf16.msra.mxu1 %v3374_v1 }
 0x206   :  { %2380 = vmatmul.mubr.bf16.gmra.mxu0 %v4631_v28 }
 0x207   :  { %2545 = vmatprep.mubr.bf16.mxu0 %v4266_v18  ;;  %v5059_v18 = vld [vmem:[#allocation53_spill] sm:$0xff] }
 0x208   :  { %2503 = vmatmul.mubr.bf16.gmra.mxu1 %v4635_v13 }
 0x209   :  { %2668 = vmatprep.mubr.bf16.mxu1 %v4268_v50 }
 0x20e   :  { %2546 = vmatmul.mubr.bf16.vlgmr.msra.gmra.mxu0 %v4271_v55  ;;  %v4699_v55 = vld [vmem:[%s4854_s4] sm:$0x3f]  ;;  %s3537_s4 = smov [#allocation10]  }
 0x20f   :  { %2555 = vmatprep.mubr.bf16.mxu0 %v4290_v21  ;;  %v4705_v50 = vrot.slane %v4699_v55, %v5059_v18  ;;  %s2872_s15 = sshll.u32 %s3537_s4, 4  ;;  %s2873_s15 = int_to_ptr.vmem [resolvable:$true] %s2872_s15 }
 0x210   :  { %2669 = vmatmul.mubr.bf16.vlgmr.msra.gmra.mxu1 %v4273_v61  ;;  %v5060_v61 = vld [vmem:[#allocation34_spill] sm:$0xff]  ;;  %s3501_s16 = scalar_lea.vmem %s2873_s15, 13824  ;;  %p3506_p7 = scmp.lt.s32.totalorder %s2873_s15, %s2873_s15 }
 0x211   :  { %2678 = vmatprep.mubr.bf16.mxu1 %v4294_v30  ;;  %v4711_v21 = vrot.slane %v4699_v55, %v5060_v61  ;;  %p3502_p6 = scmp.ne.s32.totalorder %s2873_s15, %s3501_s16  ;;  %p3507_p8 = scmp.lt.s32.totalorder %s3501_s16, %s3501_s16 }
 0x213   :  { %p3508_p9 = por %p3507_p8, %p3506_p7 }
 0x215   :  { %p3509_p10 = pnand %p3508_p9, %p3502_p6 }
 0x216   :  { %2556 = vmatmul.mubr.bf16.gmra.mxu0 %v4315_v63 }
 0x217   :  { %2565 = vmatprep.mubr.bf16.mxu0 %v4329_v35 }
 0x218   :  { %2679 = vmatmul.mubr.bf16.gmra.mxu1 %v5053_v56 }
 0x219   :  { %2688 = vmatprep.mubr.bf16.mxu1 %v5054_v22 }
 0x21e   :  { %2566 = vmatmul.mubr.bf16.gmra.mxu0 %v5055_v34 }
 0x21f   :  { %2575 = vmatprep.mubr.bf16.mxu0 %v4386_v14 }
 0x220   :  { %2689 = vmatmul.mubr.bf16.gmra.mxu1 %v5056_v52 }
 0x221   :  { %2698 = vmatprep.mubr.bf16.mxu1 %v4397_v32 }
 0x226   :  { %2576 = vmatmul.mubr.bf16.gmra.mxu0 %v4412_v16 }
 0x227   :  { %2585 = vmatprep.mubr.bf16.mxu0 %v4437_v36 }
 0x228   :  { %2699 = vmatmul.mubr.bf16.gmra.mxu1 %v5057_v23 }
 0x229   :  { %2708 = vmatprep.mubr.bf16.mxu1 %v5058_v58 }
 0x22e   :  { %2586 = vmatmul.mubr.bf16.gmra.mxu0 %v4468_v29 }
 0x22f   :  { %2595 = vmatprep.mubr.bf16.mxu0 %v4480_v53 }
 0x230   :  { %2709 = vmatmul.mubr.bf16.gmra.mxu1 %v4472_v62 }
 0x231   :  { %2718 = vmatprep.mubr.bf16.mxu1 %v4497_v26 }
 0x236   :  { %2596 = vmatmul.mubr.bf16.gmra.mxu0 %v4512_v49 }
 0x237   :  { %2605 = vmatprep.mubr.bf16.mxu0 %v4522_v43 }
 0x238   :  { %2719 = vmatmul.mubr.bf16.gmra.mxu1 %v4516_v41 }
 0x239   :  { %2728 = vmatprep.mubr.bf16.mxu1 %v4544_v15 }
 0x23a   :  { %v2055_v30 = vpop.f32.mrf.mxu0  ;;  %v2178_v63 = vpop.f32.mrf.mxu1 }
 0x23b   :  { %v2056_v35 = vadd.f32 %v2055_v30, %v4705_v50 }
 0x23c   :  { %v2057_v14 = vpop.f32.mrf.mxu0  ;;  %v2180_v32 = vpop.f32.mrf.mxu1 }
 0x23d   :  { %v2179_v16 = vadd.f32 %v2178_v63, %v2056_v35  ;;  %v2058_v29 = vadd.f32 %v2057_v14, %v4711_v21 }
 0x23e   :  { %2606 = vmatmul.mubr.bf16.gmra.mxu0 %v4559_v12  ;;  %v2059_v36 = vpop.f32.mrf.mxu0  ;;  %v2182_v62 = vpop.f32.mrf.mxu1 }
 0x23f   :  { %2759 = vst [vmem:[#allocation10] sm:$0xff] %v2179_v16  ;;  %2615 = vmatprep.mubr.bf16.mxu0 %v4569_v2  ;;  %v2181_v53 = vadd.f32 %v2180_v32, %v2058_v29  ;;  %v2060_v26 = vadd.f32 %v2059_v36, %v4705_v50 }
 0x240   :  { %2729 = vmatmul.mubr.bf16.gmra.mxu1 %v4563_v40  ;;  %v2061_v49 = vpop.f32.mrf.mxu0  ;;  %v2184_v41 = vpop.f32.mrf.mxu1 }
 0x241   :  { %2738 = vmatprep.mubr.bf16.mxu1 %v4587_v8  ;;  %2760 = vst [vmem:[#allocation10 + $0x8] sm:$0xff] %v2181_v53  ;;  %v2183_v43 = vadd.f32 %v2182_v62, %v2060_v26  ;;  %v2062_v15 = vadd.f32 %v2061_v49, %v4711_v21 }
 0x242   :  { %v2065_v56 = vpop.f32.mrf.mxu0 }
 0x243   :  { %2765 = vst [vmem:[#allocation10 + $0x30] sm:$0xff] %v2183_v43  ;;  %v2185_v12 = vadd.f32 %v2184_v41, %v2062_v15  ;;  %v2066_v22 = vadd.f32 %v2065_v56, %v4705_v50 }
 0x244   :  { %v2188_v34 = vpop.f32.mrf.mxu1  ;;  %v2067_v2 = vpop.f32.mrf.mxu0 }
 0x245   :  { %2766 = vst [vmem:[#allocation10 + $0x38] sm:$0xff] %v2185_v12  ;;  %v2189_v52 = vadd.f32 %v2188_v34, %v2066_v22  ;;  %v2068_v23 = vadd.f32 %v2067_v2, %v4711_v21 }
 0x246   :  { %2616 = vmatmul.mubr.bf16.gmra.mxu0 %v4600_v44  ;;  %v2190_v40 = vpop.f32.mrf.mxu1  ;;  %v2069_v58 = vpop.f32.mrf.mxu0 }
 0x247   :  { %2771 = vst [vmem:[#allocation10 + $0x60] sm:$0xff] %v2189_v52  ;;  %2625 = vmatprep.mubr.bf16.mxu0 %v4616_v3  ;;  %v2191_v8 = vadd.f32 %v2190_v40, %v2068_v23  ;;  %v2070_v20 = vadd.f32 %v2069_v58, %v4705_v50 }
 0x248   :  { %2739 = vmatmul.mubr.bf16.gmra.mxu1 %v4609_v7  ;;  %v2192_v42 = vpop.f32.mrf.mxu1  ;;  %v2071_v54 = vpop.f32.mrf.mxu0 }
 0x249   :  { %2748 = vmatprep.mubr.bf16.mxu1 %v4624_v6  ;;  %2772 = vst [vmem:[#allocation10 + $0x68] sm:$0xff] %v2191_v8  ;;  %v2193_v9 = vadd.f32 %v2192_v42, %v2070_v20  ;;  %v2072_v10 = vadd.f32 %v2071_v54, %v4711_v21 }
 0x24a   :  { %v2194_v24 = vpop.f32.mrf.mxu1 }
 0x24b   :  { %2777 = vst [vmem:[#allocation10 + $0x90] sm:$0xff] %v2193_v9  ;;  %v2195_v44 = vadd.f32 %v2194_v24, %v2072_v10 }
 0x24c   :  { %v2075_v33 = vpop.f32.mrf.mxu0 }
 0x24d   :  { %2778 = vst [vmem:[#allocation10 + $0x98] sm:$0xff] %v2195_v44  ;;  %v2076_v3 = vadd.f32 %v2075_v33, %v4705_v50 }
 0x24e   :  { %2626 = vmatmul.mubr.bf16.gmra.mxu0 %v4631_v28  ;;  %v2077_v11 = vpop.f32.mrf.mxu0  ;;  %v2198_v31 = vpop.f32.mrf.mxu1 }
 0x24f   :  { %v2078_v7 = vadd.f32 %v2077_v11, %v4711_v21  ;;  %v2199_v59 = vadd.f32 %v2198_v31, %v2076_v3 }
 0x250   :  { %2749 = vmatmul.mubr.bf16.gmra.mxu1 %v4635_v13  ;;  %v2079_v6 = vpop.f32.mrf.mxu0  ;;  %v2200_v17 = vpop.f32.mrf.mxu1 }
 0x251   :  { %v2080_v4 = vadd.f32 %v2079_v6, %v4705_v50  ;;  %2783 = vst [vmem:[#allocation10 + $0xc0] sm:$0xff] %v2199_v59  ;;  %v2201_v47 = vadd.f32 %v2200_v17, %v2078_v7 }
 0x252   :  { %v2081_v38 = vpop.f32.mrf.mxu0  ;;  %v2202_v5 = vpop.f32.mrf.mxu1 }
 0x253   :  { %v2082_v57 = vadd.f32 %v2081_v38, %v4711_v21  ;;  %2784 = vst [vmem:[#allocation10 + $0xc8] sm:$0xff] %v2201_v47  ;;  %v2203_v46 = vadd.f32 %v2202_v5, %v2080_v4 }
 0x254   :  { %v2204_v28 = vpop.f32.mrf.mxu1 }
 0x255   :  { %v2085_v19 = vpop.f32.mrf.mxu0  ;;  %2789 = vst [vmem:[#allocation10 + $0xf0] sm:$0xff] %v2203_v46  ;;  %v2205_v51 = vadd.f32 %v2204_v28, %v2082_v57 }
 0x256   :  { %v2086_v37 = vadd.f32 %v2085_v19, %v4705_v50 }
 0x257   :  { %v2087_v48 = vpop.f32.mrf.mxu0  ;;  %2790 = vst [vmem:[#allocation10 + $0xf8] sm:$0xff] %v2205_v51  ;;  %v2208_v13 = vpop.f32.mrf.mxu1 }
 0x258   :  { %v2088_v45 = vadd.f32 %v2087_v48, %v4711_v21  ;;  %v2209_v60 = vadd.f32 %v2208_v13, %v2086_v37 }
 0x259   :  { %v2089_v39 = vpop.f32.mrf.mxu0  ;;  %v2210_v27 = vpop.f32.mrf.mxu1 }
 0x25a   :  { %v2090_v0 = vadd.f32 %v2089_v39, %v4705_v50  ;;  %2795 = vst [vmem:[#allocation10 + $0x120] sm:$0xff] %v2209_v60  ;;  %v2211_v25 = vadd.f32 %v2210_v27, %v2088_v45 }
 0x25b   :  { %v2091_v1 = vpop.f32.mrf.mxu0  ;;  %v2212_v18 = vpop.f32.mrf.mxu1 }
 0x25c   :  { %v2092_v61 = vadd.f32 %v2091_v1, %v4711_v21  ;;  %2796 = vst [vmem:[#allocation10 + $0x128] sm:$0xff] %v2211_v25  ;;  %v2213_v30 = vadd.f32 %v2212_v18, %v2090_v0 }
 0x25d   :  { %v2214_v63 = vpop.f32.mrf.mxu1 }
 0x25e   :  { %v2095_v35 = vpop.f32.mrf.mxu0  ;;  %2801 = vst [vmem:[#allocation10 + $0x150] sm:$0xff] %v2213_v30  ;;  %v2215_v14 = vadd.f32 %v2214_v63, %v2092_v61 }
 0x25f   :  { %v2096_v32 = vadd.f32 %v2095_v35, %v4705_v50  ;;  %v2218_v16 = vpop.f32.mrf.mxu1 }
 0x260   :  { %v2097_v29 = vpop.f32.mrf.mxu0  ;;  %2802 = vst [vmem:[#allocation10 + $0x158] sm:$0xff] %v2215_v14 }
 0x261   :  { %v2219_v36 = vadd.f32 %v2218_v16, %v2096_v32  ;;  %v2098_v62 = vadd.f32 %v2097_v29, %v4711_v21  ;;  %v2220_v53 = vpop.f32.mrf.mxu1 }
 0x262   :  { %v2099_v26 = vpop.f32.mrf.mxu0 }
 0x263   :  { %2807 = vst [vmem:[#allocation10 + $0x180] sm:$0xff] %v2219_v36  ;;  %v2221_v49 = vadd.f32 %v2220_v53, %v2098_v62  ;;  %v2100_v41 = vadd.f32 %v2099_v26, %v4705_v50  ;;  %v2222_v43 = vpop.f32.mrf.mxu1 }
 0x264   :  { %v2101_v15 = vpop.f32.mrf.mxu0 }
 0x265   :  { %2808 = vst [vmem:[#allocation10 + $0x188] sm:$0xff] %v2221_v49  ;;  %v2223_v56 = vadd.f32 %v2222_v43, %v2100_v41  ;;  %v2102_v12 = vadd.f32 %v2101_v15, %v4711_v21  ;;  %v2224_v22 = vpop.f32.mrf.mxu1 }
 0x266   :  { %v2105_v34 = vpop.f32.mrf.mxu0 }
 0x267   :  { %2813 = vst [vmem:[#allocation10 + $0x1b0] sm:$0xff] %v2223_v56  ;;  %v2225_v2 = vadd.f32 %v2224_v22, %v2102_v12  ;;  %v2106_v52 = vadd.f32 %v2105_v34, %v4705_v50  ;;  %v2228_v23 = vpop.f32.mrf.mxu1  ;;  %v5061_v12 = vld [vmem:[#allocation54_spill] sm:$0xff] }
 0x268   :  { %v2107_v40 = vpop.f32.mrf.mxu0  ;;  %v4760_v22 = vrot.slane %v4699_v55, %v5061_v12 }
 0x269   :  { %2814 = vst [vmem:[#allocation10 + $0x1b8] sm:$0xff] %v2225_v2  ;;  %v2229_v58 = vadd.f32 %v2228_v23, %v2106_v52  ;;  %v2108_v8 = vadd.f32 %v2107_v40, %v4711_v21  ;;  %v2230_v20 = vpop.f32.mrf.mxu1  ;;  %v5062_v40 = vld [vmem:[#allocation52_spill] sm:$0xff] }
 0x26a   :  { %v2109_v42 = vpop.f32.mrf.mxu0 }
 0x26b   :  { %2819 = vst [vmem:[#allocation10 + $0x1e0] sm:$0xff] %v2229_v58  ;;  %v2231_v54 = vadd.f32 %v2230_v20, %v2108_v8  ;;  %v2110_v9 = vadd.f32 %v2109_v42, %v4705_v50  ;;  %v2232_v10 = vpop.f32.mrf.mxu1  ;;  %v4765_v58 = vrot.slane %v4699_v55, %v5062_v40 }
 0x26c   :  { %v2111_v24 = vpop.f32.mrf.mxu0 }
 0x26d   :  { %2820 = vst [vmem:[#allocation10 + $0x1e8] sm:$0xff] %v2231_v54  ;;  %v2233_v44 = vadd.f32 %v2232_v10, %v2110_v9  ;;  %v2112_v33 = vadd.f32 %v2111_v24, %v4711_v21  ;;  %v2234_v3 = vpop.f32.mrf.mxu1 }
 0x26e   :  { %v2115_v11 = vpop.f32.mrf.mxu0 }
 0x26f   :  { %2825 = vst [vmem:[#allocation10 + $0x210] sm:$0xff] %v2233_v44  ;;  %v2235_v31 = vadd.f32 %v2234_v3, %v2112_v33  ;;  %v2116_v7 = vadd.f32 %v2115_v11, %v4705_v50  ;;  %v2238_v59 = vpop.f32.mrf.mxu1 }
 0x270   :  { %v2117_v6 = vpop.f32.mrf.mxu0 }
 0x271   :  { %2826 = vst [vmem:[#allocation10 + $0x218] sm:$0xff] %v2235_v31  ;;  %v2239_v17 = vadd.f32 %v2238_v59, %v2116_v7  ;;  %v2118_v4 = vadd.f32 %v2117_v6, %v4711_v21  ;;  %v2240_v47 = vpop.f32.mrf.mxu1 }
 0x272   :  { %v2119_v38 = vpop.f32.mrf.mxu0 }
 0x273   :  { %2831 = vst [vmem:[#allocation10 + $0x240] sm:$0xff] %v2239_v17  ;;  %v2241_v5 = vadd.f32 %v2240_v47, %v2118_v4  ;;  %v2120_v57 = vadd.f32 %v2119_v38, %v4705_v50  ;;  %v2242_v46 = vpop.f32.mrf.mxu1 }
 0x274   :  { %v2121_v28 = vpop.f32.mrf.mxu0 }
 0x275   :  { %2832 = vst [vmem:[#allocation10 + $0x248] sm:$0xff] %v2241_v5  ;;  %v2243_v19 = vadd.f32 %v2242_v46, %v2120_v57  ;;  %v2122_v51 = vadd.f32 %v2121_v28, %v4711_v21  ;;  %v2244_v37 = vpop.f32.mrf.mxu1 }
 0x276   :  { %v2125_v48 = vpop.f32.mrf.mxu0 }
 0x277   :  { %2837 = vst [vmem:[#allocation10 + $0x270] sm:$0xff] %v2243_v19  ;;  %v2245_v13 = vadd.f32 %v2244_v37, %v2122_v51  ;;  %v2126_v45 = vadd.f32 %v2125_v48, %v4705_v50  ;;  %v2248_v60 = vpop.f32.mrf.mxu1 }
 0x278   :  { %v2127_v39 = vpop.f32.mrf.mxu0 }
 0x279   :  { %2838 = vst [vmem:[#allocation10 + $0x278] sm:$0xff] %v2245_v13  ;;  %v2249_v27 = vadd.f32 %v2248_v60, %v2126_v45  ;;  %v2128_v0 = vadd.f32 %v2127_v39, %v4711_v21  ;;  %v2250_v25 = vpop.f32.mrf.mxu1 }
 0x27a   :  { %v2129_v1 = vpop.f32.mrf.mxu0 }
 0x27b   :  { %2843 = vst [vmem:[#allocation10 + $0x2a0] sm:$0xff] %v2249_v27  ;;  %v2251_v18 = vadd.f32 %v2250_v25, %v2128_v0  ;;  %v2130_v61 = vadd.f32 %v2129_v1, %v4705_v50  ;;  %v2252_v30 = vpop.f32.mrf.mxu1 }
 0x27c   :  { %v2131_v63 = vpop.f32.mrf.mxu0 }
 0x27d   :  { %2844 = vst [vmem:[#allocation10 + $0x2a8] sm:$0xff] %v2251_v18  ;;  %v2253_v35 = vadd.f32 %v2252_v30, %v2130_v61  ;;  %v2132_v14 = vadd.f32 %v2131_v63, %v4711_v21  ;;  %v2254_v32 = vpop.f32.mrf.mxu1 }
 0x27e   :  { %v2135_v16 = vpop.f32.mrf.mxu0 }
 0x27f   :  { %2849 = vst [vmem:[#allocation10 + $0x2d0] sm:$0xff] %v2253_v35  ;;  %v2255_v29 = vadd.f32 %v2254_v32, %v2132_v14  ;;  %v2136_v36 = vadd.f32 %v2135_v16, %v4705_v50  ;;  %v2258_v62 = vpop.f32.mrf.mxu1 }
 0x280   :  { %v2137_v53 = vpop.f32.mrf.mxu0 }
 0x281   :  { %2850 = vst [vmem:[#allocation10 + $0x2d8] sm:$0xff] %v2255_v29  ;;  %v2259_v26 = vadd.f32 %v2258_v62, %v2136_v36  ;;  %v2138_v49 = vadd.f32 %v2137_v53, %v4711_v21  ;;  %v2260_v41 = vpop.f32.mrf.mxu1 }
 0x282   :  { %v2139_v43 = vpop.f32.mrf.mxu0 }
 0x283   :  { %2855 = vst [vmem:[#allocation10 + $0x300] sm:$0xff] %v2259_v26  ;;  %v2261_v15 = vadd.f32 %v2260_v41, %v2138_v49  ;;  %v2140_v56 = vadd.f32 %v2139_v43, %v4705_v50  ;;  %v2262_v34 = vpop.f32.mrf.mxu1 }
 0x284   :  { %v2141_v2 = vpop.f32.mrf.mxu0 }
 0x285   :  { %2856 = vst [vmem:[#allocation10 + $0x308] sm:$0xff] %v2261_v15  ;;  %v2263_v52 = vadd.f32 %v2262_v34, %v2140_v56  ;;  %v2142_v23 = vadd.f32 %v2141_v2, %v4711_v21  ;;  %v2264_v8 = vpop.f32.mrf.mxu1 }
 0x286   :  { %v2301_v20 = vpop.f32.mrf.mxu0 }
 0x287   :  { %2861 = vst [vmem:[#allocation10 + $0x330] sm:$0xff] %v2263_v52  ;;  %v2265_v42 = vadd.f32 %v2264_v8, %v2142_v23  ;;  %v2302_v50 = vadd.f32 %v2301_v20, %v4760_v22 }
 0x288   :  { %v2424_v54 = vpop.f32.mrf.mxu1  ;;  %v2303_v9 = vpop.f32.mrf.mxu0 }
 0x289   :  { %2862 = vst [vmem:[#allocation10 + $0x338] sm:$0xff] %v2265_v42  ;;  %v2425_v10 = vadd.f32 %v2424_v54, %v2302_v50  ;;  %v2304_v24 = vadd.f32 %v2303_v9, %v4765_v58 }
 0x28a   :  { %v2426_v44 = vpop.f32.mrf.mxu1  ;;  %v2305_v33 = vpop.f32.mrf.mxu0 }
 0x28b   :  { %2761 = vst [vmem:[#allocation10 + $0x10] sm:$0xff] %v2425_v10  ;;  %v2427_v21 = vadd.f32 %v2426_v44, %v2304_v24  ;;  %v2306_v3 = vadd.f32 %v2305_v33, %v4760_v22 }
 0x28c   :  { %v2428_v11 = vpop.f32.mrf.mxu1  ;;  %v2307_v31 = vpop.f32.mrf.mxu0 }
 0x28d   :  { %2762 = vst [vmem:[#allocation10 + $0x18] sm:$0xff] %v2427_v21  ;;  %v2429_v7 = vadd.f32 %v2428_v11, %v2306_v3  ;;  %v2308_v59 = vadd.f32 %v2307_v31, %v4765_v58 }
 0x28e   :  { %v2430_v6 = vpop.f32.mrf.mxu1  ;;  %v2311_v17 = vpop.f32.mrf.mxu0 }
 0x28f   :  { %2767 = vst [vmem:[#allocation10 + $0x40] sm:$0xff] %v2429_v7  ;;  %v2431_v4 = vadd.f32 %v2430_v6, %v2308_v59  ;;  %v2312_v47 = vadd.f32 %v2311_v17, %v4760_v22 }
 0x290   :  { %v2434_v38 = vpop.f32.mrf.mxu1  ;;  %v2313_v5 = vpop.f32.mrf.mxu0 }
 0x291   :  { %2768 = vst [vmem:[#allocation10 + $0x48] sm:$0xff] %v2431_v4  ;;  %v2435_v57 = vadd.f32 %v2434_v38, %v2312_v47  ;;  %v2314_v46 = vadd.f32 %v2313_v5, %v4765_v58 }
 0x292   :  { %v2436_v28 = vpop.f32.mrf.mxu1  ;;  %v2315_v19 = vpop.f32.mrf.mxu0 }
 0x293   :  { %2773 = vst [vmem:[#allocation10 + $0x70] sm:$0xff] %v2435_v57  ;;  %v2437_v51 = vadd.f32 %v2436_v28, %v2314_v46  ;;  %v2316_v37 = vadd.f32 %v2315_v19, %v4760_v22 }
 0x294   :  { %v2438_v48 = vpop.f32.mrf.mxu1  ;;  %v2317_v13 = vpop.f32.mrf.mxu0 }
 0x295   :  { %2774 = vst [vmem:[#allocation10 + $0x78] sm:$0xff] %v2437_v51  ;;  %v2439_v45 = vadd.f32 %v2438_v48, %v2316_v37  ;;  %v2318_v60 = vadd.f32 %v2317_v13, %v4765_v58 }
 0x296   :  { %v2440_v39 = vpop.f32.mrf.mxu1  ;;  %v2321_v27 = vpop.f32.mrf.mxu0 }
 0x297   :  { %2779 = vst [vmem:[#allocation10 + $0xa0] sm:$0xff] %v2439_v45  ;;  %v2441_v0 = vadd.f32 %v2440_v39, %v2318_v60  ;;  %v2322_v25 = vadd.f32 %v2321_v27, %v4760_v22 }
 0x298   :  { %v2444_v1 = vpop.f32.mrf.mxu1  ;;  %v2323_v18 = vpop.f32.mrf.mxu0 }
 0x299   :  { %2780 = vst [vmem:[#allocation10 + $0xa8] sm:$0xff] %v2441_v0  ;;  %v2445_v61 = vadd.f32 %v2444_v1, %v2322_v25  ;;  %v2324_v30 = vadd.f32 %v2323_v18, %v4765_v58 }
 0x29a   :  { %v2446_v63 = vpop.f32.mrf.mxu1  ;;  %v2325_v35 = vpop.f32.mrf.mxu0 }
 0x29b   :  { %2785 = vst [vmem:[#allocation10 + $0xd0] sm:$0xff] %v2445_v61  ;;  %v2447_v14 = vadd.f32 %v2446_v63, %v2324_v30  ;;  %v2326_v32 = vadd.f32 %v2325_v35, %v4760_v22 }
 0x29c   :  { %v2448_v16 = vpop.f32.mrf.mxu1  ;;  %v2327_v29 = vpop.f32.mrf.mxu0 }
 0x29d   :  { %2786 = vst [vmem:[#allocation10 + $0xd8] sm:$0xff] %v2447_v14  ;;  %v2449_v36 = vadd.f32 %v2448_v16, %v2326_v32  ;;  %v2328_v62 = vadd.f32 %v2327_v29, %v4765_v58 }
 0x29e   :  { %v2450_v53 = vpop.f32.mrf.mxu1  ;;  %v2331_v26 = vpop.f32.mrf.mxu0 }
 0x29f   :  { %2791 = vst [vmem:[#allocation10 + $0x100] sm:$0xff] %v2449_v36  ;;  %v2451_v49 = vadd.f32 %v2450_v53, %v2328_v62  ;;  %v2332_v41 = vadd.f32 %v2331_v26, %v4760_v22 }
 0x2a0   :  { %v2454_v43 = vpop.f32.mrf.mxu1  ;;  %v2333_v15 = vpop.f32.mrf.mxu0 }
 0x2a1   :  { %2792 = vst [vmem:[#allocation10 + $0x108] sm:$0xff] %v2451_v49  ;;  %v2455_v56 = vadd.f32 %v2454_v43, %v2332_v41  ;;  %v2334_v12 = vadd.f32 %v2333_v15, %v4765_v58 }
 0x2a2   :  { %v2456_v34 = vpop.f32.mrf.mxu1  ;;  %v2335_v2 = vpop.f32.mrf.mxu0 }
 0x2a3   :  { %2797 = vst [vmem:[#allocation10 + $0x130] sm:$0xff] %v2455_v56  ;;  %v2457_v52 = vadd.f32 %v2456_v34, %v2334_v12  ;;  %v2336_v23 = vadd.f32 %v2335_v2, %v4760_v22 }
 0x2a4   :  { %v2458_v40 = vpop.f32.mrf.mxu1  ;;  %v2337_v8 = vpop.f32.mrf.mxu0 }
 0x2a5   :  { %2798 = vst [vmem:[#allocation10 + $0x138] sm:$0xff] %v2457_v52  ;;  %v2459_v20 = vadd.f32 %v2458_v40, %v2336_v23  ;;  %v2338_v42 = vadd.f32 %v2337_v8, %v4765_v58 }
 0x2a6   :  { %v2460_v50 = vpop.f32.mrf.mxu1  ;;  %v2341_v54 = vpop.f32.mrf.mxu0 }
 0x2a7   :  { %2803 = vst [vmem:[#allocation10 + $0x160] sm:$0xff] %v2459_v20  ;;  %v2461_v9 = vadd.f32 %v2460_v50, %v2338_v42  ;;  %v2342_v10 = vadd.f32 %v2341_v54, %v4760_v22 }
 0x2a8   :  { %v2464_v24 = vpop.f32.mrf.mxu1  ;;  %v2343_v44 = vpop.f32.mrf.mxu0 }
 0x2a9   :  { %2804 = vst [vmem:[#allocation10 + $0x168] sm:$0xff] %v2461_v9  ;;  %v2465_v33 = vadd.f32 %v2464_v24, %v2342_v10  ;;  %v2344_v21 = vadd.f32 %v2343_v44, %v4765_v58 }
 0x2aa   :  { %v2466_v3 = vpop.f32.mrf.mxu1  ;;  %v2345_v11 = vpop.f32.mrf.mxu0 }
 0x2ab   :  { %2809 = vst [vmem:[#allocation10 + $0x190] sm:$0xff] %v2465_v33  ;;  %v2467_v31 = vadd.f32 %v2466_v3, %v2344_v21  ;;  %v2346_v7 = vadd.f32 %v2345_v11, %v4760_v22  ;;  %v5063_v21 = vld [vmem:[#allocation33_spill] sm:$0xff] }
 0x2ac   :  { %v2468_v59 = vpop.f32.mrf.mxu1  ;;  %v2347_v6 = vpop.f32.mrf.mxu0  ;;  %v1049_v3 = vsub.s32 4, %v5063_v21 }
 0x2ad   :  { %2810 = vst [vmem:[#allocation10 + $0x198] sm:$0xff] %v2467_v31  ;;  %v2469_v17 = vadd.f32 %v2468_v59, %v2346_v7  ;;  %v2348_v4 = vadd.f32 %v2347_v6, %v4765_v58  ;;  %v1053_v6 = vsub.s32 5, %v5063_v21 }
 0x2ae   :  { %v2470_v47 = vpop.f32.mrf.mxu1  ;;  %v2351_v38 = vpop.f32.mrf.mxu0 }
 0x2af   :  { %2815 = vst [vmem:[#allocation10 + $0x1c0] sm:$0xff] %v2469_v17  ;;  %v2471_v5 = vadd.f32 %v2470_v47, %v2348_v4  ;;  %v2352_v57 = vadd.f32 %v2351_v38, %v4760_v22 }
 0x2b0   :  { %v2474_v46 = vpop.f32.mrf.mxu1  ;;  %v2353_v28 = vpop.f32.mrf.mxu0 }
 0x2b1   :  { %2816 = vst [vmem:[#allocation10 + $0x1c8] sm:$0xff] %v2471_v5  ;;  %v2475_v19 = vadd.f32 %v2474_v46, %v2352_v57  ;;  %v2354_v51 = vadd.f32 %v2353_v28, %v4765_v58  ;;  %v4805_v5 = vrot.slane %v4699_v55, %v1049_v3 }
 0x2b2   :  { %v2476_v37 = vpop.f32.mrf.mxu1  ;;  %v2355_v48 = vpop.f32.mrf.mxu0 }
 0x2b3   :  { %2821 = vst [vmem:[#allocation10 + $0x1f0] sm:$0xff] %v2475_v19  ;;  %v2477_v13 = vadd.f32 %v2476_v37, %v2354_v51  ;;  %v2356_v45 = vadd.f32 %v2355_v48, %v4760_v22  ;;  %v4809_v51 = vrot.slane %v4699_v55, %v1053_v6 }
 0x2b4   :  { %v2478_v60 = vpop.f32.mrf.mxu1  ;;  %v2357_v39 = vpop.f32.mrf.mxu0 }
 0x2b5   :  { %2822 = vst [vmem:[#allocation10 + $0x1f8] sm:$0xff] %v2477_v13  ;;  %v2479_v27 = vadd.f32 %v2478_v60, %v2356_v45  ;;  %v2358_v0 = vadd.f32 %v2357_v39, %v4765_v58 }
 0x2b6   :  { %v2480_v25 = vpop.f32.mrf.mxu1  ;;  %v2361_v1 = vpop.f32.mrf.mxu0 }
 0x2b7   :  { %2827 = vst [vmem:[#allocation10 + $0x220] sm:$0xff] %v2479_v27  ;;  %v2481_v18 = vadd.f32 %v2480_v25, %v2358_v0  ;;  %v2362_v61 = vadd.f32 %v2361_v1, %v4760_v22 }
 0x2b8   :  { %v2484_v30 = vpop.f32.mrf.mxu1  ;;  %v2363_v63 = vpop.f32.mrf.mxu0 }
 0x2b9   :  { %2828 = vst [vmem:[#allocation10 + $0x228] sm:$0xff] %v2481_v18  ;;  %v2485_v35 = vadd.f32 %v2484_v30, %v2362_v61  ;;  %v2364_v14 = vadd.f32 %v2363_v63, %v4765_v58 }
 0x2ba   :  { %v2486_v32 = vpop.f32.mrf.mxu1  ;;  %v2365_v16 = vpop.f32.mrf.mxu0 }
 0x2bb   :  { %2833 = vst [vmem:[#allocation10 + $0x250] sm:$0xff] %v2485_v35  ;;  %v2487_v29 = vadd.f32 %v2486_v32, %v2364_v14  ;;  %v2366_v36 = vadd.f32 %v2365_v16, %v4760_v22 }
 0x2bc   :  { %v2488_v62 = vpop.f32.mrf.mxu1  ;;  %v2367_v53 = vpop.f32.mrf.mxu0 }
 0x2bd   :  { %2834 = vst [vmem:[#allocation10 + $0x258] sm:$0xff] %v2487_v29  ;;  %v2489_v26 = vadd.f32 %v2488_v62, %v2366_v36  ;;  %v2368_v49 = vadd.f32 %v2367_v53, %v4765_v58 }
 0x2be   :  { %v2490_v41 = vpop.f32.mrf.mxu1  ;;  %v2371_v43 = vpop.f32.mrf.mxu0 }
 0x2bf   :  { %2839 = vst [vmem:[#allocation10 + $0x280] sm:$0xff] %v2489_v26  ;;  %v2491_v15 = vadd.f32 %v2490_v41, %v2368_v49  ;;  %v2372_v56 = vadd.f32 %v2371_v43, %v4760_v22 }
 0x2c0   :  { %v2494_v12 = vpop.f32.mrf.mxu1  ;;  %v2373_v34 = vpop.f32.mrf.mxu0 }
 0x2c1   :  { %2840 = vst [vmem:[#allocation10 + $0x288] sm:$0xff] %v2491_v15  ;;  %v2495_v2 = vadd.f32 %v2494_v12, %v2372_v56  ;;  %v2374_v52 = vadd.f32 %v2373_v34, %v4765_v58 }
 0x2c2   :  { %v2496_v23 = vpop.f32.mrf.mxu1  ;;  %v2375_v40 = vpop.f32.mrf.mxu0 }
 0x2c3   :  { %2845 = vst [vmem:[#allocation10 + $0x2b0] sm:$0xff] %v2495_v2  ;;  %v2497_v8 = vadd.f32 %v2496_v23, %v2374_v52  ;;  %v2376_v20 = vadd.f32 %v2375_v40, %v4760_v22 }
 0x2c4   :  { %v2498_v42 = vpop.f32.mrf.mxu1  ;;  %v2377_v50 = vpop.f32.mrf.mxu0 }
 0x2c5   :  { %2846 = vst [vmem:[#allocation10 + $0x2b8] sm:$0xff] %v2497_v8  ;;  %v2499_v54 = vadd.f32 %v2498_v42, %v2376_v20  ;;  %v2378_v9 = vadd.f32 %v2377_v50, %v4765_v58 }
 0x2c6   :  { %v2500_v10 = vpop.f32.mrf.mxu1  ;;  %v2381_v24 = vpop.f32.mrf.mxu0 }
 0x2c7   :  { %2851 = vst [vmem:[#allocation10 + $0x2e0] sm:$0xff] %v2499_v54  ;;  %v2501_v44 = vadd.f32 %v2500_v10, %v2378_v9  ;;  %v2382_v33 = vadd.f32 %v2381_v24, %v4760_v22 }
 0x2c8   :  { %v2504_v11 = vpop.f32.mrf.mxu1  ;;  %v2383_v31 = vpop.f32.mrf.mxu0 }
 0x2c9   :  { %2852 = vst [vmem:[#allocation10 + $0x2e8] sm:$0xff] %v2501_v44  ;;  %v2505_v7 = vadd.f32 %v2504_v11, %v2382_v33  ;;  %v2384_v59 = vadd.f32 %v2383_v31, %v4765_v58 }
 0x2ca   :  { %v2506_v17 = vpop.f32.mrf.mxu1  ;;  %v2385_v4 = vpop.f32.mrf.mxu0 }
 0x2cb   :  { %2857 = vst [vmem:[#allocation10 + $0x310] sm:$0xff] %v2505_v7  ;;  %v2507_v47 = vadd.f32 %v2506_v17, %v2384_v59  ;;  %v2386_v38 = vadd.f32 %v2385_v4, %v4760_v22 }
 0x2cc   :  { %v2508_v57 = vpop.f32.mrf.mxu1  ;;  %v2387_v46 = vpop.f32.mrf.mxu0 }
 0x2cd   :  { %2858 = vst [vmem:[#allocation10 + $0x318] sm:$0xff] %v2507_v47  ;;  %v2509_v28 = vadd.f32 %v2508_v57, %v2386_v38  ;;  %v2388_v19 = vadd.f32 %v2387_v46, %v4765_v58 }
 0x2ce   :  { %v2510_v37 = vpop.f32.mrf.mxu1  ;;  %v2547_v48 = vpop.f32.mrf.mxu0 }
 0x2cf   :  { %2863 = vst [vmem:[#allocation10 + $0x340] sm:$0xff] %v2509_v28  ;;  %v2511_v13 = vadd.f32 %v2510_v37, %v2388_v19  ;;  %v2548_v45 = vadd.f32 %v2547_v48, %v4805_v5 }
 0x2d0   :  { %v2670_v60 = vpop.f32.mrf.mxu1  ;;  %v2549_v22 = vpop.f32.mrf.mxu0 }
 0x2d1   :  { %2864 = vst [vmem:[#allocation10 + $0x348] sm:$0xff] %v2511_v13  ;;  %v2671_v39 = vadd.f32 %v2670_v60, %v2548_v45  ;;  %v2550_v27 = vadd.f32 %v2549_v22, %v4809_v51 }
 0x2d2   :  { %v2672_v0 = vpop.f32.mrf.mxu1  ;;  %v2551_v25 = vpop.f32.mrf.mxu0 }
 0x2d3   :  { %2763 = vst [vmem:[#allocation10 + $0x20] sm:$0xff] %v2671_v39  ;;  %v2673_v1 = vadd.f32 %v2672_v0, %v2550_v27  ;;  %v2552_v58 = vadd.f32 %v2551_v25, %v4805_v5 }
 0x2d4   :  { %v2674_v55 = vpop.f32.mrf.mxu1  ;;  %v2553_v18 = vpop.f32.mrf.mxu0 }
 0x2d5   :  { %2764 = vst [vmem:[#allocation10 + $0x28] sm:$0xff] %v2673_v1  ;;  %v2675_v61 = vadd.f32 %v2674_v55, %v2552_v58  ;;  %v2554_v30 = vadd.f32 %v2553_v18, %v4809_v51 }
 0x2d6   :  { %v2676_v63 = vpop.f32.mrf.mxu1  ;;  %v2557_v35 = vpop.f32.mrf.mxu0 }
 0x2d7   :  { %2769 = vst [vmem:[#allocation10 + $0x50] sm:$0xff] %v2675_v61  ;;  %v2677_v14 = vadd.f32 %v2676_v63, %v2554_v30  ;;  %v2558_v32 = vadd.f32 %v2557_v35, %v4805_v5 }
 0x2d8   :  { %v2680_v16 = vpop.f32.mrf.mxu1  ;;  %v2559_v29 = vpop.f32.mrf.mxu0 }
 0x2d9   :  { %2770 = vst [vmem:[#allocation10 + $0x58] sm:$0xff] %v2677_v14  ;;  %v2681_v36 = vadd.f32 %v2680_v16, %v2558_v32  ;;  %v2560_v62 = vadd.f32 %v2559_v29, %v4809_v51 }
 0x2da   :  { %v2682_v53 = vpop.f32.mrf.mxu1  ;;  %v2561_v26 = vpop.f32.mrf.mxu0 }
 0x2db   :  { %2775 = vst [vmem:[#allocation10 + $0x80] sm:$0xff] %v2681_v36  ;;  %v2683_v49 = vadd.f32 %v2682_v53, %v2560_v62  ;;  %v2562_v41 = vadd.f32 %v2561_v26, %v4805_v5 }
 0x2dc   :  { %v2684_v43 = vpop.f32.mrf.mxu1  ;;  %v2563_v15 = vpop.f32.mrf.mxu0 }
 0x2dd   :  { %2776 = vst [vmem:[#allocation10 + $0x88] sm:$0xff] %v2683_v49  ;;  %v2685_v56 = vadd.f32 %v2684_v43, %v2562_v41  ;;  %v2564_v12 = vadd.f32 %v2563_v15, %v4809_v51 }
 0x2de   :  { %v2686_v34 = vpop.f32.mrf.mxu1  ;;  %v2567_v2 = vpop.f32.mrf.mxu0 }
 0x2df   :  { %2781 = vst [vmem:[#allocation10 + $0xb0] sm:$0xff] %v2685_v56  ;;  %v2687_v52 = vadd.f32 %v2686_v34, %v2564_v12  ;;  %v2568_v23 = vadd.f32 %v2567_v2, %v4805_v5 }
 0x2e0   :  { %v2690_v40 = vpop.f32.mrf.mxu1  ;;  %v2569_v8 = vpop.f32.mrf.mxu0 }
 0x2e1   :  { %2782 = vst [vmem:[#allocation10 + $0xb8] sm:$0xff] %v2687_v52  ;;  %v2691_v20 = vadd.f32 %v2690_v40, %v2568_v23  ;;  %v2570_v42 = vadd.f32 %v2569_v8, %v4809_v51 }
 0x2e2   :  { %v2692_v50 = vpop.f32.mrf.mxu1  ;;  %v2571_v54 = vpop.f32.mrf.mxu0 }
 0x2e3   :  { %2787 = vst [vmem:[#allocation10 + $0xe0] sm:$0xff] %v2691_v20  ;;  %v2693_v9 = vadd.f32 %v2692_v50, %v2570_v42  ;;  %v2572_v10 = vadd.f32 %v2571_v54, %v4805_v5 }
 0x2e4   :  { %v2694_v24 = vpop.f32.mrf.mxu1  ;;  %v2573_v44 = vpop.f32.mrf.mxu0 }
 0x2e5   :  { %2788 = vst [vmem:[#allocation10 + $0xe8] sm:$0xff] %v2693_v9  ;;  %v2695_v33 = vadd.f32 %v2694_v24, %v2572_v10  ;;  %v2574_v21 = vadd.f32 %v2573_v44, %v4809_v51 }
 0x2e6   :  { %v2696_v3 = vpop.f32.mrf.mxu1  ;;  %v2577_v11 = vpop.f32.mrf.mxu0 }
 0x2e7   :  { %2793 = vst [vmem:[#allocation10 + $0x110] sm:$0xff] %v2695_v33  ;;  %v2697_v31 = vadd.f32 %v2696_v3, %v2574_v21  ;;  %v2578_v7 = vadd.f32 %v2577_v11, %v4805_v5 }
 0x2e8   :  { %v2700_v59 = vpop.f32.mrf.mxu1  ;;  %v2579_v6 = vpop.f32.mrf.mxu0 }
 0x2e9   :  { %2794 = vst [vmem:[#allocation10 + $0x118] sm:$0xff] %v2697_v31  ;;  %v2701_v17 = vadd.f32 %v2700_v59, %v2578_v7  ;;  %v2580_v4 = vadd.f32 %v2579_v6, %v4809_v51 }
 0x2ea   :  { %v2702_v47 = vpop.f32.mrf.mxu1  ;;  %v2581_v38 = vpop.f32.mrf.mxu0 }
 0x2eb   :  { %2799 = vst [vmem:[#allocation10 + $0x140] sm:$0xff] %v2701_v17  ;;  %v2703_v57 = vadd.f32 %v2702_v47, %v2580_v4  ;;  %v2582_v46 = vadd.f32 %v2581_v38, %v4805_v5 }
 0x2ec   :  { %v2704_v28 = vpop.f32.mrf.mxu1  ;;  %v2583_v19 = vpop.f32.mrf.mxu0 }
 0x2ed   :  { %2800 = vst [vmem:[#allocation10 + $0x148] sm:$0xff] %v2703_v57  ;;  %v2705_v37 = vadd.f32 %v2704_v28, %v2582_v46  ;;  %v2584_v48 = vadd.f32 %v2583_v19, %v4809_v51 }
 0x2ee   :  { %v2706_v13 = vpop.f32.mrf.mxu1  ;;  %v2587_v45 = vpop.f32.mrf.mxu0 }
 0x2ef   :  { %2805 = vst [vmem:[#allocation10 + $0x170] sm:$0xff] %v2705_v37  ;;  %v2707_v60 = vadd.f32 %v2706_v13, %v2584_v48  ;;  %v2588_v22 = vadd.f32 %v2587_v45, %v4805_v5 }
 0x2f0   :  { %v2710_v39 = vpop.f32.mrf.mxu1  ;;  %v2589_v27 = vpop.f32.mrf.mxu0 }
 0x2f1   :  { %2806 = vst [vmem:[#allocation10 + $0x178] sm:$0xff] %v2707_v60  ;;  %v2711_v0 = vadd.f32 %v2710_v39, %v2588_v22  ;;  %v2590_v25 = vadd.f32 %v2589_v27, %v4809_v51 }
 0x2f2   :  { %v2712_v1 = vpop.f32.mrf.mxu1  ;;  %v2591_v58 = vpop.f32.mrf.mxu0 }
 0x2f3   :  { %2811 = vst [vmem:[#allocation10 + $0x1a0] sm:$0xff] %v2711_v0  ;;  %v2713_v55 = vadd.f32 %v2712_v1, %v2590_v25  ;;  %v2592_v18 = vadd.f32 %v2591_v58, %v4805_v5 }
 0x2f4   :  { %v2714_v61 = vpop.f32.mrf.mxu1  ;;  %v2593_v30 = vpop.f32.mrf.mxu0 }
 0x2f5   :  { %2812 = vst [vmem:[#allocation10 + $0x1a8] sm:$0xff] %v2713_v55  ;;  %v2715_v63 = vadd.f32 %v2714_v61, %v2592_v18  ;;  %v2594_v35 = vadd.f32 %v2593_v30, %v4809_v51 }
 0x2f6   :  { %v2716_v14 = vpop.f32.mrf.mxu1  ;;  %v2597_v32 = vpop.f32.mrf.mxu0 }
 0x2f7   :  { %2817 = vst [vmem:[#allocation10 + $0x1d0] sm:$0xff] %v2715_v63  ;;  %v2717_v16 = vadd.f32 %v2716_v14, %v2594_v35  ;;  %v2598_v29 = vadd.f32 %v2597_v32, %v4805_v5 }
 0x2f8   :  { %v2720_v36 = vpop.f32.mrf.mxu1  ;;  %v2599_v62 = vpop.f32.mrf.mxu0 }
 0x2f9   :  { %2818 = vst [vmem:[#allocation10 + $0x1d8] sm:$0xff] %v2717_v16  ;;  %v2721_v53 = vadd.f32 %v2720_v36, %v2598_v29  ;;  %v2600_v26 = vadd.f32 %v2599_v62, %v4809_v51 }
 0x2fa   :  { %v2722_v49 = vpop.f32.mrf.mxu1  ;;  %v2601_v41 = vpop.f32.mrf.mxu0 }
 0x2fb   :  { %2823 = vst [vmem:[#allocation10 + $0x200] sm:$0xff] %v2721_v53  ;;  %v2723_v43 = vadd.f32 %v2722_v49, %v2600_v26  ;;  %v2602_v15 = vadd.f32 %v2601_v41, %v4805_v5 }
 0x2fc   :  { %v2724_v56 = vpop.f32.mrf.mxu1  ;;  %v2603_v12 = vpop.f32.mrf.mxu0 }
 0x2fd   :  { %2824 = vst [vmem:[#allocation10 + $0x208] sm:$0xff] %v2723_v43  ;;  %v2725_v34 = vadd.f32 %v2724_v56, %v2602_v15  ;;  %v2604_v2 = vadd.f32 %v2603_v12, %v4809_v51 }
 0x2fe   :  { %v2726_v52 = vpop.f32.mrf.mxu1  ;;  %v2607_v23 = vpop.f32.mrf.mxu0 }
 0x2ff   :  { %2829 = vst [vmem:[#allocation10 + $0x230] sm:$0xff] %v2725_v34  ;;  %v2727_v40 = vadd.f32 %v2726_v52, %v2604_v2  ;;  %v2608_v8 = vadd.f32 %v2607_v23, %v4805_v5 }
 0x300   :  { %v2730_v20 = vpop.f32.mrf.mxu1  ;;  %v2609_v42 = vpop.f32.mrf.mxu0 }
 0x301   :  { %2830 = vst [vmem:[#allocation10 + $0x238] sm:$0xff] %v2727_v40  ;;  %v2731_v50 = vadd.f32 %v2730_v20, %v2608_v8  ;;  %v2610_v54 = vadd.f32 %v2609_v42, %v4809_v51 }
 0x302   :  { %v2732_v9 = vpop.f32.mrf.mxu1  ;;  %v2611_v10 = vpop.f32.mrf.mxu0 }
 0x303   :  { %2835 = vst [vmem:[#allocation10 + $0x260] sm:$0xff] %v2731_v50  ;;  %v2733_v24 = vadd.f32 %v2732_v9, %v2610_v54  ;;  %v2612_v44 = vadd.f32 %v2611_v10, %v4805_v5 }
 0x304   :  { %v2734_v33 = vpop.f32.mrf.mxu1  ;;  %v2613_v21 = vpop.f32.mrf.mxu0 }
 0x305   :  { %2836 = vst [vmem:[#allocation10 + $0x268] sm:$0xff] %v2733_v24  ;;  %v2735_v3 = vadd.f32 %v2734_v33, %v2612_v44  ;;  %v2614_v11 = vadd.f32 %v2613_v21, %v4809_v51 }
 0x306   :  { %v2736_v31 = vpop.f32.mrf.mxu1  ;;  %v2617_v7 = vpop.f32.mrf.mxu0 }
 0x307   :  { %2841 = vst [vmem:[#allocation10 + $0x290] sm:$0xff] %v2735_v3  ;;  %v2737_v59 = vadd.f32 %v2736_v31, %v2614_v11  ;;  %v2618_v6 = vadd.f32 %v2617_v7, %v4805_v5 }
 0x308   :  { %v2740_v17 = vpop.f32.mrf.mxu1  ;;  %v2619_v4 = vpop.f32.mrf.mxu0 }
 0x309   :  { %2842 = vst [vmem:[#allocation10 + $0x298] sm:$0xff] %v2737_v59  ;;  %v2741_v47 = vadd.f32 %v2740_v17, %v2618_v6  ;;  %v2620_v38 = vadd.f32 %v2619_v4, %v4809_v51 }
 0x30a   :  { %v2742_v57 = vpop.f32.mrf.mxu1  ;;  %v2621_v46 = vpop.f32.mrf.mxu0 }
 0x30b   :  { %2847 = vst [vmem:[#allocation10 + $0x2c0] sm:$0xff] %v2741_v47  ;;  %v2743_v28 = vadd.f32 %v2742_v57, %v2620_v38  ;;  %v2622_v19 = vadd.f32 %v2621_v46, %v4805_v5 }
 0x30c   :  { %v2744_v37 = vpop.f32.mrf.mxu1  ;;  %v2623_v48 = vpop.f32.mrf.mxu0 }
 0x30d   :  { %2848 = vst [vmem:[#allocation10 + $0x2c8] sm:$0xff] %v2743_v28  ;;  %v2745_v13 = vadd.f32 %v2744_v37, %v2622_v19  ;;  %v2624_v45 = vadd.f32 %v2623_v48, %v4809_v51 }
 0x30e   :  { %v2746_v60 = vpop.f32.mrf.mxu1  ;;  %v2627_v22 = vpop.f32.mrf.mxu0 }
 0x30f   :  { %2853 = vst [vmem:[#allocation10 + $0x2f0] sm:$0xff] %v2745_v13  ;;  %v2747_v39 = vadd.f32 %v2746_v60, %v2624_v45  ;;  %v2628_v27 = vadd.f32 %v2627_v22, %v4805_v5 }
 0x310   :  { %v2750_v0 = vpop.f32.mrf.mxu1  ;;  %v2629_v25 = vpop.f32.mrf.mxu0 }
 0x311   :  { %2854 = vst [vmem:[#allocation10 + $0x2f8] sm:$0xff] %v2747_v39  ;;  %v2751_v1 = vadd.f32 %v2750_v0, %v2628_v27  ;;  %v2630_v58 = vadd.f32 %v2629_v25, %v4809_v51 }
 0x312   :  { %v2752_v55 = vpop.f32.mrf.mxu1  ;;  %v2631_v18 = vpop.f32.mrf.mxu0 }
 0x313   :  { %2859 = vst [vmem:[#allocation10 + $0x320] sm:$0xff] %v2751_v1  ;;  %v2753_v61 = vadd.f32 %v2752_v55, %v2630_v58  ;;  %v2632_v30 = vadd.f32 %v2631_v18, %v4805_v5 }
 0x314   :  { %v2754_v63 = vpop.f32.mrf.mxu1  ;;  %v2633_v35 = vpop.f32.mrf.mxu0 }
 0x315   :  { %2860 = vst [vmem:[#allocation10 + $0x328] sm:$0xff] %v2753_v61  ;;  %v2755_v14 = vadd.f32 %v2754_v63, %v2632_v30  ;;  %v2634_v32 = vadd.f32 %v2633_v35, %v4809_v51 }
 0x316   :  { %v2756_v16 = vpop.f32.mrf.mxu1 }
 0x317   :  { %2865 = vst [vmem:[#allocation10 + $0x350] sm:$0xff] %v2755_v14  ;;  %v2757_v29 = vadd.f32 %v2756_v16, %v2634_v32 }
 0x319   :  { %2866 = vst [vmem:[#allocation10 + $0x358] sm:$0xff] %v2757_v29 }
 0x31a   :  { %3512 = shalt.err (!%p3509_p10)
}
 0x31b   :  { %s3538_s17 = smov 768   ;;  %s3539_s18 = smov 48  }
 0x31c   :  { %2878 = dma.vmem_to_hbm [thread:$0]  %s2873_s15, 13824, %s4855_s5, [#allocation4], %s3538_s17, %s3538_s17, %s3539_s18  }
 0x31d   :  { %3527 = dma.done.wait [#allocation4], 13824  }
 0x31e   :  { %3528 = vsyncadd [#allocation4], 4294953472 }
 0x31f   :  { %2882 = vsyncpa [#allocation3], 1 }
 0x320   :  { %2883 = vsyncpa [#allocation6], 1 }
 0x321   :  { %2884 = vsyncpa [#allocation9], 1 }
 0x322   :  { %2885 = vsyncpa [#allocation4], 1 }

</bundles_post_ra>
